<compile_context>
chip_gen: v5e
topology: v5e:2x2
jax: 0.10.0
libtpu: 0.0.40
codegen_flags: <defaults>
</compile_context>

<pallas_src>
import jax
import jax.numpy as jnp
from jax.experimental import pallas as pl
from jax.experimental.pallas import tpu as pltpu


# ----------------------------------------------------------------------------
# Fused forward kernel builder (one image per grid step)
# ----------------------------------------------------------------------------
def _make_fused_kernel(channels, H, W, n_classes):
    """channels = (C0, C1, ..., CL); spatial H x W input; fused conv blocks + FC."""
    L = len(channels) - 1

    def kernel(*refs):
        # inputs: x, (w_l, b_l) * L, fc_w, fc_b ; outputs: o ; scratch: (pad_l, col_l)*L, feat
        x_ref = refs[0]
        conv_w = [refs[1 + 2 * l] for l in range(L)]
        conv_b = [refs[2 + 2 * l] for l in range(L)]
        fcw_ref = refs[1 + 2 * L]
        fcb_ref = refs[2 + 2 * L]
        o_ref = refs[3 + 2 * L]
        scratch = refs[4 + 2 * L:]
        pad_refs = [scratch[2 * l] for l in range(L)]
        col_refs = [scratch[2 * l + 1] for l in range(L)]
        feat_ref = scratch[2 * L]

        h, w, cin = H, W, channels[0]
        y = x_ref[0]                                    # (H, W, C0)  NHWC

        for l in range(L):
            cout = channels[l + 1]
            pad_ref, col_ref = pad_refs[l], col_refs[l]

            # Zero-pad (padding=1) into VMEM scratch — no XLA pad / HBM trip.
            pad_ref[...] = jnp.zeros_like(pad_ref)
            pad_ref[1:h + 1, 1:w + 1, :] = y

            # im2col: build (h*w, 9*cin) patch matrix, column order (dh, dw, cin).
            for dh in range(3):
                for dw in range(3):
                    tap = dh * 3 + dw
                    patch = pad_ref[dh:dh + h, dw:dw + w, :].reshape(h * w, cin)
                    col_ref[:, tap * cin:(tap + 1) * cin] = patch

            # Single MXU matmul per conv layer: (h*w, 9*cin) @ (9*cin, cout).
            acc = jnp.dot(col_ref[...], conv_w[l][...],
                          preferred_element_type=jnp.float32)
            acc = jnp.maximum(acc + conv_b[l][...], 0.0)        # bias + ReLU

            # MaxPool2d(2): reshapes only touch leading/sublane dims (lane=cout).
            z = acc.reshape(h, w, cout)
            z = jnp.max(z.reshape(h // 2, 2, w, cout), axis=1)
            z = jnp.max(z.reshape(h // 2, w // 2, 2, cout), axis=2)

            y = z
            h, w, cin = h // 2, w // 2, cout

        # Flatten to (1, h*w*cin) in (h, w, c) order (FC weight is pre-permuted
        # to match), via small lane-slab stores into a VMEM scratch.
        feat2d = y.reshape(h * w, cin)
        for r in range(h * w):
            feat_ref[0:1, r * cin:(r + 1) * cin] = feat2d[r:r + 1, :]

        # Fused FC: (1, F) @ (F, n_classes) + bias.
        logits = jnp.dot(feat_ref[...], fcw_ref[...],
                         preferred_element_type=jnp.float32) + fcb_ref[...]
        o_ref[0] = logits.astype(o_ref.dtype)

    return kernel


# ----------------------------------------------------------------------------
# Forward pass (single pallas_call for the whole network)
# ----------------------------------------------------------------------------
@jax.jit
def self_expanding_cnn_forward(x_nchw, prepared):
    N, C0, H, W = x_nchw.shape
    conv = prepared["convs"]                      # [(w_col (9*Cin, Cout), b (1, Cout)), ...]
    fcw, fcb = prepared["fc"]                     # (F, K) NHWC-permuted, (1, K)
    n_classes = fcw.shape[1]
    channels = [C0] + [wc.shape[1] for wc, _ in conv]
    L = len(conv)

    x_nhwc = jnp.transpose(x_nchw, (0, 2, 3, 1))  # channels on the lane dim

    kernel = _make_fused_kernel(tuple(channels), H, W, n_classes)

    in_specs = [pl.BlockSpec((1, H, W, C0), lambda n: (n, 0, 0, 0))]
    flat_args = [x_nhwc]
    for wc, bc in conv:
        in_specs.append(pl.BlockSpec(wc.shape, lambda n: (0, 0)))
        in_specs.append(pl.BlockSpec(bc.shape, lambda n: (0, 0)))
        flat_args += [wc, bc]
    in_specs.append(pl.BlockSpec(fcw.shape, lambda n: (0, 0)))
    in_specs.append(pl.BlockSpec(fcb.shape, lambda n: (0, 0)))
    flat_args += [fcw, fcb]

    scratch = []
    h, w, cin = H, W, C0
    for l in range(L):
        cout = channels[l + 1]
        scratch.append(pltpu.VMEM((h + 2, w + 2, cin), jnp.float32))   # padded image
        scratch.append(pltpu.VMEM((h * w, 9 * cin), jnp.float32))      # im2col matrix
        h, w, cin = h // 2, w // 2, cout
    scratch.append(pltpu.VMEM((1, h * w * cin), jnp.float32))          # flattened features

    out = pl.pallas_call(
        kernel,
        out_shape=jax.ShapeDtypeStruct((N, 1, n_classes), jnp.float32),
        grid=(N,),
        in_specs=in_specs,
        out_specs=pl.BlockSpec((1, 1, n_classes), lambda n: (n, 0, 0)),
        scratch_shapes=scratch,
        compiler_params=pltpu.CompilerParams(
            dimension_semantics=("parallel",)),      # shards batch across v7x's 2 TCs
    )(*flat_args)
    return out.reshape(N, n_classes)


# ----------------------------------------------------------------------------
# Parameter handling
# ----------------------------------------------------------------------------
def init_params(key, channels_list, n_classes):
    """PyTorch-layout parameters: conv (Cout,Cin,3,3)+(Cout,), fc (K,F)+(K,)."""
    params = {"convs": [], "fc": None}
    for i in range(len(channels_list) - 1):
        cin, cout = channels_list[i], channels_list[i + 1]
        key, kw, kb = jax.random.split(key, 3)
        fan_in = cin * 9
        w = jax.random.normal(kw, (cout, cin, 3, 3), jnp.float32) / jnp.sqrt(fan_in)
        b = jax.random.normal(kb, (cout,), jnp.float32) * 0.01
        params["convs"].append((w, b))
    in_features = channels_list[-1] * 4 * 4
    key, kw, kb = jax.random.split(key, 3)
    fw = jax.random.normal(kw, (n_classes, in_features), jnp.float32) / jnp.sqrt(in_features)
    fb = jax.random.normal(kb, (n_classes,), jnp.float32) * 0.01
    params["fc"] = (fw, fb)
    return params


def prepare_params(params):
    """One-time reorg of PyTorch-layout params into kernel-friendly layouts."""
    conv = []
    for w_oihw, b in params["convs"]:
        cout, cin, kh, kw = w_oihw.shape
        # (Cout,Cin,3,3) -> (3,3,Cin,Cout) -> (9*Cin, Cout), row order (dh, dw, cin)
        w_col = jnp.transpose(w_oihw, (2, 3, 1, 0)).reshape(kh * kw * cin, cout)
        conv.append((w_col, b.reshape(1, cout)))
    fw, fb = params["fc"]                       # (K, C*H3*W3), torch order (c, h, w)
    K = fw.shape[0]
    C = params["convs"][-1][0].shape[0]
    side = int(round((fw.shape[1] // C) ** 0.5))
    # Permute FC columns to the kernel's NHWC flatten order (h, w, c).
    fw_nhwc = jnp.transpose(fw.reshape(K, C, side, side),
                            (2, 3, 1, 0)).reshape(side * side * C, K)
    return {"convs": conv, "fc": (fw_nhwc, fb.reshape(1, K))}


# ----------------------------------------------------------------------------
# Pure-JAX reference (PyTorch semantics) for correctness checking
# ----------------------------------------------------------------------------
def _reference_forward(x_nchw, params):
    x = x_nchw
    for w, b in params["convs"]:
        x = jax.lax.conv_general_dilated(
            x, w, window_strides=(1, 1), padding=((1, 1), (1, 1)),
            dimension_numbers=("NCHW", "OIHW", "NCHW"))
        x = jnp.maximum(x + b.reshape(1, -1, 1, 1), 0.0)
        x = jax.lax.reduce_window(x, -jnp.inf, jax.lax.max,
                                  (1, 1, 2, 2), (1, 1, 2, 2), "VALID")
    x = x.reshape(x.shape[0], -1)
    fw, fb = params["fc"]
    return x @ fw.T + fb


if __name__ == "__main__":
    # channels_list=[4, 8, 16], n_classes=10; two (conv,relu,pool) blocks
    # => 16x16 input pools down to the 4x4 expected by the FC layer.
    channels_list = (4, 8, 16)
    n_classes = 10

    key = jax.random.PRNGKey(0)
    key, kx = jax.random.split(key)
    x = jax.random.normal(kx, (2, channels_list[0], 16, 16), jnp.float32)  # NCHW

    params = init_params(key, channels_list, n_classes)
    prepared = prepare_params(params)

    out = self_expanding_cnn_forward(x, prepared)
    out = jax.block_until_ready(out)

    assert out.shape == (2, n_classes), out.shape
    assert out.dtype == jnp.float32

    ref = _reference_forward(x, params)
    max_err = float(jnp.max(jnp.abs(out - ref)))
    assert bool(jnp.allclose(out, ref, atol=1e-3, rtol=1e-3)), max_err

    print("KERNEL_OK")
</pallas_src>

<mosaic_0001>
module attributes {stable_mosaic.version = 11 : i64} {
  func.func @kernel(%arg0: i32, %arg1: memref<1x16x16x4xf32, #tpu.memory_space<vmem>>, %arg2: memref<36x8xf32, #tpu.memory_space<vmem>>, %arg3: memref<1x8xf32, #tpu.memory_space<vmem>>, %arg4: memref<72x16xf32, #tpu.memory_space<vmem>>, %arg5: memref<1x16xf32, #tpu.memory_space<vmem>>, %arg6: memref<256x10xf32, #tpu.memory_space<vmem>>, %arg7: memref<1x10xf32, #tpu.memory_space<vmem>>, %arg8: memref<1x1x10xf32, #tpu.memory_space<vmem>>, %arg9: memref<18x18x4xf32, #tpu.memory_space<vmem>>, %arg10: memref<256x36xf32, #tpu.memory_space<vmem>>, %arg11: memref<10x10x8xf32, #tpu.memory_space<vmem>>, %arg12: memref<64x72xf32, #tpu.memory_space<vmem>>, %arg13: memref<1x256xf32, #tpu.memory_space<vmem>>) attributes {dimension_semantics = [#tpu.dimension_semantics<parallel>], iteration_bounds = array<i64: 2>, scalar_prefetch = 0 : i64, scratch_operands = 5 : i64, tpu.core_type = #tpu.core_type<tc>, window_params = [{transform_indices = @transform_0, window_bounds = array<i64: 1, 16, 16, 4>}, {pipeline_mode = #tpu.pipeline_mode<synchronous>, transform_indices = @transform_1, window_bounds = array<i64: 36, 8>}, {pipeline_mode = #tpu.pipeline_mode<synchronous>, transform_indices = @transform_2, window_bounds = array<i64: 1, 8>}, {pipeline_mode = #tpu.pipeline_mode<synchronous>, transform_indices = @transform_3, window_bounds = array<i64: 72, 16>}, {pipeline_mode = #tpu.pipeline_mode<synchronous>, transform_indices = @transform_4, window_bounds = array<i64: 1, 16>}, {pipeline_mode = #tpu.pipeline_mode<synchronous>, transform_indices = @transform_5, window_bounds = array<i64: 256, 10>}, {pipeline_mode = #tpu.pipeline_mode<synchronous>, transform_indices = @transform_6, window_bounds = array<i64: 1, 10>}, {transform_indices = @transform_7, window_bounds = array<i64: 1, 1, 10>}]} {
    %c0 = arith.constant 0 : index
    %c0_0 = arith.constant 0 : index
    %c0_1 = arith.constant 0 : index
    %c0_2 = arith.constant 0 : index
    %0 = vector.load %arg1[%c0, %c0_0, %c0_1, %c0_2] : memref<1x16x16x4xf32, #tpu.memory_space<vmem>>, vector<1x16x16x4xf32>
    %1 = vector.shape_cast %0 : vector<1x16x16x4xf32> to vector<16x16x4xf32>
    %cst = arith.constant 0.000000e+00 : f32
    %2 = vector.broadcast %cst : f32 to vector<18x18x4xf32>
    %c0_3 = arith.constant 0 : index
    %c0_4 = arith.constant 0 : index
    %c0_5 = arith.constant 0 : index
    %3 = vector.load %arg9[%c0_3, %c0_4, %c0_5] : memref<18x18x4xf32, #tpu.memory_space<vmem>>, vector<18x18x4xf32>
    tpu.vector_store %arg9[%c0_3, %c0_4, %c0_5], %2 {strides = array<i32>} : memref<18x18x4xf32, #tpu.memory_space<vmem>>, vector<18x18x4xf32>,
    %c1 = arith.constant 1 : index
    %c1_6 = arith.constant 1 : index
    %c0_7 = arith.constant 0 : index
    %4 = vector.load %arg9[%c1, %c1_6, %c0_7] : memref<18x18x4xf32, #tpu.memory_space<vmem>>, vector<16x16x4xf32>
    tpu.vector_store %arg9[%c1, %c1_6, %c0_7], %1 {strides = array<i32>} : memref<18x18x4xf32, #tpu.memory_space<vmem>>, vector<16x16x4xf32>,
    %c0_8 = arith.constant 0 : index
    %c0_9 = arith.constant 0 : index
    %c0_10 = arith.constant 0 : index
    %5 = vector.load %arg9[%c0_8, %c0_9, %c0_10] : memref<18x18x4xf32, #tpu.memory_space<vmem>>, vector<16x16x4xf32>
    %6 = vector.shape_cast %5 : vector<16x16x4xf32> to vector<256x4xf32>
    %c0_11 = arith.constant 0 : index
    %c0_12 = arith.constant 0 : index
    %7 = vector.load %arg10[%c0_11, %c0_12] : memref<256x36xf32, #tpu.memory_space<vmem>>, vector<256x4xf32>
    tpu.vector_store %arg10[%c0_11, %c0_12], %6 {strides = array<i32>} : memref<256x36xf32, #tpu.memory_space<vmem>>, vector<256x4xf32>,
    %c0_13 = arith.constant 0 : index
    %c1_14 = arith.constant 1 : index
    %c0_15 = arith.constant 0 : index
    %8 = vector.load %arg9[%c0_13, %c1_14, %c0_15] : memref<18x18x4xf32, #tpu.memory_space<vmem>>, vector<16x16x4xf32>
    %9 = vector.shape_cast %8 : vector<16x16x4xf32> to vector<256x4xf32>
    %c0_16 = arith.constant 0 : index
    %c4 = arith.constant 4 : index
    %10 = vector.load %arg10[%c0_16, %c4] : memref<256x36xf32, #tpu.memory_space<vmem>>, vector<256x4xf32>
    tpu.vector_store %arg10[%c0_16, %c4], %9 {strides = array<i32>} : memref<256x36xf32, #tpu.memory_space<vmem>>, vector<256x4xf32>,
    %c0_17 = arith.constant 0 : index
    %c2 = arith.constant 2 : index
    %c0_18 = arith.constant 0 : index
    %11 = vector.load %arg9[%c0_17, %c2, %c0_18] : memref<18x18x4xf32, #tpu.memory_space<vmem>>, vector<16x16x4xf32>
    %12 = vector.shape_cast %11 : vector<16x16x4xf32> to vector<256x4xf32>
    %c0_19 = arith.constant 0 : index
    %c8 = arith.constant 8 : index
    %13 = vector.load %arg10[%c0_19, %c8] : memref<256x36xf32, #tpu.memory_space<vmem>>, vector<256x4xf32>
    tpu.vector_store %arg10[%c0_19, %c8], %12 {strides = array<i32>} : memref<256x36xf32, #tpu.memory_space<vmem>>, vector<256x4xf32>,
    %c1_20 = arith.constant 1 : index
    %c0_21 = arith.constant 0 : index
    %c0_22 = arith.constant 0 : index
    %14 = vector.load %arg9[%c1_20, %c0_21, %c0_22] : memref<18x18x4xf32, #tpu.memory_space<vmem>>, vector<16x16x4xf32>
    %15 = vector.shape_cast %14 : vector<16x16x4xf32> to vector<256x4xf32>
    %c0_23 = arith.constant 0 : index
    %c12 = arith.constant 12 : index
    %16 = vector.load %arg10[%c0_23, %c12] : memref<256x36xf32, #tpu.memory_space<vmem>>, vector<256x4xf32>
    tpu.vector_store %arg10[%c0_23, %c12], %15 {strides = array<i32>} : memref<256x36xf32, #tpu.memory_space<vmem>>, vector<256x4xf32>,
    %c1_24 = arith.constant 1 : index
    %c1_25 = arith.constant 1 : index
    %c0_26 = arith.constant 0 : index
    %17 = vector.load %arg9[%c1_24, %c1_25, %c0_26] : memref<18x18x4xf32, #tpu.memory_space<vmem>>, vector<16x16x4xf32>
    %18 = vector.shape_cast %17 : vector<16x16x4xf32> to vector<256x4xf32>
    %c0_27 = arith.constant 0 : index
    %c16 = arith.constant 16 : index
    %19 = vector.load %arg10[%c0_27, %c16] : memref<256x36xf32, #tpu.memory_space<vmem>>, vector<256x4xf32>
    tpu.vector_store %arg10[%c0_27, %c16], %18 {strides = array<i32>} : memref<256x36xf32, #tpu.memory_space<vmem>>, vector<256x4xf32>,
    %c1_28 = arith.constant 1 : index
    %c2_29 = arith.constant 2 : index
    %c0_30 = arith.constant 0 : index
    %20 = vector.load %arg9[%c1_28, %c2_29, %c0_30] : memref<18x18x4xf32, #tpu.memory_space<vmem>>, vector<16x16x4xf32>
    %21 = vector.shape_cast %20 : vector<16x16x4xf32> to vector<256x4xf32>
    %c0_31 = arith.constant 0 : index
    %c20 = arith.constant 20 : index
    %22 = vector.load %arg10[%c0_31, %c20] : memref<256x36xf32, #tpu.memory_space<vmem>>, vector<256x4xf32>
    tpu.vector_store %arg10[%c0_31, %c20], %21 {strides = array<i32>} : memref<256x36xf32, #tpu.memory_space<vmem>>, vector<256x4xf32>,
    %c2_32 = arith.constant 2 : index
    %c0_33 = arith.constant 0 : index
    %c0_34 = arith.constant 0 : index
    %23 = vector.load %arg9[%c2_32, %c0_33, %c0_34] : memref<18x18x4xf32, #tpu.memory_space<vmem>>, vector<16x16x4xf32>
    %24 = vector.shape_cast %23 : vector<16x16x4xf32> to vector<256x4xf32>
    %c0_35 = arith.constant 0 : index
    %c24 = arith.constant 24 : index
    %25 = vector.load %arg10[%c0_35, %c24] : memref<256x36xf32, #tpu.memory_space<vmem>>, vector<256x4xf32>
    tpu.vector_store %arg10[%c0_35, %c24], %24 {strides = array<i32>} : memref<256x36xf32, #tpu.memory_space<vmem>>, vector<256x4xf32>,
    %c2_36 = arith.constant 2 : index
    %c1_37 = arith.constant 1 : index
    %c0_38 = arith.constant 0 : index
    %26 = vector.load %arg9[%c2_36, %c1_37, %c0_38] : memref<18x18x4xf32, #tpu.memory_space<vmem>>, vector<16x16x4xf32>
    %27 = vector.shape_cast %26 : vector<16x16x4xf32> to vector<256x4xf32>
    %c0_39 = arith.constant 0 : index
    %c28 = arith.constant 28 : index
    %28 = vector.load %arg10[%c0_39, %c28] : memref<256x36xf32, #tpu.memory_space<vmem>>, vector<256x4xf32>
    tpu.vector_store %arg10[%c0_39, %c28], %27 {strides = array<i32>} : memref<256x36xf32, #tpu.memory_space<vmem>>, vector<256x4xf32>,
    %c2_40 = arith.constant 2 : index
    %c2_41 = arith.constant 2 : index
    %c0_42 = arith.constant 0 : index
    %29 = vector.load %arg9[%c2_40, %c2_41, %c0_42] : memref<18x18x4xf32, #tpu.memory_space<vmem>>, vector<16x16x4xf32>
    %30 = vector.shape_cast %29 : vector<16x16x4xf32> to vector<256x4xf32>
    %c0_43 = arith.constant 0 : index
    %c32 = arith.constant 32 : index
    %31 = vector.load %arg10[%c0_43, %c32] : memref<256x36xf32, #tpu.memory_space<vmem>>, vector<256x4xf32>
    tpu.vector_store %arg10[%c0_43, %c32], %30 {strides = array<i32>} : memref<256x36xf32, #tpu.memory_space<vmem>>, vector<256x4xf32>,
    %c0_44 = arith.constant 0 : index
    %c0_45 = arith.constant 0 : index
    %32 = vector.load %arg10[%c0_44, %c0_45] : memref<256x36xf32, #tpu.memory_space<vmem>>, vector<256x36xf32>
    %c0_46 = arith.constant 0 : index
    %c0_47 = arith.constant 0 : index
    %33 = vector.load %arg2[%c0_46, %c0_47] : memref<36x8xf32, #tpu.memory_space<vmem>>, vector<36x8xf32>
    %cst_48 = arith.constant dense<0.000000e+00> : vector<256x8xf32>
    %34 = tpu.matmul %32, %33, %cst_48 {dimension_numbers = #tpu.dot_dimension_numbers<[1], [0], [0], [1], [0, 0, 1, 1], [], []>} : vector<256x36xf32>, vector<36x8xf32>, vector<256x8xf32> -> vector<256x8xf32>
    %c0_49 = arith.constant 0 : index
    %c0_50 = arith.constant 0 : index
    %35 = vector.load %arg3[%c0_49, %c0_50] : memref<1x8xf32, #tpu.memory_space<vmem>>, vector<1x8xf32>
    %36 = vector.broadcast %35 : vector<1x8xf32> to vector<256x8xf32>
    %37 = arith.addf %34, %36 : vector<256x8xf32>
    %cst_51 = arith.constant 0.000000e+00 : f32
    %38 = vector.broadcast %cst_51 : f32 to vector<256x8xf32>
    %39 = arith.maximumf %37, %38 : vector<256x8xf32>
    %40 = vector.shape_cast %39 : vector<256x8xf32> to vector<16x16x8xf32>
    %41 = vector.shape_cast %40 : vector<16x16x8xf32> to vector<8x2x16x8xf32>
    %cst_52 = arith.constant dense<0xFF800000> : vector<8x16x8xf32>
    %42 = vector.multi_reduction <maximumf>, %41, %cst_52 [1] : vector<8x2x16x8xf32> to vector<8x16x8xf32>
    %43 = vector.shape_cast %42 : vector<8x16x8xf32> to vector<8x8x2x8xf32>
    %cst_53 = arith.constant dense<0xFF800000> : vector<8x8x8xf32>
    %44 = vector.multi_reduction <maximumf>, %43, %cst_53 [2] : vector<8x8x2x8xf32> to vector<8x8x8xf32>
    %cst_54 = arith.constant 0.000000e+00 : f32
    %45 = vector.broadcast %cst_54 : f32 to vector<10x10x8xf32>
    %c0_55 = arith.constant 0 : index
    %c0_56 = arith.constant 0 : index
    %c0_57 = arith.constant 0 : index
    %46 = vector.load %arg11[%c0_55, %c0_56, %c0_57] : memref<10x10x8xf32, #tpu.memory_space<vmem>>, vector<10x10x8xf32>
    tpu.vector_store %arg11[%c0_55, %c0_56, %c0_57], %45 {strides = array<i32>} : memref<10x10x8xf32, #tpu.memory_space<vmem>>, vector<10x10x8xf32>,
    %c1_58 = arith.constant 1 : index
    %c1_59 = arith.constant 1 : index
    %c0_60 = arith.constant 0 : index
    %47 = vector.load %arg11[%c1_58, %c1_59, %c0_60] : memref<10x10x8xf32, #tpu.memory_space<vmem>>, vector<8x8x8xf32>
    tpu.vector_store %arg11[%c1_58, %c1_59, %c0_60], %44 {strides = array<i32>} : memref<10x10x8xf32, #tpu.memory_space<vmem>>, vector<8x8x8xf32>,
    %c0_61 = arith.constant 0 : index
    %c0_62 = arith.constant 0 : index
    %c0_63 = arith.constant 0 : index
    %48 = vector.load %arg11[%c0_61, %c0_62, %c0_63] : memref<10x10x8xf32, #tpu.memory_space<vmem>>, vector<8x8x8xf32>
    %49 = vector.shape_cast %48 : vector<8x8x8xf32> to vector<64x8xf32>
    %c0_64 = arith.constant 0 : index
    %c0_65 = arith.constant 0 : index
    %50 = vector.load %arg12[%c0_64, %c0_65] : memref<64x72xf32, #tpu.memory_space<vmem>>, vector<64x8xf32>
    tpu.vector_store %arg12[%c0_64, %c0_65], %49 {strides = array<i32>} : memref<64x72xf32, #tpu.memory_space<vmem>>, vector<64x8xf32>,
    %c0_66 = arith.constant 0 : index
    %c1_67 = arith.constant 1 : index
    %c0_68 = arith.constant 0 : index
    %51 = vector.load %arg11[%c0_66, %c1_67, %c0_68] : memref<10x10x8xf32, #tpu.memory_space<vmem>>, vector<8x8x8xf32>
    %52 = vector.shape_cast %51 : vector<8x8x8xf32> to vector<64x8xf32>
    %c0_69 = arith.constant 0 : index
    %c8_70 = arith.constant 8 : index
    %53 = vector.load %arg12[%c0_69, %c8_70] : memref<64x72xf32, #tpu.memory_space<vmem>>, vector<64x8xf32>
    tpu.vector_store %arg12[%c0_69, %c8_70], %52 {strides = array<i32>} : memref<64x72xf32, #tpu.memory_space<vmem>>, vector<64x8xf32>,
    %c0_71 = arith.constant 0 : index
    %c2_72 = arith.constant 2 : index
    %c0_73 = arith.constant 0 : index
    %54 = vector.load %arg11[%c0_71, %c2_72, %c0_73] : memref<10x10x8xf32, #tpu.memory_space<vmem>>, vector<8x8x8xf32>
    %55 = vector.shape_cast %54 : vector<8x8x8xf32> to vector<64x8xf32>
    %c0_74 = arith.constant 0 : index
    %c16_75 = arith.constant 16 : index
    %56 = vector.load %arg12[%c0_74, %c16_75] : memref<64x72xf32, #tpu.memory_space<vmem>>, vector<64x8xf32>
    tpu.vector_store %arg12[%c0_74, %c16_75], %55 {strides = array<i32>} : memref<64x72xf32, #tpu.memory_space<vmem>>, vector<64x8xf32>,
    %c1_76 = arith.constant 1 : index
    %c0_77 = arith.constant 0 : index
    %c0_78 = arith.constant 0 : index
    %57 = vector.load %arg11[%c1_76, %c0_77, %c0_78] : memref<10x10x8xf32, #tpu.memory_space<vmem>>, vector<8x8x8xf32>
    %58 = vector.shape_cast %57 : vector<8x8x8xf32> to vector<64x8xf32>
    %c0_79 = arith.constant 0 : index
    %c24_80 = arith.constant 24 : index
    %59 = vector.load %arg12[%c0_79, %c24_80] : memref<64x72xf32, #tpu.memory_space<vmem>>, vector<64x8xf32>
    tpu.vector_store %arg12[%c0_79, %c24_80], %58 {strides = array<i32>} : memref<64x72xf32, #tpu.memory_space<vmem>>, vector<64x8xf32>,
    %c1_81 = arith.constant 1 : index
    %c1_82 = arith.constant 1 : index
    %c0_83 = arith.constant 0 : index
    %60 = vector.load %arg11[%c1_81, %c1_82, %c0_83] : memref<10x10x8xf32, #tpu.memory_space<vmem>>, vector<8x8x8xf32>
    %61 = vector.shape_cast %60 : vector<8x8x8xf32> to vector<64x8xf32>
    %c0_84 = arith.constant 0 : index
    %c32_85 = arith.constant 32 : index
    %62 = vector.load %arg12[%c0_84, %c32_85] : memref<64x72xf32, #tpu.memory_space<vmem>>, vector<64x8xf32>
    tpu.vector_store %arg12[%c0_84, %c32_85], %61 {strides = array<i32>} : memref<64x72xf32, #tpu.memory_space<vmem>>, vector<64x8xf32>,
    %c1_86 = arith.constant 1 : index
    %c2_87 = arith.constant 2 : index
    %c0_88 = arith.constant 0 : index
    %63 = vector.load %arg11[%c1_86, %c2_87, %c0_88] : memref<10x10x8xf32, #tpu.memory_space<vmem>>, vector<8x8x8xf32>
    %64 = vector.shape_cast %63 : vector<8x8x8xf32> to vector<64x8xf32>
    %c0_89 = arith.constant 0 : index
    %c40 = arith.constant 40 : index
    %65 = vector.load %arg12[%c0_89, %c40] : memref<64x72xf32, #tpu.memory_space<vmem>>, vector<64x8xf32>
    tpu.vector_store %arg12[%c0_89, %c40], %64 {strides = array<i32>} : memref<64x72xf32, #tpu.memory_space<vmem>>, vector<64x8xf32>,
    %c2_90 = arith.constant 2 : index
    %c0_91 = arith.constant 0 : index
    %c0_92 = arith.constant 0 : index
    %66 = vector.load %arg11[%c2_90, %c0_91, %c0_92] : memref<10x10x8xf32, #tpu.memory_space<vmem>>, vector<8x8x8xf32>
    %67 = vector.shape_cast %66 : vector<8x8x8xf32> to vector<64x8xf32>
    %c0_93 = arith.constant 0 : index
    %c48 = arith.constant 48 : index
    %68 = vector.load %arg12[%c0_93, %c48] : memref<64x72xf32, #tpu.memory_space<vmem>>, vector<64x8xf32>
    tpu.vector_store %arg12[%c0_93, %c48], %67 {strides = array<i32>} : memref<64x72xf32, #tpu.memory_space<vmem>>, vector<64x8xf32>,
    %c2_94 = arith.constant 2 : index
    %c1_95 = arith.constant 1 : index
    %c0_96 = arith.constant 0 : index
    %69 = vector.load %arg11[%c2_94, %c1_95, %c0_96] : memref<10x10x8xf32, #tpu.memory_space<vmem>>, vector<8x8x8xf32>
    %70 = vector.shape_cast %69 : vector<8x8x8xf32> to vector<64x8xf32>
    %c0_97 = arith.constant 0 : index
    %c56 = arith.constant 56 : index
    %71 = vector.load %arg12[%c0_97, %c56] : memref<64x72xf32, #tpu.memory_space<vmem>>, vector<64x8xf32>
    tpu.vector_store %arg12[%c0_97, %c56], %70 {strides = array<i32>} : memref<64x72xf32, #tpu.memory_space<vmem>>, vector<64x8xf32>,
    %c2_98 = arith.constant 2 : index
    %c2_99 = arith.constant 2 : index
    %c0_100 = arith.constant 0 : index
    %72 = vector.load %arg11[%c2_98, %c2_99, %c0_100] : memref<10x10x8xf32, #tpu.memory_space<vmem>>, vector<8x8x8xf32>
    %73 = vector.shape_cast %72 : vector<8x8x8xf32> to vector<64x8xf32>
    %c0_101 = arith.constant 0 : index
    %c64 = arith.constant 64 : index
    %74 = vector.load %arg12[%c0_101, %c64] : memref<64x72xf32, #tpu.memory_space<vmem>>, vector<64x8xf32>
    tpu.vector_store %arg12[%c0_101, %c64], %73 {strides = array<i32>} : memref<64x72xf32, #tpu.memory_space<vmem>>, vector<64x8xf32>,
    %c0_102 = arith.constant 0 : index
    %c0_103 = arith.constant 0 : index
    %75 = vector.load %arg12[%c0_102, %c0_103] : memref<64x72xf32, #tpu.memory_space<vmem>>, vector<64x72xf32>
    %c0_104 = arith.constant 0 : index
    %c0_105 = arith.constant 0 : index
    %76 = vector.load %arg4[%c0_104, %c0_105] : memref<72x16xf32, #tpu.memory_space<vmem>>, vector<72x16xf32>
    %cst_106 = arith.constant dense<0.000000e+00> : vector<64x16xf32>
    %77 = tpu.matmul %75, %76, %cst_106 {dimension_numbers = #tpu.dot_dimension_numbers<[1], [0], [0], [1], [0, 0, 1, 1], [], []>} : vector<64x72xf32>, vector<72x16xf32>, vector<64x16xf32> -> vector<64x16xf32>
    %c0_107 = arith.constant 0 : index
    %c0_108 = arith.constant 0 : index
    %78 = vector.load %arg5[%c0_107, %c0_108] : memref<1x16xf32, #tpu.memory_space<vmem>>, vector<1x16xf32>
    %79 = vector.broadcast %78 : vector<1x16xf32> to vector<64x16xf32>
    %80 = arith.addf %77, %79 : vector<64x16xf32>
    %cst_109 = arith.constant 0.000000e+00 : f32
    %81 = vector.broadcast %cst_109 : f32 to vector<64x16xf32>
    %82 = arith.maximumf %80, %81 : vector<64x16xf32>
    %83 = vector.shape_cast %82 : vector<64x16xf32> to vector<8x8x16xf32>
    %84 = vector.shape_cast %83 : vector<8x8x16xf32> to vector<4x2x8x16xf32>
    %cst_110 = arith.constant dense<0xFF800000> : vector<4x8x16xf32>
    %85 = vector.multi_reduction <maximumf>, %84, %cst_110 [1] : vector<4x2x8x16xf32> to vector<4x8x16xf32>
    %86 = vector.shape_cast %85 : vector<4x8x16xf32> to vector<4x4x2x16xf32>
    %cst_111 = arith.constant dense<0xFF800000> : vector<4x4x16xf32>
    %87 = vector.multi_reduction <maximumf>, %86, %cst_111 [2] : vector<4x4x2x16xf32> to vector<4x4x16xf32>
    %88 = vector.shape_cast %87 : vector<4x4x16xf32> to vector<16x16xf32>
    %89 = vector.extract_strided_slice %88 {offsets = [0, 0], sizes = [1, 16], strides = [1, 1]} : vector<16x16xf32> to vector<1x16xf32>
    %c0_112 = arith.constant 0 : index
    %c0_113 = arith.constant 0 : index
    %90 = vector.load %arg13[%c0_112, %c0_113] : memref<1x256xf32, #tpu.memory_space<vmem>>, vector<1x16xf32>
    tpu.vector_store %arg13[%c0_112, %c0_113], %89 {strides = array<i32>} : memref<1x256xf32, #tpu.memory_space<vmem>>, vector<1x16xf32>,
    %91 = vector.extract_strided_slice %88 {offsets = [1, 0], sizes = [1, 16], strides = [1, 1]} : vector<16x16xf32> to vector<1x16xf32>
    %c0_114 = arith.constant 0 : index
    %c16_115 = arith.constant 16 : index
    %92 = vector.load %arg13[%c0_114, %c16_115] : memref<1x256xf32, #tpu.memory_space<vmem>>, vector<1x16xf32>
    tpu.vector_store %arg13[%c0_114, %c16_115], %91 {strides = array<i32>} : memref<1x256xf32, #tpu.memory_space<vmem>>, vector<1x16xf32>,
    %93 = vector.extract_strided_slice %88 {offsets = [2, 0], sizes = [1, 16], strides = [1, 1]} : vector<16x16xf32> to vector<1x16xf32>
    %c0_116 = arith.constant 0 : index
    %c32_117 = arith.constant 32 : index
    %94 = vector.load %arg13[%c0_116, %c32_117] : memref<1x256xf32, #tpu.memory_space<vmem>>, vector<1x16xf32>
    tpu.vector_store %arg13[%c0_116, %c32_117], %93 {strides = array<i32>} : memref<1x256xf32, #tpu.memory_space<vmem>>, vector<1x16xf32>,
    %95 = vector.extract_strided_slice %88 {offsets = [3, 0], sizes = [1, 16], strides = [1, 1]} : vector<16x16xf32> to vector<1x16xf32>
    %c0_118 = arith.constant 0 : index
    %c48_119 = arith.constant 48 : index
    %96 = vector.load %arg13[%c0_118, %c48_119] : memref<1x256xf32, #tpu.memory_space<vmem>>, vector<1x16xf32>
    tpu.vector_store %arg13[%c0_118, %c48_119], %95 {strides = array<i32>} : memref<1x256xf32, #tpu.memory_space<vmem>>, vector<1x16xf32>,
    %97 = vector.extract_strided_slice %88 {offsets = [4, 0], sizes = [1, 16], strides = [1, 1]} : vector<16x16xf32> to vector<1x16xf32>
    %c0_120 = arith.constant 0 : index
    %c64_121 = arith.constant 64 : index
    %98 = vector.load %arg13[%c0_120, %c64_121] : memref<1x256xf32, #tpu.memory_space<vmem>>, vector<1x16xf32>
    tpu.vector_store %arg13[%c0_120, %c64_121], %97 {strides = array<i32>} : memref<1x256xf32, #tpu.memory_space<vmem>>, vector<1x16xf32>,
    %99 = vector.extract_strided_slice %88 {offsets = [5, 0], sizes = [1, 16], strides = [1, 1]} : vector<16x16xf32> to vector<1x16xf32>
    %c0_122 = arith.constant 0 : index
    %c80 = arith.constant 80 : index
    %100 = vector.load %arg13[%c0_122, %c80] : memref<1x256xf32, #tpu.memory_space<vmem>>, vector<1x16xf32>
    tpu.vector_store %arg13[%c0_122, %c80], %99 {strides = array<i32>} : memref<1x256xf32, #tpu.memory_space<vmem>>, vector<1x16xf32>,
    %101 = vector.extract_strided_slice %88 {offsets = [6, 0], sizes = [1, 16], strides = [1, 1]} : vector<16x16xf32> to vector<1x16xf32>
    %c0_123 = arith.constant 0 : index
    %c96 = arith.constant 96 : index
    %102 = vector.load %arg13[%c0_123, %c96] : memref<1x256xf32, #tpu.memory_space<vmem>>, vector<1x16xf32>
    tpu.vector_store %arg13[%c0_123, %c96], %101 {strides = array<i32>} : memref<1x256xf32, #tpu.memory_space<vmem>>, vector<1x16xf32>,
    %103 = vector.extract_strided_slice %88 {offsets = [7, 0], sizes = [1, 16], strides = [1, 1]} : vector<16x16xf32> to vector<1x16xf32>
    %c0_124 = arith.constant 0 : index
    %c112 = arith.constant 112 : index
    %104 = vector.load %arg13[%c0_124, %c112] : memref<1x256xf32, #tpu.memory_space<vmem>>, vector<1x16xf32>
    tpu.vector_store %arg13[%c0_124, %c112], %103 {strides = array<i32>} : memref<1x256xf32, #tpu.memory_space<vmem>>, vector<1x16xf32>,
    %105 = vector.extract_strided_slice %88 {offsets = [8, 0], sizes = [1, 16], strides = [1, 1]} : vector<16x16xf32> to vector<1x16xf32>
    %c0_125 = arith.constant 0 : index
    %c128 = arith.constant 128 : index
    %106 = vector.load %arg13[%c0_125, %c128] : memref<1x256xf32, #tpu.memory_space<vmem>>, vector<1x16xf32>
    tpu.vector_store %arg13[%c0_125, %c128], %105 {strides = array<i32>} : memref<1x256xf32, #tpu.memory_space<vmem>>, vector<1x16xf32>,
    %107 = vector.extract_strided_slice %88 {offsets = [9, 0], sizes = [1, 16], strides = [1, 1]} : vector<16x16xf32> to vector<1x16xf32>
    %c0_126 = arith.constant 0 : index
    %c144 = arith.constant 144 : index
    %108 = vector.load %arg13[%c0_126, %c144] : memref<1x256xf32, #tpu.memory_space<vmem>>, vector<1x16xf32>
    tpu.vector_store %arg13[%c0_126, %c144], %107 {strides = array<i32>} : memref<1x256xf32, #tpu.memory_space<vmem>>, vector<1x16xf32>,
    %109 = vector.extract_strided_slice %88 {offsets = [10, 0], sizes = [1, 16], strides = [1, 1]} : vector<16x16xf32> to vector<1x16xf32>
    %c0_127 = arith.constant 0 : index
    %c160 = arith.constant 160 : index
    %110 = vector.load %arg13[%c0_127, %c160] : memref<1x256xf32, #tpu.memory_space<vmem>>, vector<1x16xf32>
    tpu.vector_store %arg13[%c0_127, %c160], %109 {strides = array<i32>} : memref<1x256xf32, #tpu.memory_space<vmem>>, vector<1x16xf32>,
    %111 = vector.extract_strided_slice %88 {offsets = [11, 0], sizes = [1, 16], strides = [1, 1]} : vector<16x16xf32> to vector<1x16xf32>
    %c0_128 = arith.constant 0 : index
    %c176 = arith.constant 176 : index
    %112 = vector.load %arg13[%c0_128, %c176] : memref<1x256xf32, #tpu.memory_space<vmem>>, vector<1x16xf32>
    tpu.vector_store %arg13[%c0_128, %c176], %111 {strides = array<i32>} : memref<1x256xf32, #tpu.memory_space<vmem>>, vector<1x16xf32>,
    %113 = vector.extract_strided_slice %88 {offsets = [12, 0], sizes = [1, 16], strides = [1, 1]} : vector<16x16xf32> to vector<1x16xf32>
    %c0_129 = arith.constant 0 : index
    %c192 = arith.constant 192 : index
    %114 = vector.load %arg13[%c0_129, %c192] : memref<1x256xf32, #tpu.memory_space<vmem>>, vector<1x16xf32>
    tpu.vector_store %arg13[%c0_129, %c192], %113 {strides = array<i32>} : memref<1x256xf32, #tpu.memory_space<vmem>>, vector<1x16xf32>,
    %115 = vector.extract_strided_slice %88 {offsets = [13, 0], sizes = [1, 16], strides = [1, 1]} : vector<16x16xf32> to vector<1x16xf32>
    %c0_130 = arith.constant 0 : index
    %c208 = arith.constant 208 : index
    %116 = vector.load %arg13[%c0_130, %c208] : memref<1x256xf32, #tpu.memory_space<vmem>>, vector<1x16xf32>
    tpu.vector_store %arg13[%c0_130, %c208], %115 {strides = array<i32>} : memref<1x256xf32, #tpu.memory_space<vmem>>, vector<1x16xf32>,
    %117 = vector.extract_strided_slice %88 {offsets = [14, 0], sizes = [1, 16], strides = [1, 1]} : vector<16x16xf32> to vector<1x16xf32>
    %c0_131 = arith.constant 0 : index
    %c224 = arith.constant 224 : index
    %118 = vector.load %arg13[%c0_131, %c224] : memref<1x256xf32, #tpu.memory_space<vmem>>, vector<1x16xf32>
    tpu.vector_store %arg13[%c0_131, %c224], %117 {strides = array<i32>} : memref<1x256xf32, #tpu.memory_space<vmem>>, vector<1x16xf32>,
    %119 = vector.extract_strided_slice %88 {offsets = [15, 0], sizes = [1, 16], strides = [1, 1]} : vector<16x16xf32> to vector<1x16xf32>
    %c0_132 = arith.constant 0 : index
    %c240 = arith.constant 240 : index
    %120 = vector.load %arg13[%c0_132, %c240] : memref<1x256xf32, #tpu.memory_space<vmem>>, vector<1x16xf32>
    tpu.vector_store %arg13[%c0_132, %c240], %119 {strides = array<i32>} : memref<1x256xf32, #tpu.memory_space<vmem>>, vector<1x16xf32>,
    %c0_133 = arith.constant 0 : index
    %c0_134 = arith.constant 0 : index
    %121 = vector.load %arg13[%c0_133, %c0_134] : memref<1x256xf32, #tpu.memory_space<vmem>>, vector<1x256xf32>
    %c0_135 = arith.constant 0 : index
    %c0_136 = arith.constant 0 : index
    %122 = vector.load %arg6[%c0_135, %c0_136] : memref<256x10xf32, #tpu.memory_space<vmem>>, vector<256x10xf32>
    %cst_137 = arith.constant dense<0.000000e+00> : vector<1x10xf32>
    %123 = tpu.matmul %121, %122, %cst_137 {dimension_numbers = #tpu.dot_dimension_numbers<[1], [0], [0], [1], [0, 0, 1, 1], [], []>} : vector<1x256xf32>, vector<256x10xf32>, vector<1x10xf32> -> vector<1x10xf32>
    %c0_138 = arith.constant 0 : index
    %c0_139 = arith.constant 0 : index
    %124 = vector.load %arg7[%c0_138, %c0_139] : memref<1x10xf32, #tpu.memory_space<vmem>>, vector<1x10xf32>
    %125 = arith.addf %123, %124 : vector<1x10xf32>
    %c0_140 = arith.constant 0 : index
    %c0_141 = arith.constant 0 : index
    %c0_142 = arith.constant 0 : index
    %126 = vector.load %arg8[%c0_140, %c0_141, %c0_142] : memref<1x1x10xf32, #tpu.memory_space<vmem>>, vector<1x1x10xf32>
    %127 = vector.shape_cast %126 : vector<1x1x10xf32> to vector<1x10xf32>
    %128 = vector.shape_cast %125 : vector<1x10xf32> to vector<1x1x10xf32>
    tpu.vector_store %arg8[%c0_140, %c0_141, %c0_142], %128 {strides = array<i32>} : memref<1x1x10xf32, #tpu.memory_space<vmem>>, vector<1x1x10xf32>,
    return
  }
  func.func @transform_0(%arg0: i32) -> (i32, i32, i32, i32) {
    %c0_i32 = arith.constant 0 : i32
    %c0_i32_0 = arith.constant 0 : i32
    %c0_i32_1 = arith.constant 0 : i32
    %c0_i32_2 = arith.constant 0 : i32
    return %arg0, %c0_i32, %c0_i32_0, %c0_i32_1 : i32, i32, i32, i32
  }
  func.func @transform_1(%arg0: i32) -> (i32, i32) {
    %c0_i32 = arith.constant 0 : i32
    %c0_i32_0 = arith.constant 0 : i32
    %c0_i32_1 = arith.constant 0 : i32
    return %c0_i32, %c0_i32_0 : i32, i32
  }
  func.func @transform_2(%arg0: i32) -> (i32, i32) {
    %c0_i32 = arith.constant 0 : i32
    %c0_i32_0 = arith.constant 0 : i32
    %c0_i32_1 = arith.constant 0 : i32
    return %c0_i32, %c0_i32_0 : i32, i32
  }
  func.func @transform_3(%arg0: i32) -> (i32, i32) {
    %c0_i32 = arith.constant 0 : i32
    %c0_i32_0 = arith.constant 0 : i32
    %c0_i32_1 = arith.constant 0 : i32
    return %c0_i32, %c0_i32_0 : i32, i32
  }
  func.func @transform_4(%arg0: i32) -> (i32, i32) {
    %c0_i32 = arith.constant 0 : i32
    %c0_i32_0 = arith.constant 0 : i32
    %c0_i32_1 = arith.constant 0 : i32
    return %c0_i32, %c0_i32_0 : i32, i32
  }
  func.func @transform_5(%arg0: i32) -> (i32, i32) {
    %c0_i32 = arith.constant 0 : i32
    %c0_i32_0 = arith.constant 0 : i32
    %c0_i32_1 = arith.constant 0 : i32
    return %c0_i32, %c0_i32_0 : i32, i32
  }
  func.func @transform_6(%arg0: i32) -> (i32, i32) {
    %c0_i32 = arith.constant 0 : i32
    %c0_i32_0 = arith.constant 0 : i32
    %c0_i32_1 = arith.constant 0 : i32
    return %c0_i32, %c0_i32_0 : i32, i32
  }
  func.func @transform_7(%arg0: i32) -> (i32, i32, i32) {
    %c0_i32 = arith.constant 0 : i32
    %c0_i32_0 = arith.constant 0 : i32
    %c0_i32_1 = arith.constant 0 : i32
    return %arg0, %c0_i32, %c0_i32_0 : i32, i32, i32
  }
}

</mosaic_0001>

<bundles_post_ra>
// kernel: self_expanding_cnn_forward.1
= control target key start
LH: loop header
LB: loop body
LE: loop exit
PB: predicated region body
PF: predicated region fallthrough
CT: control target
= control target key end

     0   :  { %12 = vsyncpa [#allocation8], 0  ;;  %s6291_s0 = inlined_call_operand.vmem [shape: f32[2,16,16,4], index: 0, kind: input, shape index: {}]   ;;  %s6292_s1 = inlined_call_operand.vmem [shape: f32[36,8], index: 1, kind: input, shape index: {}]   ;;  %s6293_s2 = inlined_call_operand.vmem [shape: f32[1,8], index: 2, kind: input, shape index: {}]   ;;  %s6294_s3 = inlined_call_operand.vmem [shape: f32[72,16], index: 3, kind: input, shape index: {}]   ;;  %s6295_s4 = inlined_call_operand.vmem [shape: f32[1,16], index: 4, kind: input, shape index: {}]   ;;  %s6296_s5 = inlined_call_operand.vmem [shape: f32[256,10], index: 5, kind: input, shape index: {}]   ;;  %s6297_s6 = inlined_call_operand.vmem [shape: f32[1,10], index: 6, kind: input, shape index: {}]   ;;  %s6298_s7 = inlined_call_operand.hbm [shape: f32[2,1,10], index: 7, kind: output, shape index: {}]  }
   0x1   :  { %14 = vsyncpa [#allocation8 + $0x1], 0  ;;  %s4209_s24 = smov 0   ;;  %s4211_s25 = smov 0  }
   0x2   :  { %s4213_s26 = smov 0   ;;  %s4215_s27 = smov 0  }
   0x3 LB: > { %s4230_s28 = sadd.s32 4294967295, %s4151_s27   ;;  %s3971_s29 = sadd.s32 4294967294, %s4151_s27   ;;  %s4151_s27 = sphi %s4215_s27, %s6355_s27   ;;  %s4147_s26 = sphi %s4213_s26, %s6354_s26   ;;  %s4143_s25 = sphi %s4211_s25, %s6353_s25   ;;  %s4139_s24 = sphi %s4209_s24, %s6352_s24  }
   0x4   : > { %s4234_s30 = sadd.s32 1, %s4151_s27   ;;  %s179_s8 = sadd.s32 1, %s4147_s26 }
   0x5   : > { %s176_s9 = ssub.s32 %s4151_s27, %s4234_s30  ;;  %p189_p0 = scmp.ne.s32.totalorder %s4147_s26, %s4143_s25 }
   0x6   : > { %p177_p1 = scmp.eq.s32.totalorder %s176_s9, 0  ;;  %p190_p2 = scmp.eq.s32.totalorder %s4230_s28, 1 }
   0x7   : > { %p195_p3 = scmp.ne.s32.totalorder %s4143_s25, %s4139_s24  ;;  %p196_p4 = scmp.eq.s32.totalorder %s3971_s29, 1 }
   0x8   : > { %s4245_s10 = scalar_select %p177_p1, %s4147_s26, %s179_s8  }
   0x9   : > { %p4247_p5 = por %p190_p2, %p189_p0  ;;  %p4251_p6 = por %p196_p4, %p195_p3 }
   0xa   : > { %p3974_p7 = scmp.ge.s32.totalorder %s4151_s27, 1  ;;  %p240_p8 = scmp.lt.s32.totalorder %s4151_s27, 3 }
   0xc   : > { %p241_p9 = pnand %p3974_p7, %p240_p8 }
   0xe   : > { %244 = sbr.rel (%p241_p9) target bundleno = 1615 (0x64f), region = 48 }
  0x13   : > { %vm308_vm0 = vcmask 31744   ;;  %v6299_v0 = vmov 0.0   ;;  %s4154_s13 = smov 4   ;;  %p271_p10 = scmp.lt.s32.totalorder %s4230_s28, 1  ;;  %vm311_vm1 = vcmask 25600   ;;  %vm621_vm2 = vcmask 64544  }
  0x14   : > { %309 = vst.msk [vmem:[#allocation2] sm:$0xff] %vm308_vm0, %v6299_v0  ;;  %s4155_s19 = smov 8   ;;  %s4156_s20 = smov 12   ;;  %vm814_vm3 = vcmask 97344   ;;  %vm1007_vm4 = vcmask 130144   ;;  %vm2144_vm5 = vcmask 1043456  }
  0x15   : > { %310 = vst.msk [vmem:[#allocation2 + $0x8] sm:$0xff] %vm308_vm0, %v6299_v0  ;;  %s272_s14 = scalar_select %p271_p10, %s4230_s28, 1  ;;  %vm1200_vm6 = vcmask 162944   ;;  %vm1393_vm7 = vcmask 195744   ;;  %vm1587_vm8 = vcmask 228544   ;;  %vm1780_vm9 = vcmask 261344  }
  0x16   : > { %313 = vst.msk [vmem:[#allocation2 + $0x18] sm:$0xff] %vm308_vm0, %v6299_v0  ;;  %s4157_s21 = smov 20   ;;  %s4158_s22 = smov 16   ;;  %vm1973_vm10 = vcmask 294144   ;;  %vm2047_vm11 = vcmask 293888   ;;  %vm2293_vm12 = vcmask 64512  }
  0x17   : > { %314 = vst.msk [vmem:[#allocation2 + $0x20] sm:$0xff] %vm308_vm0, %v6299_v0  ;;  %s4020_s15 = sshll.u32 %s272_s14, 8  ;;  %s4159_s23 = smov 24   ;;  %vm2454_vm13 = vcmask 58368   ;;  %vm2987_vm14 = vcmask 1041409   ;;  %vm6303_vm15 = vcmask 1042434  }
  0x18   : > { %316 = vst.msk [vmem:[#allocation2 + $0x30] sm:$0xff] %vm308_vm0, %v6299_v0  ;;  %s4325_s18 = scalar_lea.vmem %s6291_s0, %s4020_s15  ;;  %s4160_s29 = smov 32  }
  0x19   : > { %317 = vst.msk [vmem:[#allocation2 + $0x38] sm:$0xff] %vm308_vm0, %v6299_v0  ;;  %v278_v2 = vld [vmem:[%s4325_s18 + $0x10] sm:$0xff]  ;;  %v276_v3 = vld [vmem:[%s4325_s18] sm:$0xff]  ;;  %v279_v7 = vld [vmem:[%s4325_s18 + $0x18] sm:$0xff]  ;;  %s4161_s8 = smov 28   ;;  %s4109_s9 = scalar_lea.hbm %s6298_s7, 2 }
  0x1a   : > { %319 = vst.msk [vmem:[#allocation2 + $0x48] sm:$0xff] %vm308_vm0, %v6299_v0  ;;  %v277_v8 = vld [vmem:[%s4325_s18 + $0x8] sm:$0xff]  ;;  %v280_v9 = vld [vmem:[%s4325_s18 + $0x20] sm:$0xff]  ;;  %v282_v10 = vld [vmem:[%s4325_s18 + $0x30] sm:$0xff] }
  0x1b   : > { %320 = vst.msk [vmem:[#allocation2 + $0x50] sm:$0xff] %vm308_vm0, %v6299_v0  ;;  %v281_v11 = vld [vmem:[%s4325_s18 + $0x28] sm:$0xff]  ;;  %v283_v12 = vld [vmem:[%s4325_s18 + $0x38] sm:$0xff]  ;;  %v284_v14 = vld [vmem:[%s4325_s18 + $0x40] sm:$0xff] }
  0x1c   : > { %v461_v1 = vld [vmem:[#allocation2 + $0x1] sm:$0xff]  ;;  %322 = vst.msk [vmem:[#allocation2 + $0x60] sm:$0xff] %vm308_vm0, %v6299_v0  ;;  %v286_v15 = vld [vmem:[%s4325_s18 + $0x50] sm:$0xff]  ;;  %v287_v18 = vld [vmem:[%s4325_s18 + $0x58] sm:$0xff] }
  0x1d   : > { %525 = vrot.lane.b32.xlu0 %v461_v1, %s4154_s13  ;;  %323 = vst.msk [vmem:[#allocation2 + $0x68] sm:$0xff] %vm308_vm0, %v6299_v0  ;;  %v285_v13 = vld [vmem:[%s4325_s18 + $0x48] sm:$0xff]  ;;  %v288_v16 = vld [vmem:[%s4325_s18 + $0x60] sm:$0xff]  ;;  %v291_v22 = vld [vmem:[%s4325_s18 + $0x78] sm:$0xff] }
  0x1e   : > { %325 = vst.msk [vmem:[#allocation2 + $0x78] sm:$0xff] %vm308_vm0, %v6299_v0  ;;  %v289_v20 = vld [vmem:[%s4325_s18 + $0x68] sm:$0xff]  ;;  %v290_v23 = vld [vmem:[%s4325_s18 + $0x70] sm:$0xff]  ;;  %v292_v24 = vld [vmem:[%s4325_s18 + $0x80] sm:$0xff] }
  0x1f   : > { %326 = vst.msk [vmem:[#allocation2 + $0x80] sm:$0xff] %vm308_vm0, %v6299_v0  ;;  %v294_v25 = vld [vmem:[%s4325_s18 + $0x90] sm:$0xff]  ;;  %v293_v27 = vld [vmem:[%s4325_s18 + $0x88] sm:$0xff]  ;;  %v295_v29 = vld [vmem:[%s4325_s18 + $0x98] sm:$0xff] }
  0x20   : > { %328 = vst.msk [vmem:[#allocation2 + $0x90] sm:$0xff] %vm308_vm0, %v6299_v0  ;;  %v297_v31 = vld [vmem:[%s4325_s18 + $0xa8] sm:$0xff]  ;;  %v296_v32 = vld [vmem:[%s4325_s18 + $0xa0] sm:$0xff]  ;;  %v298_v33 = vld [vmem:[%s4325_s18 + $0xb0] sm:$0xff] }
  0x21   : > { %329 = vst.msk [vmem:[#allocation2 + $0x98] sm:$0xff] %vm308_vm0, %v6299_v0  ;;  %v300_v37 = vld [vmem:[%s4325_s18 + $0xc0] sm:$0xff]  ;;  %v299_v38 = vld [vmem:[%s4325_s18 + $0xb8] sm:$0xff]  ;;  %v301_v39 = vld [vmem:[%s4325_s18 + $0xc8] sm:$0xff] }
  0x22   : > { %331 = vst.msk [vmem:[#allocation2 + $0xa8] sm:$0xff] %vm308_vm0, %v6299_v0  ;;  %v303_v43 = vld [vmem:[%s4325_s18 + $0xd8] sm:$0xff]  ;;  %v302_v44 = vld [vmem:[%s4325_s18 + $0xd0] sm:$0xff]  ;;  %v304_v45 = vld [vmem:[%s4325_s18 + $0xe0] sm:$0xff] }
  0x23   : > { %332 = vst.msk [vmem:[#allocation2 + $0xb0] sm:$0xff] %vm308_vm0, %v6299_v0  ;;  %v305_v49 = vld [vmem:[%s4325_s18 + $0xe8] sm:$0xff] }
  0x24   : > { %334 = vst.msk [vmem:[#allocation2 + $0xc0] sm:$0xff] %vm308_vm0, %v6299_v0 }
  0x25   : > { %335 = vst.msk [vmem:[#allocation2 + $0xc8] sm:$0xff] %vm308_vm0, %v6299_v0 }
  0x26   : > { %337 = vst.msk [vmem:[#allocation2 + $0xd8] sm:$0xff] %vm308_vm0, %v6299_v0 }
  0x27   : > { %338 = vst.msk [vmem:[#allocation2 + $0xe0] sm:$0xff] %vm308_vm0, %v6299_v0 }
  0x28   : > { %340 = vst.msk [vmem:[#allocation2 + $0xf0] sm:$0xff] %vm308_vm0, %v6299_v0 }
  0x29   : > { %341 = vst.msk [vmem:[#allocation2 + $0xf8] sm:$0xff] %vm308_vm0, %v6299_v0 }
  0x2a   : > { %343 = vst.msk [vmem:[#allocation2 + $0x108] sm:$0xff] %vm308_vm0, %v6299_v0 }
  0x2b   : > { %344 = vst.msk [vmem:[#allocation2 + $0x110] sm:$0xff] %vm308_vm0, %v6299_v0 }
  0x2c   : > { %346 = vst.msk [vmem:[#allocation2 + $0x120] sm:$0xff] %vm308_vm0, %v6299_v0 }
  0x2d   : > { %347 = vst.msk [vmem:[#allocation2 + $0x128] sm:$0xff] %vm308_vm0, %v6299_v0 }
  0x2e   : > { %349 = vst.msk [vmem:[#allocation2 + $0x138] sm:$0xff] %vm308_vm0, %v6299_v0 }
  0x2f   : > { %350 = vst.msk [vmem:[#allocation2 + $0x140] sm:$0xff] %vm308_vm0, %v6299_v0 }
  0x30   : > { %352 = vst.msk [vmem:[#allocation2 + $0x150] sm:$0xff] %vm308_vm0, %v6299_v0 }
  0x31   : > { %353 = vst.msk [vmem:[#allocation2 + $0x158] sm:$0xff] %vm308_vm0, %v6299_v0 }
  0x32   : > { %355 = vst.msk [vmem:[#allocation2 + $0x168] sm:$0xff] %vm308_vm0, %v6299_v0 }
  0x33   : > { %356 = vst.msk [vmem:[#allocation2 + $0x170] sm:$0xff] %vm308_vm0, %v6299_v0 }
  0x34   : > { %358 = vst.msk [vmem:[#allocation2 + $0x180] sm:$0xff] %vm308_vm0, %v6299_v0 }
  0x35   : > { %359 = vst.msk [vmem:[#allocation2 + $0x188] sm:$0xff] %vm308_vm0, %v6299_v0 }
  0x36   : > { %361 = vst.msk [vmem:[#allocation2 + $0x198] sm:$0xff] %vm308_vm0, %v6299_v0 }
  0x37   : > { %362 = vst.msk [vmem:[#allocation2 + $0x1a0] sm:$0xff] %vm308_vm0, %v6299_v0 }
  0x38   : > { %367 = vst.msk [vmem:[#allocation2 + $0x31] sm:$0xff] %vm308_vm0, %v278_v2 }
  0x39   : > { %365 = vst.msk [vmem:[#allocation2 + $0x19] sm:$0xff] %vm308_vm0, %v276_v3  ;;  %v397_v3 = vld [vmem:[#allocation2] sm:$0xff] }
  0x3a   : > { %312 = vst.msk [vmem:[#allocation2 + $0x10] sm:$0x3] %vm311_vm1, %v6299_v0 }
  0x3b   : > { %315 = vst.msk [vmem:[#allocation2 + $0x28] sm:$0x3] %vm311_vm1, %v6299_v0 }
  0x3c   : > { %318 = vst.msk [vmem:[#allocation2 + $0x40] sm:$0x3] %vm311_vm1, %v6299_v0 }
  0x3d   : > { %321 = vst.msk [vmem:[#allocation2 + $0x58] sm:$0x3] %vm311_vm1, %v6299_v0 }
  0x3e   : > { %324 = vst.msk [vmem:[#allocation2 + $0x70] sm:$0x3] %vm311_vm1, %v6299_v0 }
  0x3f   : > { %v4351_v4 = vld [vmem:[#allocation2 + $0x31] sm:$0xff]  ;;  %327 = vst.msk [vmem:[#allocation2 + $0x88] sm:$0x3] %vm311_vm1, %v6299_v0 }
  0x40   : > { %533 = vrot.lane.b32.xlu2 %v4351_v4, %s4154_s13  ;;  %v4357_v5 = vld [vmem:[#allocation2 + $0x19] sm:$0xff]  ;;  %330 = vst.msk [vmem:[#allocation2 + $0xa0] sm:$0x3] %vm311_vm1, %v6299_v0  ;;  %v4493_v56 = vld [vmem:[#allocation2 + $0x30] sm:$0xff] }
  0x41   : > { %529 = vrot.lane.b32.xlu1 %v4357_v5, %s4154_s13  ;;  %v462_v6 = vld [vmem:[#allocation2 + $0x9] sm:$0xff]  ;;  %333 = vst.msk [vmem:[#allocation2 + $0xb8] sm:$0x3] %vm311_vm1, %v6299_v0 }
  0x42   : > { %527 = vrot.lane.b32.xlu0 %v462_v6, %s4154_s13  ;;  %336 = vst.msk [vmem:[#allocation2 + $0xd0] sm:$0x3] %vm311_vm1, %v6299_v0  ;;  %v654_v6 = vld [vmem:[#allocation2 + $0x2] sm:$0xff] }
  0x43   : > { %339 = vst.msk [vmem:[#allocation2 + $0xe8] sm:$0x3] %vm311_vm1, %v6299_v0 }
  0x44   : > { %342 = vst.msk [vmem:[#allocation2 + $0x100] sm:$0x3] %vm311_vm1, %v6299_v0 }
  0x45   : > { %345 = vst.msk [vmem:[#allocation2 + $0x118] sm:$0x3] %vm311_vm1, %v6299_v0 }
  0x46   : > { %348 = vst.msk [vmem:[#allocation2 + $0x130] sm:$0x3] %vm311_vm1, %v6299_v0 }
  0x47   : > { %351 = vst.msk [vmem:[#allocation2 + $0x148] sm:$0x3] %vm311_vm1, %v6299_v0 }
  0x48   : > { %354 = vst.msk [vmem:[#allocation2 + $0x160] sm:$0x3] %vm311_vm1, %v6299_v0 }
  0x49   : > { %357 = vst.msk [vmem:[#allocation2 + $0x178] sm:$0x3] %vm311_vm1, %v6299_v0 }
  0x4a   : > { %360 = vst.msk [vmem:[#allocation2 + $0x190] sm:$0x3] %vm311_vm1, %v6299_v0 }
  0x4b   : > { %363 = vst.msk [vmem:[#allocation2 + $0x1a8] sm:$0x3] %vm311_vm1, %v6299_v0  ;;  %vm2991_vm1 = vcmask 1043459  }
  0x4c   : > { %368 = vst.msk [vmem:[#allocation2 + $0x39] sm:$0xff] %vm308_vm0, %v279_v7 }
  0x4d   : > { %366 = vst.msk [vmem:[#allocation2 + $0x21] sm:$0xff] %vm308_vm0, %v277_v8 }
  0x4e   : > { %369 = vst.msk [vmem:[#allocation2 + $0x49] sm:$0xff] %vm308_vm0, %v280_v9  ;;  %v655_v9 = vld [vmem:[#allocation2 + $0xa] sm:$0xff] }
  0x4f   : > { %371 = vst.msk [vmem:[#allocation2 + $0x61] sm:$0xff] %vm308_vm0, %v282_v10 }
  0x50   : > { %370 = vst.msk [vmem:[#allocation2 + $0x51] sm:$0xff] %vm308_vm0, %v281_v11  ;;  %v4521_v11 = vld [vmem:[#allocation2 + $0x18] sm:$0xff] }
  0x51   : > { %372 = vst.msk [vmem:[#allocation2 + $0x69] sm:$0xff] %vm308_vm0, %v283_v12  ;;  %v398_v12 = vld [vmem:[#allocation2 + $0x8] sm:$0xff] }
  0x52   : > { %374 = vst.msk [vmem:[#allocation2 + $0x81] sm:$0xff] %vm308_vm0, %v285_v13 }
  0x53   : > { %v4403_v17 = vld [vmem:[#allocation2 + $0x39] sm:$0xff]  ;;  %373 = vst.msk [vmem:[#allocation2 + $0x79] sm:$0xff] %vm308_vm0, %v284_v14 }
  0x54   : > { %535 = vrot.lane.b32.xlu2 %v4403_v17, %s4154_s13  ;;  %v4409_v19 = vld [vmem:[#allocation2 + $0x21] sm:$0xff]  ;;  %375 = vst.msk [vmem:[#allocation2 + $0x91] sm:$0xff] %vm308_vm0, %v286_v15  ;;  %v4500_v60 = vld [vmem:[#allocation2 + $0x38] sm:$0xff] }
  0x55   : > { %531 = vrot.lane.b32.xlu1 %v4409_v19, %s4154_s13  ;;  %v4415_v21 = vld [vmem:[#allocation2 + $0x49] sm:$0xff]  ;;  %377 = vst.msk [vmem:[#allocation2 + $0xa9] sm:$0xff] %vm308_vm0, %v288_v16  ;;  %v4528_v14 = vld [vmem:[#allocation2 + $0x1a] sm:$0xff]  ;;  %v4530_v15 = vld [vmem:[#allocation2 + $0x32] sm:$0xff] }
  0x56   : > { %537 = vrot.lane.b32.xlu0 %v4415_v21, %s4154_s13  ;;  %376 = vst.msk [vmem:[#allocation2 + $0x99] sm:$0xff] %vm308_vm0, %v287_v18  ;;  %v4427_v26 = vld [vmem:[#allocation2 + $0x61] sm:$0xff] }
  0x57   : > { %378 = vst.msk [vmem:[#allocation2 + $0xb1] sm:$0xff] %vm308_vm0, %v289_v20  ;;  %v4431_v28 = vld [vmem:[#allocation2 + $0x51] sm:$0xff]  ;;  %v4507_v1 = vld [vmem:[#allocation2 + $0x60] sm:$0xff]  ;;  %v4546_v20 = vld [vmem:[#allocation2 + $0x48] sm:$0xff] }
  0x58   : > { %380 = vst.msk [vmem:[#allocation2 + $0xc9] sm:$0xff] %vm308_vm0, %v291_v22  ;;  %v470_v30 = vld [vmem:[#allocation2 + $0x69] sm:$0xff]  ;;  %v4542_v18 = vld [vmem:[#allocation2 + $0x20] sm:$0xff] }
  0x59   : > { %379 = vst.msk [vmem:[#allocation2 + $0xc1] sm:$0xff] %vm308_vm0, %v290_v23  ;;  %v472_v34 = vld [vmem:[#allocation2 + $0x81] sm:$0xff]  ;;  %v4548_v22 = vld [vmem:[#allocation2 + $0x4a] sm:$0xff] }
  0x5a   : > { %381 = vst.msk [vmem:[#allocation2 + $0xd9] sm:$0xff] %vm308_vm0, %v292_v24  ;;  %v471_v35 = vld [vmem:[#allocation2 + $0x79] sm:$0xff]  ;;  %v4525_v13 = vld [vmem:[#allocation2 + $0x22] sm:$0xff] }
  0x5b   : > { %383 = vst.msk [vmem:[#allocation2 + $0xf1] sm:$0xff] %vm308_vm0, %v294_v25  ;;  %v473_v36 = vld [vmem:[#allocation2 + $0x91] sm:$0xff]  ;;  %v4517_v10 = vld [vmem:[#allocation2 + $0x80] sm:$0xff] }
  0x5c   : > { %541 = vrot.lane.b32.xlu2 %v4427_v26, %s4154_s13  ;;  %382 = vst.msk [vmem:[#allocation2 + $0xe1] sm:$0xff] %vm308_vm0, %v293_v27  ;;  %v4458_v40 = vld [vmem:[#allocation2 + $0xa9] sm:$0xff]  ;;  %v4552_v23 = vld [vmem:[#allocation2 + $0x3a] sm:$0xff]  ;;  %v4554_v24 = vld [vmem:[#allocation2 + $0x52] sm:$0xff] }
  0x5d   : > { %539 = vrot.lane.b32.xlu1 %v4431_v28, %s4154_s13  ;;  %384 = vst.msk [vmem:[#allocation2 + $0xf9] sm:$0xff] %vm308_vm0, %v295_v29  ;;  %v474_v41 = vld [vmem:[#allocation2 + $0x99] sm:$0xff]  ;;  %v4538_v16 = vld [vmem:[#allocation2 + $0xa8] sm:$0xff]  ;;  %v4565_v29 = vld [vmem:[#allocation2 + $0x50] sm:$0xff] }
  0x5e   : > { %543 = vrot.lane.b32.xlu0 %v470_v30, %s4154_s13  ;;  %386 = vst.msk [vmem:[#allocation2 + $0x111] sm:$0xff] %vm308_vm0, %v297_v31  ;;  %v4460_v42 = vld [vmem:[#allocation2 + $0xb1] sm:$0xff]  ;;  %v4569_v30 = vld [vmem:[#allocation2 + $0x68] sm:$0xff] }
  0x5f   : > { %385 = vst.msk [vmem:[#allocation2 + $0x109] sm:$0xff] %vm308_vm0, %v296_v32  ;;  %v4473_v46 = vld [vmem:[#allocation2 + $0xc9] sm:$0xff] }
  0x60   : > { %387 = vst.msk [vmem:[#allocation2 + $0x121] sm:$0xff] %vm308_vm0, %v298_v33  ;;  %v4475_v47 = vld [vmem:[#allocation2 + $0xc1] sm:$0xff]  ;;  %v4571_v31 = vld [vmem:[#allocation2 + $0x6a] sm:$0xff] }
  0x61   : > { %389 = vst.msk [vmem:[#allocation2 + $0x139] sm:$0xff] %vm308_vm0, %v300_v37  ;;  %v479_v48 = vld [vmem:[#allocation2 + $0xd9] sm:$0xff]  ;;  %v4562_v27 = vld [vmem:[#allocation2 + $0xc8] sm:$0xff] }
  0x62   : > { %388 = vst.msk [vmem:[#allocation2 + $0x129] sm:$0xff] %vm308_vm0, %v299_v38  ;;  %v481_v50 = vld [vmem:[#allocation2 + $0xf1] sm:$0xff]  ;;  %v4575_v32 = vld [vmem:[#allocation2 + $0x62] sm:$0xff]  ;;  %v4579_v33 = vld [vmem:[#allocation2 + $0x7a] sm:$0xff] }
  0x63   : > { %390 = vst.msk [vmem:[#allocation2 + $0x141] sm:$0xff] %vm308_vm0, %v301_v39  ;;  %v480_v51 = vld [vmem:[#allocation2 + $0xe1] sm:$0xff]  ;;  %v4589_v37 = vld [vmem:[#allocation2 + $0xf0] sm:$0xff]  ;;  %v4592_v38 = vld [vmem:[#allocation2 + $0x78] sm:$0xff] }
  0x64   : > { %547 = vrot.lane.b32.xlu2 %v472_v34, %s4154_s13  ;;  %392 = vst.msk [vmem:[#allocation2 + $0x159] sm:$0xff] %vm308_vm0, %v303_v43  ;;  %v482_v52 = vld [vmem:[#allocation2 + $0xf9] sm:$0xff]  ;;  %v4596_v39 = vld [vmem:[#allocation2 + $0x90] sm:$0xff]  ;;  %v665_v43 = vld [vmem:[#allocation2 + $0x82] sm:$0xff] }
  0x65   : > { %545 = vrot.lane.b32.xlu1 %v471_v35, %s4154_s13  ;;  %391 = vst.msk [vmem:[#allocation2 + $0x151] sm:$0xff] %vm308_vm0, %v302_v44  ;;  %v484_v53 = vld [vmem:[#allocation2 + $0x111] sm:$0xff]  ;;  %v667_v44 = vld [vmem:[#allocation2 + $0x9a] sm:$0xff] }
  0x66   : > { %549 = vrot.lane.b32.xlu0 %v473_v36, %s4154_s13  ;;  %393 = vst.msk [vmem:[#allocation2 + $0x169] sm:$0xff] %vm308_vm0, %v304_v45  ;;  %v483_v54 = vld [vmem:[#allocation2 + $0x109] sm:$0xff] }
  0x67   : > { %394 = vst.msk [vmem:[#allocation2 + $0x171] sm:$0xff] %vm308_vm0, %v305_v49  ;;  %v4487_v55 = vld [vmem:[#allocation2 + $0x121] sm:$0xff]  ;;  %v4608_v49 = vld [vmem:[#allocation2 + $0x98] sm:$0xff] }
  0x68   : > { %433 = vst.msk [vmem:[#allocation3 + $0x20] sm:$0xff] %vm308_vm0, %v4493_v56  ;;  %v487_v57 = vld [vmem:[#allocation2 + $0x139] sm:$0xff] }
  0x69   : > { %v486_v58 = vld [vmem:[#allocation2 + $0x129] sm:$0xff]  ;;  %434 = vst.msk [vmem:[#allocation3 + $0x28] sm:$0xff] %vm308_vm0, %v4500_v60 }
  0x6a   : > { %v488_v59 = vld [vmem:[#allocation2 + $0x141] sm:$0xff]  ;;  %437 = vst.msk [vmem:[#allocation3 + $0x40] sm:$0xff] %vm308_vm0, %v4507_v1 }
  0x6b   : > { %v490_v61 = vld [vmem:[#allocation2 + $0x159] sm:$0xff]  ;;  %429 = vst.msk [vmem:[#allocation3] sm:$0xff] %vm308_vm0, %v397_v3  ;;  %v4645_v3 = vld [vmem:[#allocation2 + $0xe2] sm:$0xff] }
  0x6c   : > { %553 = vrot.lane.b32.xlu2 %v4458_v40, %s4154_s13  ;;  %v489_v62 = vld [vmem:[#allocation2 + $0x151] sm:$0xff]  ;;  %440 = vst.msk [vmem:[#allocation3 + $0x58] sm:$0xff] %vm308_vm0, %v4517_v10 }
  0x6d   : > { %551 = vrot.lane.b32.xlu1 %v474_v41, %s4154_s13  ;;  %v491_v63 = vld [vmem:[#allocation2 + $0x169] sm:$0xff]  ;;  %431 = vst.msk [vmem:[#allocation3 + $0x10] sm:$0xff] %vm308_vm0, %v4521_v11  ;;  %v666_v41 = vld [vmem:[#allocation2 + $0x92] sm:$0xff] }
  0x6e   : > { %555 = vrot.lane.b32.xlu0 %v4460_v42, %s4154_s13  ;;  %v492_v7 = vld [vmem:[#allocation2 + $0x171] sm:$0xff]  ;;  %430 = vst.msk [vmem:[#allocation3 + $0x8] sm:$0xff] %vm308_vm0, %v398_v12  ;;  %v4659_v12 = vld [vmem:[#allocation2 + $0xe0] sm:$0xff] }
  0x6f   : > { %443 = vst.msk [vmem:[#allocation3 + $0x70] sm:$0xff] %vm308_vm0, %v4538_v16  ;;  %v684_v0 = vld [vmem:[#allocation2 + $0x16a] sm:$0xff] }
  0x70   : > { %432 = vst.msk [vmem:[#allocation3 + $0x18] sm:$0xff] %vm308_vm0, %v4542_v18 }
  0x71   : > { %435 = vst.msk [vmem:[#allocation3 + $0x30] sm:$0xff] %vm308_vm0, %v4546_v20 }
  0x72   : > { %446 = vst.msk [vmem:[#allocation3 + $0x88] sm:$0xff] %vm308_vm0, %v4562_v27 }
  0x73   : > { %436 = vst.msk [vmem:[#allocation3 + $0x38] sm:$0xff] %vm308_vm0, %v4565_v29 }
  0x74   : > { %559 = vrot.lane.b32.xlu2 %v4473_v46, %s4154_s13  ;;  %438 = vst.msk [vmem:[#allocation3 + $0x48] sm:$0xff] %vm308_vm0, %v4569_v30 }
  0x75   : > { %557 = vrot.lane.b32.xlu1 %v4475_v47, %s4154_s13  ;;  %449 = vst.msk [vmem:[#allocation3 + $0xa0] sm:$0xff] %vm308_vm0, %v4589_v37 }
  0x76   : > { %561 = vrot.lane.b32.xlu0 %v479_v48, %s4154_s13  ;;  %439 = vst.msk [vmem:[#allocation3 + $0x50] sm:$0xff] %vm308_vm0, %v4592_v38  ;;  %v4605_v48 = vld [vmem:[#allocation2 + $0x110] sm:$0xff] }
  0x77   : > { %441 = vst.msk [vmem:[#allocation3 + $0x60] sm:$0xff] %vm308_vm0, %v4596_v39 }
  0x78   : > { %452 = vst.msk [vmem:[#allocation3 + $0xb8] sm:$0xff] %vm308_vm0, %v4605_v48 }
  0x79   : > { %442 = vst.msk [vmem:[#allocation3 + $0x68] sm:$0xff] %vm308_vm0, %v4608_v49 }
  0x7a   : > { %6308 = vst [vmem:[#allocation10_spill] sm:$0xff] %v4645_v3 }
  0x7b   : > { %448 = vst.msk [vmem:[#allocation3 + $0x98] sm:$0xff] %vm308_vm0, %v4659_v12 }
  0x7c   : > { %565 = vrot.lane.b32.xlu2 %v481_v50, %s4154_s13  ;;  %v4612_v50 = vld [vmem:[#allocation2 + $0xb0] sm:$0xff] }
  0x7d   : > { %563 = vrot.lane.b32.xlu1 %v480_v51, %s4154_s13  ;;  %v4614_v51 = vld [vmem:[#allocation2 + $0xb2] sm:$0xff]  ;;  %444 = vst.msk [vmem:[#allocation3 + $0x78] sm:$0xff] %vm308_vm0, %v4612_v50 }
  0x7e   : > { %567 = vrot.lane.b32.xlu0 %v482_v52, %s4154_s13  ;;  %v4618_v52 = vld [vmem:[#allocation2 + $0xaa] sm:$0xff] }
  0x84   : > { %571 = vrot.lane.b32.xlu2 %v484_v53, %s4154_s13  ;;  %v4622_v53 = vld [vmem:[#allocation2 + $0xc2] sm:$0xff] }
  0x85   : > { %569 = vrot.lane.b32.xlu1 %v483_v54, %s4154_s13 }
  0x86   : > { %573 = vrot.lane.b32.xlu0 %v4487_v55, %s4154_s13 }
  0x8c   : > { %577 = vrot.lane.b32.xlu2 %v487_v57, %s4154_s13 }
  0x8d   : > { %575 = vrot.lane.b32.xlu1 %v486_v58, %s4154_s13  ;;  %v4631_v58 = vld [vmem:[#allocation2 + $0x138] sm:$0xff] }
  0x8e   : > { %579 = vrot.lane.b32.xlu0 %v488_v59, %s4154_s13  ;;  %455 = vst.msk [vmem:[#allocation3 + $0xd0] sm:$0xff] %vm308_vm0, %v4631_v58 }
  0x8f   : > { %v526_v2 = vpop.permute.xlu0 %525 }
  0x90   : > { %622 = vst.msk [vmem:[#allocation3] sm:$0xff] %vm621_vm2, %v526_v2  ;;  %v4641_v2 = vld [vmem:[#allocation2 + $0xca] sm:$0xff] }
  0x94   : > { %583 = vrot.lane.b32.xlu2 %v490_v61, %s4154_s13  ;;  %v4634_v61 = vld [vmem:[#allocation2 + $0xc0] sm:$0xff] }
  0x95   : > { %581 = vrot.lane.b32.xlu1 %v489_v62, %s4154_s13  ;;  %v4637_v62 = vld [vmem:[#allocation2 + $0xda] sm:$0xff]  ;;  %445 = vst.msk [vmem:[#allocation3 + $0x80] sm:$0xff] %vm308_vm0, %v4634_v61 }
  0x96   : > { %585 = vrot.lane.b32.xlu0 %v491_v63, %s4154_s13  ;;  %v4639_v63 = vld [vmem:[#allocation2 + $0xd8] sm:$0xff] }
  0x97   : > { %447 = vst.msk [vmem:[#allocation3 + $0x90] sm:$0xff] %vm308_vm0, %v4639_v63 }
  0x9a   : > { %v534_v8 = vpop.permute.xlu2 %533 }
  0x9b   : > { %626 = vst.msk [vmem:[#allocation3 + $0x20] sm:$0xff] %vm621_vm2, %v534_v8  ;;  %v426_v8 = vld [vmem:[#allocation2 + $0x158] sm:$0xff] }
  0x9c   : > { %718 = vrot.lane.b32.xlu2 %v654_v6, %s4155_s19  ;;  %458 = vst.msk [vmem:[#allocation3 + $0xe8] sm:$0xff] %vm308_vm0, %v426_v8 }
  0x9d   : > { %587 = vrot.lane.b32.xlu1 %v492_v7, %s4154_s13  ;;  %s269_s13 = sand.u32 1, %s4143_s25  }
  0x9e   : > { %720 = vrot.lane.b32.xlu0 %v655_v9, %s4155_s19  ;;  %s3904_s14 = scalar_lea.sflag [#allocation8], %s269_s13 }
  0xa4   : > { %724 = vrot.lane.b32.xlu2 %v4525_v13, %s4155_s19 }
  0xa5   : > { %722 = vrot.lane.b32.xlu1 %v4528_v14, %s4155_s19 }
  0xa6   : > { %726 = vrot.lane.b32.xlu0 %v4530_v15, %s4155_s19 }
  0xac   : > { %730 = vrot.lane.b32.xlu2 %v4548_v22, %s4155_s19 }
  0xad   : > { %728 = vrot.lane.b32.xlu1 %v4552_v23, %s4155_s19 }
  0xae   : > { %732 = vrot.lane.b32.xlu0 %v4554_v24, %s4155_s19  ;;  %v536_v25 = vpop.permute.xlu2 %535 }
  0xaf   : > { %627 = vst.msk [vmem:[#allocation3 + $0x28] sm:$0xff] %vm621_vm2, %v536_v25  ;;  %v675_v25 = vld [vmem:[#allocation2 + $0xfa] sm:$0xff] }
  0xb3   : > { %v530_v34 = vpop.permute.xlu1 %529 }
  0xb4   : > { %736 = vrot.lane.b32.xlu2 %v4571_v31, %s4155_s19  ;;  %624 = vst.msk [vmem:[#allocation3 + $0x10] sm:$0xff] %vm621_vm2, %v530_v34  ;;  %v528_v35 = vpop.permute.xlu0 %527  ;;  %v4662_v34 = vld [vmem:[#allocation2 + $0xf8] sm:$0xff] }
  0xb5   : > { %734 = vrot.lane.b32.xlu1 %v4575_v32, %s4155_s19  ;;  %623 = vst.msk [vmem:[#allocation3 + $0x8] sm:$0xff] %vm621_vm2, %v528_v35  ;;  %v674_v35 = vld [vmem:[#allocation2 + $0xf2] sm:$0xff] }
  0xb6   : > { %738 = vrot.lane.b32.xlu0 %v4579_v33, %s4155_s19  ;;  %v542_v36 = vpop.permute.xlu2 %541  ;;  %450 = vst.msk [vmem:[#allocation3 + $0xa8] sm:$0xff] %vm308_vm0, %v4662_v34 }
  0xb7   : > { %630 = vst.msk [vmem:[#allocation3 + $0x40] sm:$0xff] %vm621_vm2, %v542_v36  ;;  %v676_v36 = vld [vmem:[#allocation2 + $0x10a] sm:$0xff] }
  0xbc   : > { %742 = vrot.lane.b32.xlu2 %v666_v41, %s4155_s19 }
  0xbd   : > { %740 = vrot.lane.b32.xlu1 %v665_v43, %s4155_s19 }
  0xbe   : > { %744 = vrot.lane.b32.xlu0 %v667_v44, %s4155_s19  ;;  %v548_v45 = vpop.permute.xlu2 %547  ;;  %v4673_v44 = vld [vmem:[#allocation2 + $0x108] sm:$0xff] }
  0xbf   : > { %633 = vst.msk [vmem:[#allocation3 + $0x58] sm:$0xff] %vm621_vm2, %v548_v45 }
  0xc0   : > { %451 = vst.msk [vmem:[#allocation3 + $0xb0] sm:$0xff] %vm308_vm0, %v4673_v44 }
  0xc4   : > { %748 = vrot.lane.b32.xlu2 %v4614_v51, %s4155_s19 }
  0xc5   : > { %746 = vrot.lane.b32.xlu1 %v4618_v52, %s4155_s19 }
  0xc6   : > { %750 = vrot.lane.b32.xlu0 %v4622_v53, %s4155_s19  ;;  %v554_v54 = vpop.permute.xlu2 %553 }
  0xc7   : > { %636 = vst.msk [vmem:[#allocation3 + $0x70] sm:$0xff] %vm621_vm2, %v554_v54  ;;  %v532_v57 = vpop.permute.xlu1 %531  ;;  %v4676_v54 = vld [vmem:[#allocation2 + $0x120] sm:$0xff] }
  0xc8   : > { %625 = vst.msk [vmem:[#allocation3 + $0x18] sm:$0xff] %vm621_vm2, %v532_v57  ;;  %v538_v59 = vpop.permute.xlu0 %537  ;;  %v4679_v57 = vld [vmem:[#allocation2 + $0x122] sm:$0xff] }
  0xc9   : > { %628 = vst.msk [vmem:[#allocation3 + $0x30] sm:$0xff] %vm621_vm2, %v538_v59  ;;  %v677_v59 = vld [vmem:[#allocation2 + $0x112] sm:$0xff] }
  0xca   : > { %453 = vst.msk [vmem:[#allocation3 + $0xc0] sm:$0xff] %vm308_vm0, %v4676_v54 }
  0xcc   : > { %754 = vrot.lane.b32.xlu2 %v4637_v62, %s4155_s19 }
  0xcd   : > { %752 = vrot.lane.b32.xlu1 %v4641_v2, %s4155_s19 }
  0xce   : > { %756 = vrot.lane.b32.xlu0 %v4645_v3, %s4155_s19  ;;  %v560_v6 = vpop.permute.xlu2 %559  ;;  %v683_v3 = vld [vmem:[#allocation2 + $0x15a] sm:$0xff] }
  0xcf   : > { %639 = vst.msk [vmem:[#allocation3 + $0x88] sm:$0xff] %vm621_vm2, %v560_v6  ;;  %v540_v7 = vpop.permute.xlu1 %539  ;;  %v4683_v6 = vld [vmem:[#allocation2 + $0x12a] sm:$0xff] }
  0xd0   : > { %629 = vst.msk [vmem:[#allocation3 + $0x38] sm:$0xff] %vm621_vm2, %v540_v7  ;;  %v544_v9 = vpop.permute.xlu0 %543 }
  0xd1   : > { %631 = vst.msk [vmem:[#allocation3 + $0x48] sm:$0xff] %vm621_vm2, %v544_v9  ;;  %v4693_v9 = vld [vmem:[#allocation2 + $0x128] sm:$0xff] }
  0xd2   : > { %454 = vst.msk [vmem:[#allocation3 + $0xc8] sm:$0xff] %vm308_vm0, %v4693_v9 }
  0xd4   : > { %760 = vrot.lane.b32.xlu2 %v675_v25, %s4155_s19 }
  0xd5   : > { %758 = vrot.lane.b32.xlu1 %v674_v35, %s4155_s19  ;;  %v4696_v35 = vld [vmem:[#allocation2 + $0x140] sm:$0xff] }
  0xd6   : > { %762 = vrot.lane.b32.xlu0 %v676_v36, %s4155_s19  ;;  %v566_v41 = vpop.permute.xlu2 %565  ;;  %v4699_v36 = vld [vmem:[#allocation2 + $0x142] sm:$0xff]  ;;  %456 = vst.msk [vmem:[#allocation3 + $0xd8] sm:$0xff] %vm308_vm0, %v4696_v35 }
  0xd7   : > { %642 = vst.msk [vmem:[#allocation3 + $0xa0] sm:$0xff] %vm621_vm2, %v566_v41  ;;  %v546_v43 = vpop.permute.xlu1 %545  ;;  %v4701_v41 = vld [vmem:[#allocation2 + $0x13a] sm:$0xff] }
  0xd8   : > { %632 = vst.msk [vmem:[#allocation3 + $0x50] sm:$0xff] %vm621_vm2, %v546_v43  ;;  %v550_v45 = vpop.permute.xlu0 %549  ;;  %v682_v43 = vld [vmem:[#allocation2 + $0x152] sm:$0xff] }
  0xd9   : > { %634 = vst.msk [vmem:[#allocation3 + $0x60] sm:$0xff] %vm621_vm2, %v550_v45 }
  0xda   : > { %6309 = vst [vmem:[#allocation11_spill] sm:$0xff] %v4699_v36 }
  0xdc   : > { %766 = vrot.lane.b32.xlu2 %v4679_v57, %s4155_s19 }
  0xdd   : > { %764 = vrot.lane.b32.xlu1 %v677_v59, %s4155_s19 }
  0xde   : > { %768 = vrot.lane.b32.xlu0 %v4683_v6, %s4155_s19  ;;  %v572_v7 = vpop.permute.xlu2 %571 }
  0xdf   : > { %645 = vst.msk [vmem:[#allocation3 + $0xb8] sm:$0xff] %vm621_vm2, %v572_v7  ;;  %v552_v8 = vpop.permute.xlu1 %551  ;;  %v4713_v7 = vld [vmem:[#allocation2 + $0x150] sm:$0xff] }
  0xe0   : > { %635 = vst.msk [vmem:[#allocation3 + $0x68] sm:$0xff] %vm621_vm2, %v552_v8  ;;  %v556_v25 = vpop.permute.xlu0 %555 }
  0xe1   : > { %637 = vst.msk [vmem:[#allocation3 + $0x78] sm:$0xff] %vm621_vm2, %v556_v25  ;;  %v427_v25 = vld [vmem:[#allocation2 + $0x168] sm:$0xff] }
  0xe2   : > { %457 = vst.msk [vmem:[#allocation3 + $0xe0] sm:$0xff] %vm308_vm0, %v4713_v7 }
  0xe3   : > { %459 = vst.msk [vmem:[#allocation3 + $0xf0] sm:$0xff] %vm308_vm0, %v427_v25 }
  0xe4   : > { %772 = vrot.lane.b32.xlu2 %v4699_v36, %s4155_s19  ;;  %v685_v36 = vld [vmem:[#allocation2 + $0x172] sm:$0xff] }
  0xe5   : > { %770 = vrot.lane.b32.xlu1 %v4701_v41, %s4155_s19 }
  0xe6   : > { %774 = vrot.lane.b32.xlu0 %v682_v43, %s4155_s19  ;;  %v578_v45 = vpop.permute.xlu2 %577 }
  0xe7   : > { %648 = vst.msk [vmem:[#allocation3 + $0xd0] sm:$0xff] %vm621_vm2, %v578_v45  ;;  %v558_v59 = vpop.permute.xlu1 %557 }
  0xe8   : > { %638 = vst.msk [vmem:[#allocation3 + $0x80] sm:$0xff] %vm621_vm2, %v558_v59  ;;  %v562_v8 = vpop.permute.xlu0 %561  ;;  %v428_v59 = vld [vmem:[#allocation2 + $0x170] sm:$0xff] }
  0xe9   : > { %640 = vst.msk [vmem:[#allocation3 + $0x90] sm:$0xff] %vm621_vm2, %v562_v8 }
  0xea   : > { %460 = vst.msk [vmem:[#allocation3 + $0xf8] sm:$0xff] %vm308_vm0, %v428_v59 }
  0xec   : > { %778 = vrot.lane.b32.xlu2 %v684_v0, %s4155_s19 }
  0xed   : > { %776 = vrot.lane.b32.xlu1 %v683_v3, %s4155_s19 }
  0xee   : > { %780 = vrot.lane.b32.xlu0 %v685_v36, %s4155_s19  ;;  %v584_v43 = vpop.permute.xlu2 %583 }
  0xef   : > { %651 = vst.msk [vmem:[#allocation3 + $0xe8] sm:$0xff] %vm621_vm2, %v584_v43  ;;  %v564_v45 = vpop.permute.xlu1 %563 }
  0xf0   : > { %641 = vst.msk [vmem:[#allocation3 + $0x98] sm:$0xff] %vm621_vm2, %v564_v45  ;;  %v568_v8 = vpop.permute.xlu0 %567 }
  0xf1   : > { %643 = vst.msk [vmem:[#allocation3 + $0xa8] sm:$0xff] %vm621_vm2, %v568_v8 }
  0xf4   : > { %913 = vrot.lane.b32.xlu2 %v4542_v18, %s4156_s20 }
  0xf5   : > { %911 = vrot.lane.b32.xlu1 %v4521_v11, %s4156_s20 }
  0xf6   : > { %915 = vrot.lane.b32.xlu0 %v4493_v56, %s4156_s20  ;;  %v719_v0 = vpop.permute.xlu2 %718 }
  0xf7   : > { %815 = vst.msk [vmem:[#allocation3] sm:$0xff] %vm814_vm3, %v719_v0  ;;  %v570_v3 = vpop.permute.xlu1 %569 }
  0xf8   : > { %644 = vst.msk [vmem:[#allocation3 + $0xb0] sm:$0xff] %vm621_vm2, %v570_v3  ;;  %v574_v36 = vpop.permute.xlu0 %573 }
  0xf9   : > { %646 = vst.msk [vmem:[#allocation3 + $0xc0] sm:$0xff] %vm621_vm2, %v574_v36 }
  0xfc   : > { %919 = vrot.lane.b32.xlu2 %v4546_v20, %s4156_s20 }
  0xfd   : > { %917 = vrot.lane.b32.xlu1 %v4500_v60, %s4156_s20 }
  0xfe   : > { %921 = vrot.lane.b32.xlu0 %v4565_v29, %s4156_s20  ;;  %v725_v11 = vpop.permute.xlu2 %724 }
  0xff   : > { %818 = vst.msk [vmem:[#allocation3 + $0x18] sm:$0xff] %vm814_vm3, %v725_v11  ;;  %v576_v18 = vpop.permute.xlu1 %575 }
 0x100   : > { %647 = vst.msk [vmem:[#allocation3 + $0xc8] sm:$0xff] %vm621_vm2, %v576_v18  ;;  %v580_v25 = vpop.permute.xlu0 %579 }
 0x101   : > { %649 = vst.msk [vmem:[#allocation3 + $0xd8] sm:$0xff] %vm621_vm2, %v580_v25 }
 0x104   : > { %925 = vrot.lane.b32.xlu2 %v4569_v30, %s4156_s20 }
 0x105   : > { %923 = vrot.lane.b32.xlu1 %v4507_v1, %s4156_s20 }
 0x106   : > { %927 = vrot.lane.b32.xlu0 %v4592_v38, %s4156_s20  ;;  %v731_v43 = vpop.permute.xlu2 %730 }
 0x107   : > { %821 = vst.msk [vmem:[#allocation3 + $0x30] sm:$0xff] %vm814_vm3, %v731_v43  ;;  %v582_v45 = vpop.permute.xlu1 %581 }
 0x108   : > { %650 = vst.msk [vmem:[#allocation3 + $0xe0] sm:$0xff] %vm621_vm2, %v582_v45  ;;  %v586_v59 = vpop.permute.xlu0 %585 }
 0x109   : > { %652 = vst.msk [vmem:[#allocation3 + $0xf0] sm:$0xff] %vm621_vm2, %v586_v59 }
 0x10c   : > { %931 = vrot.lane.b32.xlu2 %v4596_v39, %s4156_s20 }
 0x10d   : > { %929 = vrot.lane.b32.xlu1 %v4517_v10, %s4156_s20 }
 0x10e   : > { %933 = vrot.lane.b32.xlu0 %v4608_v49, %s4156_s20  ;;  %v737_v8 = vpop.permute.xlu2 %736 }
 0x10f   : > { %824 = vst.msk [vmem:[#allocation3 + $0x48] sm:$0xff] %vm814_vm3, %v737_v8  ;;  %v588_v0 = vpop.permute.xlu1 %587 }
 0x110   : > { %653 = vst.msk [vmem:[#allocation3 + $0xf8] sm:$0xff] %vm621_vm2, %v588_v0  ;;  %v721_v3 = vpop.permute.xlu0 %720  ;;  %vm2993_vm2 = vcmask 1044484  }
 0x111   : > { %816 = vst.msk [vmem:[#allocation3 + $0x8] sm:$0xff] %vm814_vm3, %v721_v3 }
 0x114   : > { %937 = vrot.lane.b32.xlu2 %v4612_v50, %s4156_s20 }
 0x115   : > { %935 = vrot.lane.b32.xlu1 %v4538_v16, %s4156_s20 }
 0x116   : > { %939 = vrot.lane.b32.xlu0 %v4634_v61, %s4156_s20  ;;  %v743_v36 = vpop.permute.xlu2 %742 }
 0x117   : > { %827 = vst.msk [vmem:[#allocation3 + $0x60] sm:$0xff] %vm814_vm3, %v743_v36  ;;  %v723_v49 = vpop.permute.xlu1 %722 }
 0x118   : > { %817 = vst.msk [vmem:[#allocation3 + $0x10] sm:$0xff] %vm814_vm3, %v723_v49  ;;  %v727_v11 = vpop.permute.xlu0 %726 }
 0x119   : > { %819 = vst.msk [vmem:[#allocation3 + $0x20] sm:$0xff] %vm814_vm3, %v727_v11 }
 0x11c   : > { %943 = vrot.lane.b32.xlu2 %v4639_v63, %s4156_s20 }
 0x11d   : > { %941 = vrot.lane.b32.xlu1 %v4562_v27, %s4156_s20 }
 0x11e   : > { %945 = vrot.lane.b32.xlu0 %v4659_v12, %s4156_s20  ;;  %v749_v16 = vpop.permute.xlu2 %748 }
 0x11f   : > { %830 = vst.msk [vmem:[#allocation3 + $0x78] sm:$0xff] %vm814_vm3, %v749_v16  ;;  %v729_v50 = vpop.permute.xlu1 %728 }
 0x120   : > { %820 = vst.msk [vmem:[#allocation3 + $0x28] sm:$0xff] %vm814_vm3, %v729_v50  ;;  %v733_v18 = vpop.permute.xlu0 %732 }
 0x121   : > { %822 = vst.msk [vmem:[#allocation3 + $0x38] sm:$0xff] %vm814_vm3, %v733_v18 }
 0x124   : > { %949 = vrot.lane.b32.xlu2 %v4662_v34, %s4156_s20 }
 0x125   : > { %947 = vrot.lane.b32.xlu1 %v4589_v37, %s4156_s20 }
 0x126   : > { %951 = vrot.lane.b32.xlu0 %v4673_v44, %s4156_s20  ;;  %v755_v25 = vpop.permute.xlu2 %754 }
 0x127   : > { %833 = vst.msk [vmem:[#allocation3 + $0x90] sm:$0xff] %vm814_vm3, %v755_v25  ;;  %v735_v43 = vpop.permute.xlu1 %734 }
 0x128   : > { %823 = vst.msk [vmem:[#allocation3 + $0x40] sm:$0xff] %vm814_vm3, %v735_v43  ;;  %v739_v45 = vpop.permute.xlu0 %738 }
 0x129   : > { %825 = vst.msk [vmem:[#allocation3 + $0x50] sm:$0xff] %vm814_vm3, %v739_v45 }
 0x12c   : > { %955 = vrot.lane.b32.xlu2 %v4676_v54, %s4156_s20 }
 0x12d   : > { %953 = vrot.lane.b32.xlu1 %v4605_v48, %s4156_s20 }
 0x12e   : > { %957 = vrot.lane.b32.xlu0 %v4693_v9, %s4156_s20  ;;  %v761_v37 = vpop.permute.xlu2 %760 }
 0x12f   : > { %836 = vst.msk [vmem:[#allocation3 + $0xa8] sm:$0xff] %vm814_vm3, %v761_v37  ;;  %v741_v34 = vpop.permute.xlu1 %740  ;;  %v4907_v37 = vld [vmem:[#allocation2 + $0x69] sm:$0xff] }
 0x130   : > { %826 = vst.msk [vmem:[#allocation3 + $0x58] sm:$0xff] %vm814_vm3, %v741_v34  ;;  %v745_v44 = vpop.permute.xlu0 %744 }
 0x131   : > { %828 = vst.msk [vmem:[#allocation3 + $0x68] sm:$0xff] %vm814_vm3, %v745_v44  ;;  %v2039_v44 = vld [vmem:[%s6292_s1 + $0x8] sm:$0xff] }
 0x134   : > { %961 = vrot.lane.b32.xlu2 %v4696_v35, %s4156_s20 }
 0x135   : > { %959 = vrot.lane.b32.xlu1 %v4631_v58, %s4156_s20 }
 0x136   : > { %963 = vrot.lane.b32.xlu0 %v4713_v7, %s4156_s20  ;;  %v767_v48 = vpop.permute.xlu2 %766 }
 0x137   : > { %839 = vst.msk [vmem:[#allocation3 + $0xc0] sm:$0xff] %vm814_vm3, %v767_v48  ;;  %v747_v54 = vpop.permute.xlu1 %746 }
 0x138   : > { %829 = vst.msk [vmem:[#allocation3 + $0x70] sm:$0xff] %vm814_vm3, %v747_v54  ;;  %v751_v9 = vpop.permute.xlu0 %750 }
 0x139   : > { %831 = vst.msk [vmem:[#allocation3 + $0x80] sm:$0xff] %vm814_vm3, %v751_v9  ;;  %v2038_v9 = vld [vmem:[%s6292_s1] sm:$0xff] }
 0x13c   : > { %1297 = vrot.lane.b32.xlu2 %v4528_v14, %s4157_s21 }
 0x13d   : > { %1104 = vrot.lane.b32.xlu1 %v4357_v5, %s4158_s22 }
 0x13e   : > { %1491 = vrot.lane.b32.xlu0 %v4493_v56, %s4159_s23  ;;  %v773_v59 = vpop.permute.xlu2 %772 }
 0x13f   : > { %842 = vst.msk [vmem:[#allocation3 + $0xd8] sm:$0xff] %vm814_vm3, %v773_v59  ;;  %v753_v8 = vpop.permute.xlu1 %752  ;;  %v1046_v59 = vld [vmem:[#allocation2 + $0x61] sm:$0xff] }
 0x140   : > { %832 = vst.msk [vmem:[#allocation3 + $0x88] sm:$0xff] %vm814_vm3, %v753_v8  ;;  %v757_v0 = vpop.permute.xlu0 %756 }
 0x141   : > { %834 = vst.msk [vmem:[#allocation3 + $0x98] sm:$0xff] %vm814_vm3, %v757_v0 }
 0x144   : > { %1877 = vrot.lane.b32.xlu2 %v4530_v15, %s4160_s29 }
 0x145   : > { %1684 = vrot.lane.b32.xlu1 %v4351_v4, %s4161_s8 }
 0x146   : > { %1106 = vrot.lane.b32.xlu0 %v4409_v19, %s4158_s22  ;;  %v779_v5 = vpop.permute.xlu2 %778 }
 0x147   : > { %845 = vst.msk [vmem:[#allocation3 + $0xf0] sm:$0xff] %vm814_vm3, %v779_v5  ;;  %v759_v56 = vpop.permute.xlu1 %758  ;;  %v1054_v5 = vld [vmem:[#allocation2 + $0xc1] sm:$0xff] }
 0x148   : > { %835 = vst.msk [vmem:[#allocation3 + $0xa0] sm:$0xff] %vm814_vm3, %v759_v56  ;;  %v763_v14 = vpop.permute.xlu0 %762 }
 0x149   : > { %837 = vst.msk [vmem:[#allocation3 + $0xb0] sm:$0xff] %vm814_vm3, %v763_v14 }
 0x14c   : > { %1493 = vrot.lane.b32.xlu2 %v4500_v60, %s4159_s23 }
 0x14d   : > { %1299 = vrot.lane.b32.xlu1 %v4525_v13, %s4157_s21 }
 0x14e   : > { %1686 = vrot.lane.b32.xlu0 %v4403_v17, %s4161_s8  ;;  %v914_v19 = vpop.permute.xlu2 %913 }
 0x14f   : > { %1009 = vst.msk [vmem:[#allocation3 + $0x8] sm:$0xff] %vm1007_vm4, %v914_v19  ;;  %v765_v3 = vpop.permute.xlu1 %764 }
 0x150   : > { %838 = vst.msk [vmem:[#allocation3 + $0xb8] sm:$0xff] %vm814_vm3, %v765_v3  ;;  %v769_v36 = vpop.permute.xlu0 %768 }
 0x151   : > { %840 = vst.msk [vmem:[#allocation3 + $0xc8] sm:$0xff] %vm814_vm3, %v769_v36 }
 0x154   : > { %1108 = vrot.lane.b32.xlu2 %v4351_v4, %s4158_s22 }
 0x155   : > { %1879 = vrot.lane.b32.xlu1 %v4552_v23, %s4160_s29 }
 0x156   : > { %1301 = vrot.lane.b32.xlu0 %v4530_v15, %s4157_s21  ;;  %v920_v60 = vpop.permute.xlu2 %919 }
 0x157   : > { %1012 = vst.msk [vmem:[#allocation3 + $0x20] sm:$0xff] %vm1007_vm4, %v920_v60  ;;  %v771_v13 = vpop.permute.xlu1 %770 }
 0x158   : > { %841 = vst.msk [vmem:[#allocation3 + $0xd0] sm:$0xff] %vm814_vm3, %v771_v13  ;;  %v775_v49 = vpop.permute.xlu0 %774  ;;  %v4976_v13 = vld [vmem:[#allocation2 + $0x139] sm:$0xff] }
 0x159   : > { %843 = vst.msk [vmem:[#allocation3 + $0xe0] sm:$0xff] %vm814_vm3, %v775_v49 }
 0x15c   : > { %1688 = vrot.lane.b32.xlu2 %v4415_v21, %s4161_s8 }
 0x15d   : > { %1495 = vrot.lane.b32.xlu1 %v4546_v20, %s4159_s23 }
 0x15e   : > { %1881 = vrot.lane.b32.xlu0 %v4548_v22, %s4160_s29  ;;  %v926_v4 = vpop.permute.xlu2 %925 }
 0x15f   : > { %1015 = vst.msk [vmem:[#allocation3 + $0x38] sm:$0xff] %vm1007_vm4, %v926_v4  ;;  %v777_v15 = vpop.permute.xlu1 %776 }
 0x160   : > { %844 = vst.msk [vmem:[#allocation3 + $0xe8] sm:$0xff] %vm814_vm3, %v777_v15  ;;  %v781_v11 = vpop.permute.xlu0 %780 }
 0x161   : > { %846 = vst.msk [vmem:[#allocation3 + $0xf8] sm:$0xff] %vm814_vm3, %v781_v11  ;;  %vm2995_vm3 = vcmask 1045509  }
 0x164   : > { %1303 = vrot.lane.b32.xlu2 %v4552_v23, %s4157_s21 }
 0x165   : > { %1110 = vrot.lane.b32.xlu1 %v4403_v17, %s4158_s22 }
 0x166   : > { %1497 = vrot.lane.b32.xlu0 %v4565_v29, %s4159_s23  ;;  %v932_v20 = vpop.permute.xlu2 %931 }
 0x167   : > { %1018 = vst.msk [vmem:[#allocation3 + $0x50] sm:$0xff] %vm1007_vm4, %v932_v20  ;;  %v912_v16 = vpop.permute.xlu1 %911  ;;  %v1063_v20 = vld [vmem:[#allocation2 + $0x129] sm:$0xff] }
 0x168   : > { %1008 = vst.msk [vmem:[#allocation3] sm:$0xff] %vm1007_vm4, %v912_v16  ;;  %v916_v50 = vpop.permute.xlu0 %915  ;;  %v1055_v16 = vld [vmem:[#allocation2 + $0xc9] sm:$0xff] }
 0x169   : > { %1010 = vst.msk [vmem:[#allocation3 + $0x10] sm:$0xff] %vm1007_vm4, %v916_v50 }
 0x16c   : > { %1883 = vrot.lane.b32.xlu2 %v4554_v24, %s4160_s29 }
 0x16d   : > { %1690 = vrot.lane.b32.xlu1 %v4431_v28, %s4161_s8 }
 0x16e   : > { %1112 = vrot.lane.b32.xlu0 %v4415_v21, %s4158_s22  ;;  %v938_v17 = vpop.permute.xlu2 %937 }
 0x16f   : > { %1021 = vst.msk [vmem:[#allocation3 + $0x68] sm:$0xff] %vm1007_vm4, %v938_v17  ;;  %v918_v23 = vpop.permute.xlu1 %917 }
 0x170   : > { %1011 = vst.msk [vmem:[#allocation3 + $0x18] sm:$0xff] %vm1007_vm4, %v918_v23  ;;  %v922_v29 = vpop.permute.xlu0 %921 }
 0x171   : > { %1013 = vst.msk [vmem:[#allocation3 + $0x28] sm:$0xff] %vm1007_vm4, %v922_v29  ;;  %v5008_v29 = vld [vmem:[#allocation2 + $0x81] sm:$0xff] }
 0x174   : > { %1128 = vrot.lane.b32.xlu2 %v4458_v40, %s4158_s22 }
 0x175   : > { %1305 = vrot.lane.b32.xlu1 %v4548_v22, %s4157_s21 }
 0x176   : > { %1499 = vrot.lane.b32.xlu0 %v4507_v1, %s4159_s23  ;;  %v944_v18 = vpop.permute.xlu2 %943 }
 0x177   : > { %1024 = vst.msk [vmem:[#allocation3 + $0x80] sm:$0xff] %vm1007_vm4, %v944_v18  ;;  %v924_v21 = vpop.permute.xlu1 %923 }
 0x178   : > { %1014 = vst.msk [vmem:[#allocation3 + $0x30] sm:$0xff] %vm1007_vm4, %v924_v21  ;;  %v928_v25 = vpop.permute.xlu0 %927 }
 0x179   : > { %1016 = vst.msk [vmem:[#allocation3 + $0x40] sm:$0xff] %vm1007_vm4, %v928_v25  ;;  %v5019_v25 = vld [vmem:[#allocation2 + $0x82] sm:$0xff] }
 0x17c   : > { %1692 = vrot.lane.b32.xlu2 %v4427_v26, %s4161_s8 }
 0x17d   : > { %1321 = vrot.lane.b32.xlu1 %v4618_v52, %s4157_s21 }
 0x17e   : > { %1515 = vrot.lane.b32.xlu0 %v4634_v61, %s4159_s23  ;;  %v950_v40 = vpop.permute.xlu2 %949 }
 0x17f   : > { %1027 = vst.msk [vmem:[#allocation3 + $0x98] sm:$0xff] %vm1007_vm4, %v950_v40  ;;  %v930_v1 = vpop.permute.xlu1 %929 }
 0x180   : > { %1017 = vst.msk [vmem:[#allocation3 + $0x48] sm:$0xff] %vm1007_vm4, %v930_v1  ;;  %v934_v22 = vpop.permute.xlu0 %933 }
 0x181   : > { %1019 = vst.msk [vmem:[#allocation3 + $0x58] sm:$0xff] %vm1007_vm4, %v934_v22  ;;  %v5030_v22 = vld [vmem:[#allocation2 + $0x141] sm:$0xff] }
 0x184   : > { %1708 = vrot.lane.b32.xlu2 %v4475_v47, %s4161_s8 }
 0x185   : > { %1885 = vrot.lane.b32.xlu1 %v4575_v32, %s4160_s29 }
 0x186   : > { %1901 = vrot.lane.b32.xlu0 %v4622_v53, %s4160_s29  ;;  %v956_v26 = vpop.permute.xlu2 %955 }
 0x187   : > { %1030 = vst.msk [vmem:[#allocation3 + $0xb0] sm:$0xff] %vm1007_vm4, %v956_v26  ;;  %v936_v52 = vpop.permute.xlu1 %935 }
 0x188   : > { %1020 = vst.msk [vmem:[#allocation3 + $0x60] sm:$0xff] %vm1007_vm4, %v936_v52  ;;  %v940_v61 = vpop.permute.xlu0 %939 }
 0x189   : > { %1022 = vst.msk [vmem:[#allocation3 + $0x70] sm:$0xff] %vm1007_vm4, %v940_v61 }
 0x18c   : > { %1307 = vrot.lane.b32.xlu2 %v4554_v24, %s4157_s21  ;;  %v2042_v24 = vld [vmem:[%s6292_s1 + $0x20] sm:$0xf] }
 0x18d   : > { %1114 = vrot.lane.b32.xlu1 %v4431_v28, %s4158_s22  ;;  %3977 = vmatpush.msk.msra.mxu0 %vm2144_vm5, %v2042_v24 }
 0x18e   : > { %1130 = vrot.lane.b32.xlu0 %v4460_v42, %s4158_s22  ;;  %v962_v47 = vpop.permute.xlu2 %961  ;;  %4021 = vmatpush.msk.msra.mxu2 %vm2144_vm5, %v2042_v24 }
 0x18f   : > { %1033 = vst.msk [vmem:[#allocation3 + $0xc8] sm:$0xff] %vm1007_vm4, %v962_v47  ;;  %v942_v43 = vpop.permute.xlu1 %941  ;;  %4022 = vmatpush.msk.msra.mxu3 %vm2144_vm5, %v2042_v24  ;;  %v1241_v47 = vld [vmem:[#allocation2 + $0x7a] sm:$0xff]  ;;  %vm2997_vm5 = vcmask 1046534  }
 0x190   : > { %1023 = vst.msk [vmem:[#allocation3 + $0x78] sm:$0xff] %vm1007_vm4, %v942_v43  ;;  %v946_v45 = vpop.permute.xlu0 %945  ;;  %v6311_v43 = vld [vmem:[#allocation11_spill] sm:$0xff] }
 0x191   : > { %1025 = vst.msk [vmem:[#allocation3 + $0x88] sm:$0xff] %vm1007_vm4, %v946_v45 }
 0x194   : > { %1323 = vrot.lane.b32.xlu2 %v4614_v51, %s4157_s21  ;;  %v2040_v51 = vld [vmem:[%s6292_s1 + $0x10] sm:$0xff] }
 0x195   : > { %1501 = vrot.lane.b32.xlu1 %v4569_v30, %s4159_s23  ;;  %v2041_v30 = vld [vmem:[%s6292_s1 + $0x18] sm:$0xff] }
 0x196   : > { %1694 = vrot.lane.b32.xlu0 %v4907_v37, %s4161_s8  ;;  %v1298_v28 = vpop.permute.xlu2 %1297  ;;  %2160 = vmatpush.msra.mxu0 %v2041_v30 }
 0x197   : > { %v948_v42 = vpop.permute.xlu1 %947  ;;  %4023 = vmatpush.msra.mxu2 %v2041_v30  ;;  %4024 = vmatpush.msra.mxu3 %v2041_v30 }
 0x198   : > { %1026 = vst.msk [vmem:[#allocation3 + $0x90] sm:$0xff] %vm1007_vm4, %v948_v42  ;;  %v952_v34 = vpop.permute.xlu0 %951  ;;  %2161 = vmatpush.msra.mxu0 %v2040_v51 }
 0x199   : > { %1028 = vst.msk [vmem:[#allocation3 + $0xa0] sm:$0xff] %vm1007_vm4, %v952_v34  ;;  %4025 = vmatpush.msra.mxu2 %v2040_v51  ;;  %4026 = vmatpush.msra.mxu3 %v2040_v51 }
 0x19a   : > { %2162 = vmatpush.msra.mxu0 %v2039_v44 }
 0x19b   : > { %4027 = vmatpush.msra.mxu2 %v2039_v44  ;;  %4028 = vmatpush.msra.mxu3 %v2039_v44  ;;  %v1249_v44 = vld [vmem:[#allocation2 + $0xda] sm:$0xff] }
 0x19c   : > { %1887 = vrot.lane.b32.xlu2 %v4571_v31, %s4160_s29  ;;  %2163 = vmatpush.msra.mxu0 %v2038_v9 }
 0x19d   : > { %1517 = vrot.lane.b32.xlu1 %v4562_v27, %s4159_s23  ;;  %4029 = vmatpush.msra.mxu2 %v2038_v9 }
 0x19e   : > { %1710 = vrot.lane.b32.xlu0 %v4473_v46, %s4161_s8  ;;  %v1878_v48 = vpop.permute.xlu2 %1877  ;;  %4030 = vmatpush.msra.mxu3 %v2038_v9 }
 0x19f   : > { %v954_v54 = vpop.permute.xlu1 %953 }
 0x1a0   : > { %1029 = vst.msk [vmem:[#allocation3 + $0xa8] sm:$0xff] %vm1007_vm4, %v954_v54  ;;  %v958_v27 = vpop.permute.xlu0 %957 }
 0x1a1   : > { %1031 = vst.msk [vmem:[#allocation3 + $0xb8] sm:$0xff] %vm1007_vm4, %v958_v27  ;;  %v1443_v27 = vld [vmem:[#allocation2 + $0xf0] sm:$0xff] }
 0x1a4   : > { %1116 = vrot.lane.b32.xlu2 %v1046_v59, %s4158_s22  ;;  %v5075_v59 = vld [vmem:[#allocation2 + $0x92] sm:$0xff] }
 0x1a5   : > { %1903 = vrot.lane.b32.xlu1 %v4641_v2, %s4160_s29 }
 0x1a6   : > { %1309 = vrot.lane.b32.xlu0 %v4575_v32, %s4157_s21  ;;  %v1494_v46 = vpop.permute.xlu2 %1493 }
 0x1a7   : > { %v960_v8 = vpop.permute.xlu1 %959 }
 0x1a8   : > { %1032 = vst.msk [vmem:[#allocation3 + $0xc0] sm:$0xff] %vm1007_vm4, %v960_v8  ;;  %v964_v0 = vpop.permute.xlu0 %963 }
 0x1a9   : > { %1034 = vst.msk [vmem:[#allocation3 + $0xd0] sm:$0xff] %vm1007_vm4, %v964_v0 }
 0x1ac   : > { %1148 = vrot.lane.b32.xlu2 %v4487_v55, %s4158_s22  ;;  %v4956_v55 = vld [vmem:[#allocation2 + $0x79] sm:$0xff] }
 0x1ad   : > { %1132 = vrot.lane.b32.xlu1 %v1054_v5, %s4158_s22  ;;  %v5085_v5 = vld [vmem:[#allocation2 + $0x151] sm:$0xff] }
 0x1ae   : > { %1503 = vrot.lane.b32.xlu0 %v4592_v38, %s4159_s23  ;;  %v1109_v56 = vpop.permute.xlu2 %1108 }
 0x1af   : > { %1203 = vst.msk [vmem:[#allocation3 + $0x10] sm:$0xff] %vm1200_vm6, %v1109_v56  ;;  %v1105_v32 = vpop.permute.xlu1 %1104  ;;  %v5090_v56 = vld [vmem:[#allocation2 + $0xf2] sm:$0xff] }
 0x1b0   : > { %1201 = vst.msk [vmem:[#allocation3] sm:$0xff] %vm1200_vm6, %v1105_v32  ;;  %v1492_v14 = vpop.permute.xlu0 %1491 }
 0x1b1   : > { %1394 = vst.msk [vmem:[#allocation3] sm:$0xff] %vm1393_vm7, %v1298_v28 }
 0x1b2   : > { %1588 = vst.msk [vmem:[#allocation3] sm:$0xff] %vm1587_vm8, %v1492_v14 }
 0x1b4   : > { %1341 = vrot.lane.b32.xlu2 %v4679_v57, %s4157_s21 }
 0x1b5   : > { %1325 = vrot.lane.b32.xlu1 %v4622_v53, %s4157_s21 }
 0x1b6   : > { %1696 = vrot.lane.b32.xlu0 %v4956_v55, %s4161_s8  ;;  %v1689_v38 = vpop.permute.xlu2 %1688 }
 0x1b7   : > { %v1685_v19 = vpop.permute.xlu1 %1684 }
 0x1b8   : > { %1781 = vst.msk [vmem:[#allocation3] sm:$0xff] %vm1780_vm9, %v1685_v19  ;;  %v1107_v3 = vpop.permute.xlu0 %1106 }
 0x1b9   : > { %1974 = vst.msk [vmem:[#allocation3] sm:$0xff] %vm1973_vm10, %v1878_v48 }
 0x1ba   : > { %1202 = vst.msk [vmem:[#allocation3 + $0x8] sm:$0xff] %vm1200_vm6, %v1107_v3 }
 0x1bc   : > { %1535 = vrot.lane.b32.xlu2 %v4631_v58, %s4159_s23  ;;  %v4979_v58 = vld [vmem:[#allocation2 + $0xd9] sm:$0xff] }
 0x1bd   : > { %1519 = vrot.lane.b32.xlu1 %v4639_v63, %s4159_s23 }
 0x1be   : > { %1889 = vrot.lane.b32.xlu0 %v4579_v33, %s4160_s29  ;;  %v1304_v53 = vpop.permute.xlu2 %1303 }
 0x1bf   : > { %v1300_v57 = vpop.permute.xlu1 %1299 }
 0x1c0   : > { %1395 = vst.msk [vmem:[#allocation3 + $0x8] sm:$0xff] %vm1393_vm7, %v1300_v57  ;;  %v1687_v36 = vpop.permute.xlu0 %1686  ;;  %v2006_v60 = vld [vmem:[#allocation3] sm:$0xff] }
 0x1c1   : > { %1589 = vst.msk [vmem:[#allocation3 + $0x8] sm:$0xff] %vm1587_vm8, %v1494_v46  ;;  %3978 = vmatmul.msk.f32.vlgmr.msra.gmra.mxu0 %vm2047_vm11, %v2006_v60  ;;  %v1436_v60 = vld [vmem:[#allocation2 + $0x98] sm:$0xff] }
 0x1c2   : > { %1782 = vst.msk [vmem:[#allocation3 + $0x8] sm:$0xff] %vm1780_vm9, %v1687_v36  ;;  %v6312_v36 = vmov 0.0  }
 0x1c3   : > { %2903 = vst.msk [vmem:[#allocation4] sm:$0xff] %vm2293_vm12, %v6312_v36 }
 0x1c4   : > { %1728 = vrot.lane.b32.xlu2 %v4976_v13, %s4161_s8  ;;  %2905 = vst.msk [vmem:[#allocation4 + $0x10] sm:$0xff] %vm2293_vm12, %v6312_v36 }
 0x1c5   : > { %1712 = vrot.lane.b32.xlu1 %v4979_v58, %s4161_s8  ;;  %2907 = vst.msk [vmem:[#allocation4 + $0x20] sm:$0xff] %vm2293_vm12, %v6312_v36 }
 0x1c6   : > { %1905 = vrot.lane.b32.xlu0 %v4637_v62, %s4160_s29  ;;  %v1884_v33 = vpop.permute.xlu2 %1883  ;;  %2909 = vst.msk [vmem:[#allocation4 + $0x30] sm:$0xff] %vm2293_vm12, %v6312_v36 }
 0x1c7   : > { %v1880_v63 = vpop.permute.xlu1 %1879  ;;  %2911 = vst.msk [vmem:[#allocation4 + $0x40] sm:$0xff] %vm2293_vm12, %v6312_v36 }
 0x1c8   : > { %1975 = vst.msk [vmem:[#allocation3 + $0x8] sm:$0xff] %vm1973_vm10, %v1880_v63  ;;  %v1302_v49 = vpop.permute.xlu0 %1301  ;;  %v1258_v63 = vld [vmem:[#allocation2 + $0x142] sm:$0xff] }
 0x1c9   : > { %1396 = vst.msk [vmem:[#allocation3 + $0x10] sm:$0xff] %vm1393_vm7, %v1302_v49  ;;  %v1250_v49 = vld [vmem:[#allocation2 + $0xe2] sm:$0xff] }
 0x1ca   : > { %2913 = vst.msk [vmem:[#allocation4 + $0x50] sm:$0xff] %vm2293_vm12, %v6312_v36 }
 0x1cb   : > { %2915 = vst.msk [vmem:[#allocation4 + $0x60] sm:$0xff] %vm2293_vm12, %v6312_v36 }
 0x1cc   : > { %1118 = vrot.lane.b32.xlu2 %v4907_v37, %s4158_s22  ;;  %2917 = vst.msk [vmem:[#allocation4 + $0x70] sm:$0xff] %vm2293_vm12, %v6312_v36 }
 0x1cd   : > { %1921 = vrot.lane.b32.xlu1 %v4701_v41, %s4160_s29  ;;  %2919 = vst.msk [vmem:[#allocation4 + $0x80] sm:$0xff] %vm2293_vm12, %v6312_v36 }
 0x1ce   : > { %1311 = vrot.lane.b32.xlu0 %v4571_v31, %s4157_s21  ;;  %v1129_v4 = vpop.permute.xlu2 %1128  ;;  %2921 = vst.msk [vmem:[#allocation4 + $0x90] sm:$0xff] %vm2293_vm12, %v6312_v36 }
 0x1cf   : > { %1213 = vst.msk [vmem:[#allocation3 + $0x60] sm:$0xff] %vm1200_vm6, %v1129_v4  ;;  %v1496_v62 = vpop.permute.xlu1 %1495  ;;  %v2007_v15 = vld [vmem:[#allocation3 + $0x8] sm:$0xff] }
 0x1d0   : > { %1590 = vst.msk [vmem:[#allocation3 + $0x10] sm:$0xff] %vm1587_vm8, %v1496_v62  ;;  %v1882_v11 = vpop.permute.xlu0 %1881  ;;  %3979 = vmatmul.msk.f32.gmra.mxu0 %vm2047_vm11, %v2007_v15  ;;  %v5133_v4 = vld [vmem:[#allocation2 + $0x99] sm:$0xff] }
 0x1d1   : > { %1783 = vst.msk [vmem:[#allocation3 + $0x10] sm:$0xff] %vm1780_vm9, %v1689_v38  ;;  %v5101_v38 = vld [vmem:[#allocation2 + $0x152] sm:$0xff] }
 0x1d2   : > { %1976 = vst.msk [vmem:[#allocation3 + $0x10] sm:$0xff] %vm1973_vm10, %v1882_v11 }
 0x1d3   : > { %2904 = vst.msk [vmem:[#allocation4 + $0x8] sm:$0x3] %vm2454_vm13, %v6312_v36 }
 0x1d4   : > { %1150 = vrot.lane.b32.xlu2 %v1063_v20, %s4158_s22  ;;  %v5150_v20 = vld [vmem:[#allocation2 + $0x158] sm:$0xff]  ;;  %2906 = vst.msk [vmem:[#allocation4 + $0x18] sm:$0x3] %vm2454_vm13, %v6312_v36 }
 0x1d5   : > { %1134 = vrot.lane.b32.xlu1 %v1055_v16, %s4158_s22  ;;  %v1444_v16 = vld [vmem:[#allocation2 + $0xf8] sm:$0xff]  ;;  %2908 = vst.msk [vmem:[#allocation4 + $0x28] sm:$0x3] %vm2454_vm13, %v6312_v36 }
 0x1d6   : > { %1505 = vrot.lane.b32.xlu0 %v4517_v10, %s4159_s23  ;;  %v1693_v31 = vpop.permute.xlu2 %1692  ;;  %2910 = vst.msk [vmem:[#allocation4 + $0x38] sm:$0x3] %vm2454_vm13, %v6312_v36 }
 0x1d7   : > { %v1111_v50 = vpop.permute.xlu1 %1110  ;;  %2912 = vst.msk [vmem:[#allocation4 + $0x48] sm:$0x3] %vm2454_vm13, %v6312_v36 }
 0x1d8   : > { %1204 = vst.msk [vmem:[#allocation3 + $0x18] sm:$0xff] %vm1200_vm6, %v1111_v50  ;;  %v1498_v17 = vpop.permute.xlu0 %1497 }
 0x1d9   : > { %1397 = vst.msk [vmem:[#allocation3 + $0x18] sm:$0xff] %vm1393_vm7, %v1304_v53  ;;  %v2008_v23 = vld [vmem:[#allocation3 + $0x10] sm:$0xff] }
 0x1da   : > { %1591 = vst.msk [vmem:[#allocation3 + $0x18] sm:$0xff] %vm1587_vm8, %v1498_v17  ;;  %3980 = vmatmul.msk.f32.gmra.mxu0 %vm2047_vm11, %v2008_v23 }
 0x1db   : > { %2914 = vst.msk [vmem:[#allocation4 + $0x58] sm:$0x3] %vm2454_vm13, %v6312_v36 }
 0x1dc   : > { %1343 = vrot.lane.b32.xlu2 %v4683_v6, %s4157_s21  ;;  %2916 = vst.msk [vmem:[#allocation4 + $0x68] sm:$0x3] %vm2454_vm13, %v6312_v36 }
 0x1dd   : > { %1327 = vrot.lane.b32.xlu1 %v4641_v2, %s4157_s21  ;;  %2918 = vst.msk [vmem:[#allocation4 + $0x78] sm:$0x3] %vm2454_vm13, %v6312_v36 }
 0x1de   : > { %1698 = vrot.lane.b32.xlu0 %v5008_v29, %s4161_s8  ;;  %v1709_v10 = vpop.permute.xlu2 %1708  ;;  %2920 = vst.msk [vmem:[#allocation4 + $0x88] sm:$0x3] %vm2454_vm13, %v6312_v36 }
 0x1df   : > { %v1691_v18 = vpop.permute.xlu1 %1690  ;;  %2922 = vst.msk [vmem:[#allocation4 + $0x98] sm:$0x3] %vm2454_vm13, %v6312_v36  ;;  %v5250_v36 = vld [vmem:[#allocation2 + $0x169] sm:$0xff] }
 0x1e0   : > { %1784 = vst.msk [vmem:[#allocation3 + $0x18] sm:$0xff] %vm1780_vm9, %v1691_v18  ;;  %v1113_v21 = vpop.permute.xlu0 %1112  ;;  %v5165_v18 = vld [vmem:[#allocation2 + $0xf9] sm:$0xff] }
 0x1e1   : > { %1977 = vst.msk [vmem:[#allocation3 + $0x18] sm:$0xff] %vm1973_vm10, %v1884_v33 }
 0x1e2   : > { %1205 = vst.msk [vmem:[#allocation3 + $0x20] sm:$0xff] %vm1200_vm6, %v1113_v21  ;;  %v5167_v21 = vld [vmem:[#allocation2 + $0xfa] sm:$0xff] }
 0x1e4   : > { %1537 = vrot.lane.b32.xlu2 %v4696_v35, %s4159_s23  ;;  %v5033_v35 = vld [vmem:[#allocation2 + $0xe1] sm:$0xff] }
 0x1e5   : > { %1521 = vrot.lane.b32.xlu1 %v4659_v12, %s4159_s23  ;;  %v6310_v12 = vld [vmem:[#allocation10_spill] sm:$0xff] }
 0x1e6   : > { %1891 = vrot.lane.b32.xlu0 %v5019_v25, %s4160_s29  ;;  %v1308_v2 = vpop.permute.xlu2 %1307 }
 0x1e7   : > { %v1306_v6 = vpop.permute.xlu1 %1305 }
 0x1e8   : > { %1398 = vst.msk [vmem:[#allocation3 + $0x20] sm:$0xff] %vm1393_vm7, %v1306_v6  ;;  %v1500_v40 = vpop.permute.xlu0 %1499  ;;  %v2009_v1 = vld [vmem:[#allocation3 + $0x18] sm:$0xff] }
 0x1e9   : > { %1592 = vst.msk [vmem:[#allocation3 + $0x20] sm:$0xff] %vm1587_vm8, %v1500_v40  ;;  %3981 = vmatmul.msk.f32.gmra.mxu0 %vm2047_vm11, %v2009_v1  ;;  %v5179_v1 = vld [vmem:[#allocation2 + $0x15a] sm:$0xff] }
 0x1ea   : > { %1785 = vst.msk [vmem:[#allocation3 + $0x20] sm:$0xff] %vm1780_vm9, %v1693_v31  ;;  %v5152_v31 = vld [vmem:[#allocation2 + $0x9a] sm:$0xff] }
 0x1ec   : > { %1730 = vrot.lane.b32.xlu2 %v5030_v22, %s4161_s8 }
 0x1ed   : > { %1714 = vrot.lane.b32.xlu1 %v5033_v35, %s4161_s8 }
 0x1ee   : > { %1907 = vrot.lane.b32.xlu0 %v6310_v12, %s4160_s29  ;;  %v1324_v26 = vpop.permute.xlu2 %1323 }
 0x1ef   : > { %v1322_v52 = vpop.permute.xlu1 %1321 }
 0x1f0   : > { %1406 = vst.msk [vmem:[#allocation3 + $0x60] sm:$0xff] %vm1393_vm7, %v1322_v52  ;;  %v1516_v61 = vpop.permute.xlu0 %1515 }
 0x1f1   : > { %1600 = vst.msk [vmem:[#allocation3 + $0x60] sm:$0xff] %vm1587_vm8, %v1516_v61  ;;  %v1437_v61 = vld [vmem:[#allocation2 + $0xa8] sm:$0xff] }
 0x1f2   : > { %1793 = vst.msk [vmem:[#allocation3 + $0x60] sm:$0xff] %vm1780_vm9, %v1709_v10  ;;  %v5163_v10 = vld [vmem:[#allocation2 + $0x159] sm:$0xff] }
 0x1f4   : > { %1120 = vrot.lane.b32.xlu2 %v4956_v55, %s4158_s22 }
 0x1f5   : > { %1923 = vrot.lane.b32.xlu1 %v6311_v43, %s4160_s29 }
 0x1f6   : > { %1313 = vrot.lane.b32.xlu0 %v1241_v47, %s4157_s21  ;;  %v1888_v45 = vpop.permute.xlu2 %1887 }
 0x1f7   : > { %v1886_v37 = vpop.permute.xlu1 %1885 }
 0x1f8   : > { %1978 = vst.msk [vmem:[#allocation3 + $0x20] sm:$0xff] %vm1973_vm10, %v1886_v37  ;;  %v1902_v28 = vpop.permute.xlu0 %1901  ;;  %v5220_v37 = vld [vmem:[%s6293_s2] ss:$0 sm:$0xff] }
 0x1f9   : > { %1986 = vst.msk [vmem:[#allocation3 + $0x60] sm:$0xff] %vm1973_vm10, %v1902_v28 }
 0x1fc   : > { %1152 = vrot.lane.b32.xlu2 %v4976_v13, %s4158_s22 }
 0x1fd   : > { %1136 = vrot.lane.b32.xlu1 %v4979_v58, %s4158_s22 }
 0x1fe   : > { %1507 = vrot.lane.b32.xlu0 %v4596_v39, %s4159_s23  ;;  %v1117_v42 = vpop.permute.xlu2 %1116  ;;  %v5064_v39 = vld [vmem:[#allocation2 + $0x91] sm:$0xff] }
 0x1ff   : > { %1207 = vst.msk [vmem:[#allocation3 + $0x30] sm:$0xff] %vm1200_vm6, %v1117_v42  ;;  %v1115_v24 = vpop.permute.xlu1 %1114  ;;  %v2010_v34 = vld [vmem:[#allocation3 + $0x20] sm:$0xff] }
 0x200   : > { %1206 = vst.msk [vmem:[#allocation3 + $0x28] sm:$0xff] %vm1200_vm6, %v1115_v24  ;;  %v1131_v30 = vpop.permute.xlu0 %1130  ;;  %3982 = vmatmul.msk.f32.gmra.mxu0 %vm2047_vm11, %v2010_v34  ;;  %v2018_v51 = vld [vmem:[#allocation3 + $0x60] sm:$0xff] }
 0x201   : > { %1399 = vst.msk [vmem:[#allocation3 + $0x28] sm:$0xff] %vm1393_vm7, %v1308_v2  ;;  %3990 = vmatmul.msk.f32.vlgmr.msra.gmra.mxu2 %vm2047_vm11, %v2018_v51  ;;  %v1630_v42 = vld [vmem:[#allocation2 + $0xa9] sm:$0xff] }
 0x202   : > { %1214 = vst.msk [vmem:[#allocation3 + $0x68] sm:$0xff] %vm1200_vm6, %v1131_v30 }
 0x203   : > { %1407 = vst.msk [vmem:[#allocation3 + $0x68] sm:$0xff] %vm1393_vm7, %v1324_v26 }
 0x204   : > { %1345 = vrot.lane.b32.xlu2 %v4701_v41, %s4157_s21 }
 0x205   : > { %1329 = vrot.lane.b32.xlu1 %v1249_v44, %s4157_s21 }
 0x206   : > { %1700 = vrot.lane.b32.xlu0 %v5064_v39, %s4161_s8  ;;  %v1149_v48 = vpop.permute.xlu2 %1148 }
 0x207   : > { %1223 = vst.msk [vmem:[#allocation3 + $0xb0] sm:$0xff] %vm1200_vm6, %v1149_v48  ;;  %v1502_v54 = vpop.permute.xlu1 %1501 }
 0x208   : > { %1593 = vst.msk [vmem:[#allocation3 + $0x28] sm:$0xff] %vm1587_vm8, %v1502_v54  ;;  %v1695_v9 = vpop.permute.xlu0 %1694  ;;  %v5234_v54 = vld [vmem:[#allocation2 + $0x168] sm:$0xff] }
 0x209   : > { %1786 = vst.msk [vmem:[#allocation3 + $0x28] sm:$0xff] %vm1780_vm9, %v1695_v9 }
 0x20a   : > { %1979 = vst.msk [vmem:[#allocation3 + $0x28] sm:$0xff] %vm1973_vm10, %v1888_v45 }
 0x20c   : > { %1539 = vrot.lane.b32.xlu2 %v4713_v7, %s4159_s23  ;;  %v5088_v7 = vld [vmem:[#allocation2 + $0xf1] sm:$0xff] }
 0x20d   : > { %1523 = vrot.lane.b32.xlu1 %v1443_v27, %s4159_s23  ;;  %v1445_v27 = vld [vmem:[#allocation2 + $0x108] sm:$0xff] }
 0x20e   : > { %1893 = vrot.lane.b32.xlu0 %v5075_v59, %s4160_s29  ;;  %v1342_v41 = vpop.permute.xlu2 %1341 }
 0x20f   : > { %1416 = vst.msk [vmem:[#allocation3 + $0xb0] sm:$0xff] %vm1393_vm7, %v1342_v41  ;;  %v1518_v46 = vpop.permute.xlu1 %1517 }
 0x210   : > { %1601 = vst.msk [vmem:[#allocation3 + $0x68] sm:$0xff] %vm1587_vm8, %v1518_v46  ;;  %v1711_v8 = vpop.permute.xlu0 %1710 }
 0x211   : > { %1794 = vst.msk [vmem:[#allocation3 + $0x68] sm:$0xff] %vm1780_vm9, %v1711_v8  ;;  %v2011_v0 = vld [vmem:[#allocation3 + $0x28] sm:$0xff] }
 0x212   : > { %3983 = vmatmul.msk.f32.gmra.mxu0 %vm2047_vm11, %v2011_v0 }
 0x214   : > { %1732 = vrot.lane.b32.xlu2 %v5085_v5, %s4161_s8 }
 0x215   : > { %1716 = vrot.lane.b32.xlu1 %v5088_v7, %s4161_s8 }
 0x216   : > { %1909 = vrot.lane.b32.xlu0 %v5090_v56, %s4160_s29  ;;  %v1536_v32 = vpop.permute.xlu2 %1535 }
 0x217   : > { %1610 = vst.msk [vmem:[#allocation3 + $0xb0] sm:$0xff] %vm1587_vm8, %v1536_v32  ;;  %v1904_v14 = vpop.permute.xlu1 %1903 }
 0x218   : > { %1987 = vst.msk [vmem:[#allocation3 + $0x68] sm:$0xff] %vm1973_vm10, %v1904_v14  ;;  %v1310_v55 = vpop.permute.xlu0 %1309 }
 0x219   : > { %1400 = vst.msk [vmem:[#allocation3 + $0x30] sm:$0xff] %vm1393_vm7, %v1310_v55 }
 0x21c   : > { %1122 = vrot.lane.b32.xlu2 %v5008_v29, %s4158_s22 }
 0x21d   : > { %1925 = vrot.lane.b32.xlu1 %v5101_v38, %s4160_s29 }
 0x21e   : > { %1315 = vrot.lane.b32.xlu0 %v5019_v25, %s4157_s21  ;;  %v1729_v19 = vpop.permute.xlu2 %1728 }
 0x21f   : > { %1803 = vst.msk [vmem:[#allocation3 + $0xb0] sm:$0xff] %vm1780_vm9, %v1729_v19  ;;  %v1133_v3 = vpop.permute.xlu1 %1132  ;;  %v2019_v53 = vld [vmem:[#allocation3 + $0x68] sm:$0xff] }
 0x220   : > { %1215 = vst.msk [vmem:[#allocation3 + $0x70] sm:$0xff] %vm1200_vm6, %v1133_v3  ;;  %v1504_v57 = vpop.permute.xlu0 %1503  ;;  %3991 = vmatmul.msk.f32.gmra.mxu2 %vm2047_vm11, %v2019_v53 }
 0x221   : > { %1594 = vst.msk [vmem:[#allocation3 + $0x30] sm:$0xff] %vm1587_vm8, %v1504_v57 }
 0x224   : > { %1154 = vrot.lane.b32.xlu2 %v5030_v22, %s4158_s22 }
 0x225   : > { %1138 = vrot.lane.b32.xlu1 %v5033_v35, %s4158_s22 }
 0x226   : > { %1509 = vrot.lane.b32.xlu0 %v1436_v60, %s4159_s23  ;;  %v1119_v13 = vpop.permute.xlu2 %1118 }
 0x227   : > { %1208 = vst.msk [vmem:[#allocation3 + $0x38] sm:$0xff] %vm1200_vm6, %v1119_v13  ;;  %v1326_v58 = vpop.permute.xlu1 %1325 }
 0x228   : > { %1408 = vst.msk [vmem:[#allocation3 + $0x70] sm:$0xff] %vm1393_vm7, %v1326_v58  ;;  %v1697_v33 = vpop.permute.xlu0 %1696  ;;  %v5252_v58 = vld [vmem:[#allocation2 + $0x109] sm:$0xff] }
 0x229   : > { %1787 = vst.msk [vmem:[#allocation3 + $0x30] sm:$0xff] %vm1780_vm9, %v1697_v33 }
 0x22c   : > { %1347 = vrot.lane.b32.xlu2 %v1258_v63, %s4157_s21 }
 0x22d   : > { %1331 = vrot.lane.b32.xlu1 %v1250_v49, %s4157_s21 }
 0x22e   : > { %1702 = vrot.lane.b32.xlu0 %v5133_v4, %s4161_s8  ;;  %v1151_v62 = vpop.permute.xlu2 %1150 }
 0x22f   : > { %1224 = vst.msk [vmem:[#allocation3 + $0xb8] sm:$0xff] %vm1200_vm6, %v1151_v62  ;;  %v1520_v15 = vpop.permute.xlu1 %1519  ;;  %v5255_v62 = vld [vmem:[#allocation2 + $0x10a] sm:$0xff] }
 0x230   : > { %1602 = vst.msk [vmem:[#allocation3 + $0x70] sm:$0xff] %vm1587_vm8, %v1520_v15  ;;  %v1890_v11 = vpop.permute.xlu0 %1889 }
 0x231   : > { %1980 = vst.msk [vmem:[#allocation3 + $0x30] sm:$0xff] %vm1973_vm10, %v1890_v11 }
 0x234   : > { %1541 = vrot.lane.b32.xlu2 %v5150_v20, %s4159_s23 }
 0x235   : > { %1525 = vrot.lane.b32.xlu1 %v1444_v16, %s4159_s23 }
 0x236   : > { %1895 = vrot.lane.b32.xlu0 %v5152_v31, %s4160_s29  ;;  %v1344_v50 = vpop.permute.xlu2 %1343 }
 0x237   : > { %1417 = vst.msk [vmem:[#allocation3 + $0xb8] sm:$0xff] %vm1393_vm7, %v1344_v50  ;;  %v1713_v17 = vpop.permute.xlu1 %1712 }
 0x238   : > { %1795 = vst.msk [vmem:[#allocation3 + $0x70] sm:$0xff] %vm1780_vm9, %v1713_v17  ;;  %v1906_v23 = vpop.permute.xlu0 %1905  ;;  %v2012_v29 = vld [vmem:[#allocation3 + $0x30] sm:$0xff] }
 0x239   : > { %1988 = vst.msk [vmem:[#allocation3 + $0x70] sm:$0xff] %vm1973_vm10, %v1906_v23  ;;  %3984 = vmatmul.msk.f32.gmra.mxu0 %vm2047_vm11, %v2012_v29 }
 0x23c   : > { %1734 = vrot.lane.b32.xlu2 %v5163_v10, %s4161_s8 }
 0x23d   : > { %1718 = vrot.lane.b32.xlu1 %v5165_v18, %s4161_s8 }
 0x23e   : > { %1911 = vrot.lane.b32.xlu0 %v5167_v21, %s4160_s29  ;;  %v1538_v25 = vpop.permute.xlu2 %1537  ;;  %v2165_v22 = vpop.f32.mrf.mxu0 }
 0x23f   : > { %1611 = vst.msk [vmem:[#allocation3 + $0xb8] sm:$0xff] %vm1587_vm8, %v1538_v25  ;;  %v1922_v2 = vpop.permute.xlu1 %1921  ;;  %v2166_v24 = vadd.f32 %v5220_v37, %v2165_v22 }
 0x240   : > { %1996 = vst.msk [vmem:[#allocation3 + $0xb0] sm:$0xff] %vm1973_vm10, %v1922_v2  ;;  %v1312_v6 = vpop.permute.xlu0 %1311  ;;  %v2020_v40 = vld [vmem:[#allocation3 + $0x70] sm:$0xff] }
 0x241   : > { %1401 = vst.msk [vmem:[#allocation3 + $0x38] sm:$0xff] %vm1393_vm7, %v1312_v6  ;;  %3992 = vmatmul.msk.f32.gmra.mxu2 %vm2047_vm11, %v2020_v40  ;;  %v2261_v44 = vmax.f32 %v2166_v24, 0.0 }
 0x243   : > { %v2294_v41 = vsel %vm2293_vm12, %v2261_v44, -inf }
 0x244   : > { %1124 = vrot.lane.b32.xlu2 %v5064_v39, %s4158_s22 }
 0x245   : > { %1927 = vrot.lane.b32.xlu1 %v5179_v1, %s4160_s29 }
 0x246   : > { %1317 = vrot.lane.b32.xlu0 %v5075_v59, %s4157_s21  ;;  %v1731_v35 = vpop.permute.xlu2 %1730  ;;  %v1823_v59 = vld [vmem:[#allocation2 + $0xaa] sm:$0xff] }
 0x247   : > { %1804 = vst.msk [vmem:[#allocation3 + $0xb8] sm:$0xff] %vm1780_vm9, %v1731_v35  ;;  %v1135_v12 = vpop.permute.xlu1 %1134  ;;  %v2028_v26 = vld [vmem:[#allocation3 + $0xb0] sm:$0xff] }
 0x248   : > { %1216 = vst.msk [vmem:[#allocation3 + $0x78] sm:$0xff] %vm1200_vm6, %v1135_v12  ;;  %v1506_v52 = vpop.permute.xlu0 %1505  ;;  %4000 = vmatmul.msk.f32.vlgmr.msra.gmra.mxu3 %vm2047_vm11, %v2028_v26 }
 0x249   : > { %1595 = vst.msk [vmem:[#allocation3 + $0x38] sm:$0xff] %vm1587_vm8, %v1506_v52  ;;  %v5268_v52 = vld [vmem:[#allocation2 + $0x16a] sm:$0xff] }
 0x24c   : > { %1156 = vrot.lane.b32.xlu2 %v5085_v5, %s4158_s22 }
 0x24d   : > { %1140 = vrot.lane.b32.xlu1 %v5088_v7, %s4158_s22  ;;  %v2168_v47 = vpop.f32.mrf.mxu0 }
 0x24e   : > { %1511 = vrot.lane.b32.xlu0 %v1437_v61, %s4159_s23  ;;  %v1121_v43 = vpop.permute.xlu2 %1120  ;;  %v2169_v33 = vadd.f32 %v5220_v37, %v2168_v47 }
 0x24f   : > { %1209 = vst.msk [vmem:[#allocation3 + $0x40] sm:$0xff] %vm1200_vm6, %v1121_v43  ;;  %v1328_v45 = vpop.permute.xlu1 %1327 }
 0x250   : > { %1409 = vst.msk [vmem:[#allocation3 + $0x78] sm:$0xff] %vm1393_vm7, %v1328_v45  ;;  %v1699_v28 = vpop.permute.xlu0 %1698  ;;  %v2262_v23 = vmax.f32 %v2169_v33, 0.0 }
 0x251   : > { %1788 = vst.msk [vmem:[#allocation3 + $0x38] sm:$0xff] %vm1780_vm9, %v1699_v28 }
 0x252   : > { %v2297_v61 = vsel %vm2293_vm12, %v2262_v23, -inf }
 0x254   : > { %1349 = vrot.lane.b32.xlu2 %v5101_v38, %s4157_s21 }
 0x255   : > { %1333 = vrot.lane.b32.xlu1 %v5090_v56, %s4157_s21 }
 0x256   : > { %1704 = vrot.lane.b32.xlu0 %v1630_v42, %s4161_s8  ;;  %v1153_v34 = vpop.permute.xlu2 %1152 }
 0x257   : > { %1225 = vst.msk [vmem:[#allocation3 + $0xc0] sm:$0xff] %vm1200_vm6, %v1153_v34  ;;  %v1522_v30 = vpop.permute.xlu1 %1521  ;;  %v2171_v51 = vpop.f32.mrf.mxu0 }
 0x258   : > { %1603 = vst.msk [vmem:[#allocation3 + $0x78] sm:$0xff] %vm1587_vm8, %v1522_v30  ;;  %v2172_v39 = vadd.f32 %v5220_v37, %v2171_v51  ;;  %v1892_v48 = vpop.permute.xlu0 %1891 }
 0x259   : > { %1981 = vst.msk [vmem:[#allocation3 + $0x38] sm:$0xff] %vm1973_vm10, %v1892_v48 }
 0x25a   : > { %v2263_v9 = vmax.f32 %v2172_v39, 0.0 }
 0x25c   : > { %v2295_v46 = vsel %vm2293_vm12, %v2263_v9, -inf  ;;  %1543 = vrot.lane.b32.xlu2 %v5234_v54, %s4159_s23 }
 0x25d   : > { %v2296_v8 = vmax.f32 %v2294_v41, %v2295_v46  ;;  %1527 = vrot.lane.b32.xlu1 %v1445_v27, %s4159_s23 }
 0x25e   : > { %1897 = vrot.lane.b32.xlu0 %v1823_v59, %s4160_s29  ;;  %v1346_v0 = vpop.permute.xlu2 %1345 }
 0x25f   : > { %v2358_v5 = vrot.slane %v2296_v8, 2  ;;  %v2359_v7 = vrot.slane %v2296_v8, 4  ;;  %v2360_v56 = vrot.slane %v2296_v8, 6  ;;  %v2455_v32 = vsel %vm2454_vm13, %v2296_v8, -inf  ;;  %1418 = vst.msk [vmem:[#allocation3 + $0xc0] sm:$0xff] %vm1393_vm7, %v1346_v0  ;;  %v1715_v14 = vpop.permute.xlu1 %1714 }
 0x260   : > { %v2456_v55 = vrot.slane %v2455_v32, 4  ;;  %1796 = vst.msk [vmem:[#allocation3 + $0x78] sm:$0xff] %vm1780_vm9, %v1715_v14  ;;  %v1908_v38 = vpop.permute.xlu0 %1907  ;;  %v2013_v19 = vld [vmem:[#allocation3 + $0x38] sm:$0xff] }
 0x261   : > { %v2462_v3 = vsel %vm2454_vm13, %v2358_v5, -inf  ;;  %v2469_v53 = vsel %vm2454_vm13, %v2359_v7, -inf  ;;  %v2476_v57 = vsel %vm2454_vm13, %v2360_v56, -inf  ;;  %1989 = vst.msk [vmem:[#allocation3 + $0x78] sm:$0xff] %vm1973_vm10, %v1908_v38  ;;  %3985 = vmatmul.msk.f32.gmra.mxu0 %vm2047_vm11, %v2013_v19 }
 0x262   : > { %v2463_v60 = vrot.slane %v2462_v3, 4  ;;  %v2470_v13 = vrot.slane %v2469_v53, 4  ;;  %v2457_v63 = vmax.f32 %v2455_v32, %v2456_v55  ;;  %v2477_v49 = vrot.slane %v2476_v57, 4 }
 0x264   : > { %v2464_v15 = vmax.f32 %v2462_v3, %v2463_v60  ;;  %v2471_v11 = vmax.f32 %v2469_v53, %v2470_v13  ;;  %1736 = vrot.lane.b32.xlu2 %v5250_v36, %s4161_s8  ;;  %v2458_v29 = vrot.slane %v2457_v63, 2  ;;  %v2478_v25 = vmax.f32 %v2476_v57, %v2477_v49 }
 0x265   : > { %1720 = vrot.lane.b32.xlu1 %v5252_v58, %s4161_s8 }
 0x266   : > { %v2465_v16 = vrot.slane %v2464_v15, 2  ;;  %v2174_v50 = vpop.f32.mrf.mxu0  ;;  %1913 = vrot.lane.b32.xlu0 %v5255_v62, %s4160_s29  ;;  %v1540_v17 = vpop.permute.xlu2 %1539  ;;  %v2472_v40 = vrot.slane %v2471_v11, 2  ;;  %v2459_v47 = vmax.f32 %v2457_v63, %v2458_v29  ;;  %v2479_v43 = vrot.slane %v2478_v25, 2 }
 0x267   : > { %v2175_v2 = vadd.f32 %v5220_v37, %v2174_v50  ;;  %1612 = vst.msk [vmem:[#allocation3 + $0xc0] sm:$0xff] %vm1587_vm8, %v1540_v17  ;;  %v1924_v6 = vpop.permute.xlu1 %1923 }
 0x268   : > { %1997 = vst.msk [vmem:[#allocation3 + $0xb8] sm:$0xff] %vm1973_vm10, %v1924_v6  ;;  %v1314_v22 = vpop.permute.xlu0 %1313  ;;  %v2021_v35 = vld [vmem:[#allocation3 + $0x78] sm:$0xff]  ;;  %v2466_v12 = vmax.f32 %v2464_v15, %v2465_v16  ;;  %v2473_v28 = vmax.f32 %v2471_v11, %v2472_v40  ;;  %v2460_v39 = vrot.slane %v2459_v47, 1  ;;  %v2480_v48 = vmax.f32 %v2478_v25, %v2479_v43 }
 0x269   : > { %v2264_v26 = vmax.f32 %v2175_v2, 0.0  ;;  %1402 = vst.msk [vmem:[#allocation3 + $0x40] sm:$0xff] %vm1393_vm7, %v1314_v22  ;;  %3993 = vmatmul.msk.f32.gmra.mxu2 %vm2047_vm11, %v2021_v35  ;;  %v1438_v22 = vld [vmem:[#allocation2 + $0xb0] sm:$0xff] }
 0x26a   : > { %v2467_v24 = vrot.slane %v2466_v12, 1  ;;  %v2461_v55 = vmax.f32 %v2459_v47, %v2460_v39  ;;  %v2481_v60 = vrot.slane %v2480_v48, 1 }
 0x26b   : > { %v2298_v45 = vsel %vm2293_vm12, %v2264_v26, -inf }
 0x26c   : > { %v2299_v42 = vmax.f32 %v2297_v61, %v2298_v45  ;;  %1126 = vrot.lane.b32.xlu2 %v5133_v4, %s4158_s22  ;;  %v2474_v4 = vrot.slane %v2473_v28, 1 }
 0x26d   : > { %1929 = vrot.lane.b32.xlu1 %v5268_v52, %s4160_s29 }
 0x26e   : > { %v2361_v34 = vrot.slane %v2299_v42, 2  ;;  %v2362_v30 = vrot.slane %v2299_v42, 4  ;;  %v2363_v51 = vrot.slane %v2299_v42, 6  ;;  %965 = vrot.lane.b32.xlu0 %v5150_v20, %s4156_s20  ;;  %v1733_v44 = vpop.permute.xlu2 %1732  ;;  %v2483_v9 = vsel %vm2454_vm13, %v2299_v42, -inf }
 0x26f   : > { %1805 = vst.msk [vmem:[#allocation3 + $0xc0] sm:$0xff] %vm1780_vm9, %v1733_v44  ;;  %v1137_v27 = vpop.permute.xlu1 %1136  ;;  %v2029_v59 = vld [vmem:[#allocation3 + $0xb8] sm:$0xff]  ;;  %v2484_v41 = vrot.slane %v2483_v9, 4  ;;  %v2468_v20 = vmax.f32 %v2466_v12, %v2467_v24  ;;  %v2475_v3 = vmax.f32 %v2473_v28, %v2474_v4  ;;  %v5312_v44 = vld [vmem:[#allocation2 + $0x170] sm:$0xff] }
 0x270   : > { %v2490_v46 = vsel %vm2454_vm13, %v2361_v34, -inf  ;;  %v2497_v8 = vsel %vm2454_vm13, %v2362_v30, -inf  ;;  %1217 = vst.msk [vmem:[#allocation3 + $0x80] sm:$0xff] %vm1200_vm6, %v1137_v27  ;;  %v1508_v0 = vpop.permute.xlu0 %1507  ;;  %4001 = vmatmul.msk.f32.gmra.mxu3 %vm2047_vm11, %v2029_v59  ;;  %v2504_v56 = vsel %vm2454_vm13, %v2363_v51, -inf  ;;  %v1446_v30 = vld [vmem:[#allocation2 + $0x110] sm:$0xff] }
 0x271   : > { %v2491_v5 = vrot.slane %v2490_v46, 4  ;;  %v2498_v7 = vrot.slane %v2497_v8, 4  ;;  %1596 = vst.msk [vmem:[#allocation3 + $0x40] sm:$0xff] %vm1587_vm8, %v1508_v0  ;;  %v2485_v32 = vmax.f32 %v2483_v9, %v2484_v41  ;;  %v2505_v14 = vrot.slane %v2504_v56, 4  ;;  %v1631_v51 = vld [vmem:[#allocation2 + $0xb1] sm:$0xff] }
 0x272   : > { %v2988_v13 = vsel %vm2987_vm14, %v2468_v20, %v2461_v55  ;;  %v5324_v59 = vld [vmem:[#allocation2 + $0x111] sm:$0xff] }
 0x273   : > { %v2492_v38 = vmax.f32 %v2490_v46, %v2491_v5  ;;  %v2499_v19 = vmax.f32 %v2497_v8, %v2498_v7  ;;  %v2486_v53 = vrot.slane %v2485_v32, 2  ;;  %v2506_v57 = vmax.f32 %v2504_v56, %v2505_v14  ;;  %v1824_v4 = vld [vmem:[#allocation2 + $0xb2] sm:$0xff] }
 0x274   : > { %1142 = vrot.lane.b32.xlu2 %v5165_v18, %s4158_s22  ;;  %v2990_v18 = vsel %vm6303_vm15, %v2475_v3, %v2988_v13  ;;  %vm2999_vm15 = vcmask 1047559   ;;  %v5329_v41 = vld [vmem:[#allocation2 + $0x171] sm:$0xff] }
 0x275   : > { %v2493_v33 = vrot.slane %v2492_v38, 2  ;;  %v2500_v63 = vrot.slane %v2499_v19, 2  ;;  %1319 = vrot.lane.b32.xlu1 %v5152_v31, %s4157_s21  ;;  %v2487_v49 = vmax.f32 %v2485_v32, %v2486_v53  ;;  %v2507_v15 = vrot.slane %v2506_v57, 2  ;;  %v307_v46 = vld [vmem:[%s4325_s18 + $0xf8] sm:$0xff]  ;;  %v1447_v53 = vld [vmem:[#allocation2 + $0x120] sm:$0xff] }
 0x276   : > { %1158 = vrot.lane.b32.xlu0 %v5163_v10, %s4158_s22  ;;  %v1123_v11 = vpop.permute.xlu2 %1122  ;;  %v2482_v31 = vmax.f32 %v2480_v48, %v2481_v60  ;;  %396 = vst.msk [vmem:[#allocation2 + $0x189] sm:$0xff] %vm308_vm0, %v307_v46  ;;  %v5342_v7 = vld [vmem:[#allocation2 + $0x172] sm:$0xff] }
 0x277   : > { %v2494_v16 = vmax.f32 %v2492_v38, %v2493_v33  ;;  %v2501_v50 = vmax.f32 %v2499_v19, %v2500_v63  ;;  %1210 = vst.msk [vmem:[#allocation3 + $0x48] sm:$0xff] %vm1200_vm6, %v1123_v11  ;;  %v1330_v17 = vpop.permute.xlu1 %1329  ;;  %v2488_v23 = vrot.slane %v2487_v49, 1  ;;  %v2508_v29 = vmax.f32 %v2506_v57, %v2507_v15  ;;  %v5344_v56 = vld [vmem:[#allocation2 + $0x112] sm:$0xff]  ;;  %v1640_v33 = vld [vmem:[#allocation2 + $0x121] sm:$0xff] }
 0x278   : > { %1410 = vst.msk [vmem:[#allocation3 + $0x80] sm:$0xff] %vm1393_vm7, %v1330_v17  ;;  %v1701_v25 = vpop.permute.xlu0 %1700  ;;  %v2992_v35 = vsel %vm2991_vm1, %v2482_v31, %v2990_v18  ;;  %v1833_v63 = vld [vmem:[#allocation2 + $0x122] sm:$0xff] }
 0x279   : > { %v2495_v2 = vrot.slane %v2494_v16, 1  ;;  %v2502_v6 = vrot.slane %v2501_v50, 1  ;;  %1789 = vst.msk [vmem:[#allocation3 + $0x40] sm:$0xff] %vm1780_vm9, %v1701_v25  ;;  %v2489_v10 = vmax.f32 %v2487_v49, %v2488_v23  ;;  %v2509_v40 = vrot.slane %v2508_v29, 1 }
 0x27b   : > { %v2496_v12 = vmax.f32 %v2494_v16, %v2495_v2  ;;  %v2503_v26 = vmax.f32 %v2501_v50, %v2502_v6  ;;  %v2994_v61 = vsel %vm2993_vm2, %v2489_v10, %v2992_v35  ;;  %v2510_v47 = vmax.f32 %v2508_v29, %v2509_v40 }
 0x27c   : > { %1335 = vrot.lane.b32.xlu2 %v5167_v21, %s4157_s21  ;;  %v306_v21 = vld [vmem:[%s4325_s18 + $0xf0] sm:$0xff]  ;;  %s4162_s18 = smov 40  }
 0x27d   : > { %v2996_v43 = vsel %vm2995_vm3, %v2496_v12, %v2994_v61  ;;  %1513 = vrot.lane.b32.xlu1 %v1438_v22, %s4159_s23  ;;  %395 = vst.msk [vmem:[#allocation2 + $0x181] sm:$0xff] %vm308_vm0, %v306_v21  ;;  %vm6313_vm0 = vcmask 1042434  }
 0x27e   : > { %v2998_v45 = vsel %vm2997_vm5, %v2503_v26, %v2996_v43  ;;  %1351 = vrot.lane.b32.xlu0 %v5179_v1, %s4157_s21  ;;  %v1155_v28 = vpop.permute.xlu2 %1154 }
 0x27f   : > { %v3000_v42 = vsel %vm2999_vm15, %v2510_v47, %v2998_v45  ;;  %1226 = vst.msk [vmem:[#allocation3 + $0xc8] sm:$0xff] %vm1200_vm6, %v1155_v28  ;;  %v1524_v24 = vpop.permute.xlu1 %1523  ;;  %v1448_v47 = vld [vmem:[#allocation2 + $0x128] sm:$0xff] }
 0x280   : > { %3059 = vst.msk [vmem:[#allocation4 + $0x11] sm:$0xff] %vm2293_vm12, %v3000_v42  ;;  %v1894_v34 = vpop.permute.xlu0 %1893  ;;  %v1641_v28 = vld [vmem:[#allocation2 + $0x129] sm:$0xff] }
 0x281   : > { %1604 = vst.msk [vmem:[#allocation3 + $0x80] sm:$0xff] %vm1587_vm8, %v1524_v24 }
 0x282   : > { %1982 = vst.msk [vmem:[#allocation3 + $0x40] sm:$0xff] %vm1973_vm10, %v1894_v34 }
 0x284   : > { %1529 = vrot.lane.b32.xlu2 %v1446_v30, %s4159_s23  ;;  %v5365_v57 = vld [vmem:[#allocation2 + $0x180] sm:$0xff]  ;;  %v2201_v31 = vpop.f32.mrf.mxu2  ;;  %v5411_v61 = vld [vmem:[#allocation2 + $0x188] sm:$0xff] }
 0x285   : > { %1706 = vrot.lane.b32.xlu1 %v1631_v51, %s4161_s8  ;;  %v5375_v13 = vld [vmem:[#allocation2 + $0x181] sm:$0xff]  ;;  %v1834_v51 = vld [vmem:[#allocation2 + $0x12a] sm:$0xff] }
 0x286   : > { %1545 = vrot.lane.b32.xlu0 %v5312_v44, %s4159_s23  ;;  %v1348_v1 = vpop.permute.xlu2 %1347  ;;  %v5387_v50 = vld [vmem:[#allocation2 + $0x182] sm:$0xff] }
 0x287   : > { %1419 = vst.msk [vmem:[#allocation3 + $0xc8] sm:$0xff] %vm1393_vm7, %v1348_v1  ;;  %v1717_v39 = vpop.permute.xlu1 %1716  ;;  %v5320_v48 = vld [vmem:[#allocation4 + $0x10] sm:$0xff]  ;;  %v5424_v1 = vld [vmem:[#allocation2 + $0x189] sm:$0xff] }
 0x288   : > { %1797 = vst.msk [vmem:[#allocation3 + $0x80] sm:$0xff] %vm1780_vm9, %v1717_v39  ;;  %v1910_v9 = vpop.permute.xlu0 %1909 }
 0x289   : > { %1990 = vst.msk [vmem:[#allocation3 + $0x80] sm:$0xff] %vm1973_vm10, %v1910_v9  ;;  %v2014_v27 = vld [vmem:[#allocation3 + $0x40] sm:$0xff] }
 0x28a   : > { %3986 = vmatmul.msk.f32.gmra.mxu0 %vm2047_vm11, %v2014_v27  ;;  %3076 = vst.msk [vmem:[#allocation5 + $0x8] sm:$0xff] %vm2293_vm12, %v5320_v48  ;;  %v5426_v9 = vld [vmem:[#allocation2 + $0x18a] sm:$0xff] }
 0x28c   : > { %1722 = vrot.lane.b32.xlu2 %v5324_v59, %s4161_s8 }
 0x28d   : > { %1899 = vrot.lane.b32.xlu1 %v1824_v4, %s4160_s29 }
 0x28e   : > { %1738 = vrot.lane.b32.xlu0 %v5329_v41, %s4161_s8  ;;  %v1542_v8 = vpop.permute.xlu2 %1541 }
 0x28f   : > { %1613 = vst.msk [vmem:[#allocation3 + $0xc8] sm:$0xff] %vm1587_vm8, %v1542_v8  ;;  %v1926_v0 = vpop.permute.xlu1 %1925  ;;  %v2202_v8 = vadd.f32 %v5220_v37, %v2201_v31 }
 0x290   : > { %1998 = vst.msk [vmem:[#allocation3 + $0xc0] sm:$0xff] %vm1973_vm10, %v1926_v0  ;;  %v1316_v20 = vpop.permute.xlu0 %1315  ;;  %v2022_v5 = vld [vmem:[#allocation3 + $0x80] sm:$0xff] }
 0x291   : > { %1403 = vst.msk [vmem:[#allocation3 + $0x48] sm:$0xff] %vm1393_vm7, %v1316_v20  ;;  %3994 = vmatmul.msk.f32.gmra.mxu2 %vm2047_vm11, %v2022_v5 }
 0x294   : > { %1931 = vrot.lane.b32.xlu2 %v5342_v7, %s4160_s29 }
 0x295   : > { %1915 = vrot.lane.b32.xlu1 %v5344_v56, %s4160_s29 }
 0x296   : > { %967 = vrot.lane.b32.xlu0 %v5234_v54, %s4156_s20  ;;  %v1735_v32 = vpop.permute.xlu2 %1734 }
 0x297   : > { %1806 = vst.msk [vmem:[#allocation3 + $0xc8] sm:$0xff] %vm1780_vm9, %v1735_v32  ;;  %v1139_v14 = vpop.permute.xlu1 %1138  ;;  %v2030_v55 = vld [vmem:[#allocation3 + $0xc0] sm:$0xff] }
 0x298   : > { %1218 = vst.msk [vmem:[#allocation3 + $0x88] sm:$0xff] %vm1200_vm6, %v1139_v14  ;;  %v1510_v38 = vpop.permute.xlu0 %1509  ;;  %4002 = vmatmul.msk.f32.gmra.mxu3 %vm2047_vm11, %v2030_v55  ;;  %v2273_v55 = vmax.f32 %v2202_v8, 0.0 }
 0x299   : > { %1597 = vst.msk [vmem:[#allocation3 + $0x48] sm:$0xff] %vm1587_vm8, %v1510_v38 }
 0x29c   : > { %1160 = vrot.lane.b32.xlu2 %v5250_v36, %s4158_s22 }
 0x29d   : > { %1144 = vrot.lane.b32.xlu1 %v5252_v58, %s4158_s22 }
 0x29e   : > { %1337 = vrot.lane.b32.xlu0 %v5255_v62, %s4157_s21  ;;  %v1125_v54 = vpop.permute.xlu2 %1124  ;;  %v2177_v62 = vpop.f32.mrf.mxu0 }
 0x29f   : > { %1211 = vst.msk [vmem:[#allocation3 + $0x50] sm:$0xff] %vm1200_vm6, %v1125_v54  ;;  %v1332_v19 = vpop.permute.xlu1 %1331  ;;  %v2178_v6 = vadd.f32 %v5220_v37, %v2177_v62  ;;  %v2312_v62 = vsel %vm2293_vm12, %v2273_v55, -inf }
 0x2a0   : > { %1411 = vst.msk [vmem:[#allocation3 + $0x88] sm:$0xff] %vm1393_vm7, %v1332_v19  ;;  %v1703_v3 = vpop.permute.xlu0 %1702 }
 0x2a1   : > { %1790 = vst.msk [vmem:[#allocation3 + $0x48] sm:$0xff] %vm1780_vm9, %v1703_v3  ;;  %v2265_v26 = vmax.f32 %v2178_v6, 0.0 }
 0x2a3   : > { %v5413_v43 = vpop.f32.mrf.mxu2  ;;  %v2300_v42 = vsel %vm2293_vm12, %v2265_v26, -inf }
 0x2a4   : > { %1531 = vrot.lane.b32.xlu2 %v1447_v53, %s4159_s23 }
 0x2a5   : > { %1353 = vrot.lane.b32.xlu1 %v5268_v52, %s4157_s21 }
 0x2a6   : > { %1547 = vrot.lane.b32.xlu0 %v5365_v57, %s4159_s23  ;;  %v1157_v36 = vpop.permute.xlu2 %1156  ;;  %v5382_v15 = vpop.f32.mrf.mxu0 }
 0x2a7   : > { %1227 = vst.msk [vmem:[#allocation3 + $0xd0] sm:$0xff] %vm1200_vm6, %v1157_v36  ;;  %v1526_v58 = vpop.permute.xlu1 %1525 }
 0x2a8   : > { %1605 = vst.msk [vmem:[#allocation3 + $0x88] sm:$0xff] %vm1587_vm8, %v1526_v58  ;;  %v1896_v60 = vpop.permute.xlu0 %1895 }
 0x2a9   : > { %1983 = vst.msk [vmem:[#allocation3 + $0x48] sm:$0xff] %vm1973_vm10, %v1896_v60 }
 0x2ac   : > { %1740 = vrot.lane.b32.xlu2 %v5375_v13, %s4161_s8 }
 0x2ad   : > { %1724 = vrot.lane.b32.xlu1 %v1640_v33, %s4161_s8 }
 0x2ae   : > { %1917 = vrot.lane.b32.xlu0 %v1833_v63, %s4160_s29  ;;  %v1350_v52 = vpop.permute.xlu2 %1349 }
 0x2af   : > { %1420 = vst.msk [vmem:[#allocation3 + $0xd0] sm:$0xff] %vm1393_vm7, %v1350_v52  ;;  %v1719_v49 = vpop.permute.xlu1 %1718 }
 0x2b0   : > { %1798 = vst.msk [vmem:[#allocation3 + $0x88] sm:$0xff] %vm1780_vm9, %v1719_v49  ;;  %v1912_v11 = vpop.permute.xlu0 %1911  ;;  %v2015_v16 = vld [vmem:[#allocation3 + $0x48] sm:$0xff] }
 0x2b1   : > { %1991 = vst.msk [vmem:[#allocation3 + $0x88] sm:$0xff] %vm1973_vm10, %v1912_v11  ;;  %3987 = vmatmul.msk.f32.gmra.mxu0 %vm2047_vm11, %v2015_v16  ;;  %v1650_v49 = vld [vmem:[#allocation2 + $0x199] sm:$0xff]  ;;  %v2181_v11 = vadd.f32 %v5220_v37, %v5382_v15 }
 0x2b2   : > { %v1457_v16 = vld [vmem:[#allocation2 + $0x198] sm:$0xff] }
 0x2b3   : > { %v2266_v31 = vmax.f32 %v2181_v11, 0.0 }
 0x2b4   : > { %969 = vrot.lane.b32.xlu2 %v5312_v44, %s4156_s20 }
 0x2b5   : > { %1933 = vrot.lane.b32.xlu1 %v5387_v50, %s4160_s29 }
 0x2b6   : > { %1146 = vrot.lane.b32.xlu0 %v5324_v59, %s4158_s22  ;;  %v1544_v17 = vpop.permute.xlu2 %1543  ;;  %v2183_v23 = vpop.f32.mrf.mxu0 }
 0x2b7   : > { %1614 = vst.msk [vmem:[#allocation3 + $0xd0] sm:$0xff] %vm1587_vm8, %v1544_v17  ;;  %v1928_v18 = vpop.permute.xlu1 %1927  ;;  %v2184_v2 = vadd.f32 %v5220_v37, %v2183_v23  ;;  %v1843_v17 = vld [vmem:[#allocation2 + $0x19a] sm:$0xff] }
 0x2b8   : > { %1999 = vst.msk [vmem:[#allocation3 + $0xc8] sm:$0xff] %vm1973_vm10, %v1928_v18  ;;  %v1318_v29 = vpop.permute.xlu0 %1317  ;;  %v2023_v25 = vld [vmem:[#allocation3 + $0x88] sm:$0xff] }
 0x2b9   : > { %1404 = vst.msk [vmem:[#allocation3 + $0x50] sm:$0xff] %vm1393_vm7, %v1318_v29  ;;  %3995 = vmatmul.msk.f32.gmra.mxu2 %vm2047_vm11, %v2023_v25  ;;  %v2267_v40 = vmax.f32 %v2184_v2, 0.0 }
 0x2bb   : > { %v2301_v45 = vsel %vm2293_vm12, %v2267_v40, -inf }
 0x2bc   : > { %1339 = vrot.lane.b32.xlu2 %v5344_v56, %s4157_s21  ;;  %v2302_v24 = vmax.f32 %v2300_v42, %v2301_v45 }
 0x2bd   : > { %1162 = vrot.lane.b32.xlu1 %v5329_v41, %s4158_s22 }
 0x2be   : > { %1355 = vrot.lane.b32.xlu0 %v5342_v7, %s4157_s21  ;;  %v1737_v10 = vpop.permute.xlu2 %1736  ;;  %v2364_v44 = vrot.slane %v2302_v24, 2  ;;  %v2365_v27 = vrot.slane %v2302_v24, 4  ;;  %v2511_v0 = vsel %vm2454_vm13, %v2302_v24, -inf  ;;  %v2366_v5 = vrot.slane %v2302_v24, 6 }
 0x2bf   : > { %1807 = vst.msk [vmem:[#allocation3 + $0xd0] sm:$0xff] %vm1780_vm9, %v1737_v10  ;;  %v1141_v22 = vpop.permute.xlu1 %1140  ;;  %v2031_v35 = vld [vmem:[#allocation3 + $0xc8] sm:$0xff]  ;;  %v2512_v14 = vrot.slane %v2511_v0, 4 }
 0x2c0   : > { %1219 = vst.msk [vmem:[#allocation3 + $0x90] sm:$0xff] %vm1200_vm6, %v1141_v22  ;;  %v1512_v12 = vpop.permute.xlu0 %1511  ;;  %4003 = vmatmul.msk.f32.gmra.mxu3 %vm2047_vm11, %v2031_v35  ;;  %v2518_v59 = vsel %vm2454_vm13, %v2364_v44, -inf  ;;  %v2525_v56 = vsel %vm2454_vm13, %v2365_v27, -inf  ;;  %v2532_v19 = vsel %vm2454_vm13, %v2366_v5, -inf  ;;  %v5471_v27 = vadd.f32 %v5220_v37, %v5413_v43 }
 0x2c1   : > { %1598 = vst.msk [vmem:[#allocation3 + $0x50] sm:$0xff] %vm1587_vm8, %v1512_v12  ;;  %v2519_v7 = vrot.slane %v2518_v59, 4  ;;  %v2526_v54 = vrot.slane %v2525_v56, 4  ;;  %v2513_v36 = vmax.f32 %v2511_v0, %v2512_v14  ;;  %v2533_v60 = vrot.slane %v2532_v19, 4 }
 0x2c3   : > { %v2520_v38 = vmax.f32 %v2518_v59, %v2519_v7  ;;  %v2527_v52 = vmax.f32 %v2525_v56, %v2526_v54  ;;  %v2534_v18 = vmax.f32 %v2532_v19, %v2533_v60 }
 0x2c4   : > { %1549 = vrot.lane.b32.xlu2 %v5411_v61, %s4159_s23  ;;  %v2207_v39 = vpop.f32.mrf.mxu2 }
 0x2c5   : > { %1533 = vrot.lane.b32.xlu1 %v1448_v47, %s4159_s23  ;;  %v2208_v4 = vadd.f32 %v5220_v37, %v2207_v39  ;;  %v2521_v63 = vrot.slane %v2520_v38, 2  ;;  %v2528_v29 = vrot.slane %v2527_v52, 2  ;;  %v2535_v35 = vrot.slane %v2534_v18, 2 }
 0x2c6   : > { %1726 = vrot.lane.b32.xlu0 %v1641_v28, %s4161_s8  ;;  %v1127_v34 = vpop.permute.xlu2 %1126 }
 0x2c7   : > { %1212 = vst.msk [vmem:[#allocation3 + $0x58] sm:$0xff] %vm1200_vm6, %v1127_v34  ;;  %v1334_v21 = vpop.permute.xlu1 %1333  ;;  %v2275_v32 = vmax.f32 %v2208_v4, 0.0  ;;  %v2522_v23 = vmax.f32 %v2520_v38, %v2521_v63  ;;  %v2529_v28 = vmax.f32 %v2527_v52, %v2528_v29  ;;  %v2303_v34 = vsel %vm2293_vm12, %v2266_v31, -inf }
 0x2c8   : > { %1412 = vst.msk [vmem:[#allocation3 + $0x90] sm:$0xff] %vm1393_vm7, %v1334_v21  ;;  %v1705_v30 = vpop.permute.xlu0 %1704  ;;  %v2536_v8 = vmax.f32 %v2534_v18, %v2535_v35  ;;  %v1844_v18 = vld [vmem:[#allocation2 + $0x1a2] sm:$0xff] }
 0x2c9   : > { %1791 = vst.msk [vmem:[#allocation3 + $0x50] sm:$0xff] %vm1780_vm9, %v1705_v30  ;;  %v2313_v3 = vsel %vm2293_vm12, %v2275_v32, -inf  ;;  %v2523_v45 = vrot.slane %v2522_v23, 1 }
 0x2ca   : > { %v2537_v29 = vrot.slane %v2536_v8, 1 }
 0x2cc   : > { %1919 = vrot.lane.b32.xlu2 %v1834_v51, %s4160_s29 }
 0x2cd   : > { %1742 = vrot.lane.b32.xlu1 %v5424_v1, %s4161_s8 }
 0x2ce   : > { %1935 = vrot.lane.b32.xlu0 %v5426_v9, %s4160_s29  ;;  %v1143_v41 = vpop.permute.xlu2 %1142 }
 0x2cf   : > { %1220 = vst.msk [vmem:[#allocation3 + $0x98] sm:$0xff] %vm1200_vm6, %v1143_v41  ;;  %v1528_v46 = vpop.permute.xlu1 %1527  ;;  %v2524_v41 = vmax.f32 %v2522_v23, %v2523_v45  ;;  %v2274_v23 = vmax.f32 %v5471_v27, 0.0 }
 0x2d0   : > { %1606 = vst.msk [vmem:[#allocation3 + $0x90] sm:$0xff] %vm1587_vm8, %v1528_v46  ;;  %v1898_v20 = vpop.permute.xlu0 %1897  ;;  %v2530_v46 = vrot.slane %v2529_v28, 1 }
 0x2d1   : > { %1984 = vst.msk [vmem:[#allocation3 + $0x50] sm:$0xff] %vm1973_vm10, %v1898_v20 }
 0x2d4   : > { %1164 = vrot.lane.b32.xlu2 %v5375_v13, %s4158_s22 }
 0x2d5   : > { %971 = vrot.lane.b32.xlu1 %v5365_v57, %s4156_s20  ;;  %v2314_v57 = vmax.f32 %v2312_v62, %v2313_v3 }
 0x2d6   : > { %1357 = vrot.lane.b32.xlu0 %v5387_v50, %s4157_s21  ;;  %v1336_v53 = vpop.permute.xlu2 %1335  ;;  %v2514_v50 = vrot.slane %v2513_v36, 2 }
 0x2d7   : > { %1413 = vst.msk [vmem:[#allocation3 + $0x98] sm:$0xff] %vm1393_vm7, %v1336_v53  ;;  %v1721_v58 = vpop.permute.xlu1 %1720  ;;  %v2376_v25 = vrot.slane %v2314_v57, 2  ;;  %v2377_v2 = vrot.slane %v2314_v57, 4  ;;  %v2623_v12 = vsel %vm2454_vm13, %v2314_v57, -inf  ;;  %v2378_v51 = vrot.slane %v2314_v57, 6 }
 0x2d8   : > { %1799 = vst.msk [vmem:[#allocation3 + $0x90] sm:$0xff] %vm1780_vm9, %v1721_v58  ;;  %v1914_v13 = vpop.permute.xlu0 %1913  ;;  %v2016_v33 = vld [vmem:[#allocation3 + $0x50] sm:$0xff]  ;;  %v2515_v40 = vmax.f32 %v2513_v36, %v2514_v50  ;;  %v2624_v44 = vrot.slane %v2623_v12, 4 }
 0x2d9   : > { %1992 = vst.msk [vmem:[#allocation3 + $0x90] sm:$0xff] %vm1973_vm10, %v1914_v13  ;;  %3988 = vmatmul.msk.f32.gmra.mxu0 %vm2047_vm11, %v2016_v33  ;;  %v2630_v42 = vsel %vm2454_vm13, %v2376_v25, -inf  ;;  %v2637_v21 = vsel %vm2454_vm13, %v2377_v2, -inf  ;;  %v1651_v13 = vld [vmem:[#allocation2 + $0x1a1] sm:$0xff]  ;;  %v2531_v33 = vmax.f32 %v2529_v28, %v2530_v46  ;;  %v2315_v46 = vsel %vm2293_vm12, %v2274_v23, -inf }
 0x2da   : > { %v2516_v30 = vrot.slane %v2515_v40, 1  ;;  %v2631_v59 = vrot.slane %v2630_v42, 4  ;;  %v2638_v0 = vrot.slane %v2637_v21, 4  ;;  %v2625_v14 = vmax.f32 %v2623_v12, %v2624_v44 }
 0x2dc   : > { %1744 = vrot.lane.b32.xlu2 %v1650_v49, %s4161_s8  ;;  %v2517_v32 = vmax.f32 %v2515_v40, %v2516_v30  ;;  %v2632_v19 = vmax.f32 %v2630_v42, %v2631_v59  ;;  %v2639_v52 = vmax.f32 %v2637_v21, %v2638_v0  ;;  %v1458_v49 = vld [vmem:[#allocation2 + $0x1a0] sm:$0xff]  ;;  %v2626_v25 = vrot.slane %v2625_v14, 2 }
 0x2dd   : > { %1551 = vrot.lane.b32.xlu1 %v1457_v16, %s4159_s23  ;;  %v2538_v21 = vmax.f32 %v2536_v8, %v2537_v29 }
 0x2de   : > { %1937 = vrot.lane.b32.xlu0 %v1843_v17, %s4160_s29  ;;  %v1530_v6 = vpop.permute.xlu2 %1529  ;;  %v2186_v10 = vpop.f32.mrf.mxu0  ;;  %v3001_v63 = vsel %vm2987_vm14, %v2524_v41, %v2517_v32  ;;  %v2633_v31 = vrot.slane %v2632_v19, 2  ;;  %v2640_v35 = vrot.slane %v2639_v52, 2  ;;  %v2627_v30 = vmax.f32 %v2625_v14, %v2626_v25  ;;  %v3132_v41 = vld [vmem:[#allocation4 + $0x2] sm:$0xff] }
 0x2df   : > { %1607 = vst.msk [vmem:[#allocation3 + $0x98] sm:$0xff] %vm1587_vm8, %v1530_v6  ;;  %v1930_v15 = vpop.permute.xlu1 %1929  ;;  %v2187_v22 = vadd.f32 %v5220_v37, %v2186_v10 }
 0x2e0   : > { %2000 = vst.msk [vmem:[#allocation3 + $0xd0] sm:$0xff] %vm1973_vm10, %v1930_v15  ;;  %v966_v26 = vpop.permute.xlu0 %965  ;;  %v2024_v47 = vld [vmem:[#allocation3 + $0x90] sm:$0xff] }
 0x2e1   : > { %v2268_v24 = vmax.f32 %v2187_v22, 0.0  ;;  %1035 = vst.msk [vmem:[#allocation3 + $0xd8] sm:$0xff] %vm1007_vm4, %v966_v26  ;;  %3996 = vmatmul.msk.f32.gmra.mxu2 %vm2047_vm11, %v2024_v47  ;;  %v3002_v22 = vsel %vm6313_vm0, %v2531_v33, %v3001_v63 }
 0x2e2   : > { %v3003_v0 = vsel %vm2991_vm1, %v2538_v21, %v3002_v22 }
 0x2e3   : > { %v2304_v39 = vsel %vm2293_vm12, %v2268_v24, -inf }
 0x2e4   : > { %v2305_v4 = vmax.f32 %v2303_v34, %v2304_v39  ;;  %1166 = vrot.lane.b32.xlu2 %v5424_v1, %s4158_s22  ;;  %v2644_v1 = vsel %vm2454_vm13, %v2378_v51, -inf  ;;  %v2634_v51 = vmax.f32 %v2632_v19, %v2633_v31  ;;  %v3279_v31 = vld [vmem:[#allocation4 + $0x12] sm:$0xff] }
 0x2e5   : > { %973 = vrot.lane.b32.xlu1 %v5411_v61, %s4156_s20  ;;  %v2645_v57 = vrot.slane %v2644_v1, 4  ;;  %s4163_s20 = smov 48  }
 0x2e6   : > { %v2367_v20 = vrot.slane %v2305_v4, 2  ;;  %v2368_v5 = vrot.slane %v2305_v4, 4  ;;  %v2369_v7 = vrot.slane %v2305_v4, 6  ;;  %v2539_v56 = vsel %vm2454_vm13, %v2305_v4, -inf  ;;  %1359 = vrot.lane.b32.xlu0 %v5426_v9, %s4157_s21  ;;  %v1723_v43 = vpop.permute.xlu2 %1722  ;;  %s4164_s21 = smov 64  }
 0x2e7   : > { %v2540_v55 = vrot.slane %v2539_v56, 4  ;;  %1800 = vst.msk [vmem:[#allocation3 + $0x98] sm:$0xff] %vm1780_vm9, %v1723_v43  ;;  %v1320_v38 = vpop.permute.xlu1 %1319  ;;  %v2032_v54 = vld [vmem:[#allocation3 + $0xd0] sm:$0xff]  ;;  %v2646_v12 = vmax.f32 %v2644_v1, %v2645_v57  ;;  %v2628_v1 = vrot.slane %v2627_v30, 1 }
 0x2e8   : > { %v2546_v61 = vsel %vm2454_vm13, %v2367_v20, -inf  ;;  %v2553_v3 = vsel %vm2454_vm13, %v2368_v5, -inf  ;;  %v2560_v53 = vsel %vm2454_vm13, %v2369_v7, -inf  ;;  %1405 = vst.msk [vmem:[#allocation3 + $0x58] sm:$0xff] %vm1393_vm7, %v1320_v38  ;;  %4004 = vmatmul.msk.f32.gmra.mxu3 %vm2047_vm11, %v2032_v54  ;;  %v1159_v9 = vpop.permute.xlu0 %1158  ;;  %v3083_v5 = vld [vmem:[#allocation4 + $0x1] sm:$0xff]  ;;  %v2641_v7 = vmax.f32 %v2639_v52, %v2640_v35 }
 0x2e9   : > { %v2541_v36 = vmax.f32 %v2539_v56, %v2540_v55  ;;  %v2547_v58 = vrot.slane %v2546_v61, 4  ;;  %v2554_v62 = vrot.slane %v2553_v3, 4  ;;  %v2561_v60 = vrot.slane %v2560_v53, 4  ;;  %1228 = vst.msk [vmem:[#allocation3 + $0xd8] sm:$0xff] %vm1200_vm6, %v1159_v9 }
 0x2ea   : > { %v2647_v20 = vrot.slane %v2646_v12, 2  ;;  %v2635_v55 = vrot.slane %v2634_v51, 1 }
 0x2eb   : > { %v2542_v11 = vrot.slane %v2541_v36, 2  ;;  %v2548_v16 = vmax.f32 %v2546_v61, %v2547_v58  ;;  %v2555_v50 = vmax.f32 %v2553_v3, %v2554_v62  ;;  %v2562_v17 = vmax.f32 %v2560_v53, %v2561_v60 }
 0x2ec   : > { %1746 = vrot.lane.b32.xlu2 %v1651_v13, %s4161_s8  ;;  %v2210_v2 = vpop.f32.mrf.mxu2  ;;  %v2648_v58 = vmax.f32 %v2646_v12, %v2647_v20  ;;  %s4165_s8 = smov 56  }
 0x2ed   : > { %v2543_v6 = vmax.f32 %v2541_v36, %v2542_v11  ;;  %v2549_v10 = vrot.slane %v2548_v16, 2  ;;  %v2556_v40 = vrot.slane %v2555_v50, 2  ;;  %v2563_v15 = vrot.slane %v2562_v17, 2  ;;  %1553 = vrot.lane.b32.xlu1 %v1458_v49, %s4159_s23 }
 0x2ee   : > { %v2211_v26 = vadd.f32 %v5220_v37, %v2210_v2  ;;  %1939 = vrot.lane.b32.xlu0 %v1844_v18, %s4160_s29  ;;  %v5495_v47 = vpop.permute.xlu2 %1931  ;;  %v2642_v36 = vrot.slane %v2641_v7, 1  ;;  %v2636_v11 = vmax.f32 %v2634_v51, %v2635_v55  ;;  %v2629_v18 = vmax.f32 %v2627_v30, %v2628_v1 }
 0x2ef   : > { %v2544_v45 = vrot.slane %v2543_v6, 1  ;;  %v2550_v28 = vmax.f32 %v2548_v16, %v2549_v10  ;;  %v2557_v42 = vmax.f32 %v2555_v50, %v2556_v40  ;;  %v2564_v24 = vmax.f32 %v2562_v17, %v2563_v15  ;;  %v1514_v34 = vpop.permute.xlu1 %1513  ;;  %v3230_v40 = vld [vmem:[#allocation4 + $0x11] sm:$0xff] }
 0x2f0   : > { %v2276_v44 = vmax.f32 %v2211_v26, 0.0  ;;  %1599 = vst.msk [vmem:[#allocation3 + $0x58] sm:$0xff] %vm1587_vm8, %v1514_v34  ;;  %v1352_v39 = vpop.permute.xlu0 %1351  ;;  %v2643_v2 = vmax.f32 %v2641_v7, %v2642_v36  ;;  %v3015_v15 = vsel %vm2987_vm14, %v2636_v11, %v2629_v18 }
 0x2f1   : > { %v2545_v27 = vmax.f32 %v2543_v6, %v2544_v45  ;;  %v2551_v59 = vrot.slane %v2550_v28, 1  ;;  %v2558_v4 = vrot.slane %v2557_v42, 1  ;;  %v2565_v37 = vrot.slane %v2564_v24, 1  ;;  %1421 = vst.msk [vmem:[#allocation3 + $0xd8] sm:$0xff] %vm1393_vm7, %v1352_v39 }
 0x2f2   : > { %v2316_v8 = vsel %vm2293_vm12, %v2276_v44, -inf  ;;  %v2649_v6 = vrot.slane %v2648_v58, 1  ;;  %v3016_v30 = vsel %vm6313_vm0, %v2643_v2, %v3015_v15  ;;  %v3067_v15 = vld [vmem:[#allocation4] sm:$0xff]  ;;  %vm6304_vm0 = vcmask 589312  }
 0x2f3   : > { %v2552_v56 = vmax.f32 %v2550_v28, %v2551_v59  ;;  %v2559_v43 = vmax.f32 %v2557_v42, %v2558_v4  ;;  %v3004_v32 = vsel %vm2993_vm2, %v2545_v27, %v3003_v0  ;;  %v2317_v14 = vmax.f32 %v2315_v46, %v2316_v8  ;;  %3075 = vst.msk [vmem:[#allocation5] sm:$0xff] %vm2293_vm12, %v3067_v15 }
 0x2f4   : > { %3148 = vrot.lane.b32.xlu2 %v3132_v41, %s4158_s22  ;;  %v2566_v38 = vmax.f32 %v2564_v24, %v2565_v37  ;;  %v2650_v27 = vmax.f32 %v2648_v58, %v2649_v6 }
 0x2f5   : > { %v3005_v54 = vsel %vm2995_vm3, %v2552_v56, %v3004_v32  ;;  %3099 = vrot.lane.b32.xlu1 %v3083_v5, %s4155_s19  ;;  %v2379_v61 = vrot.slane %v2317_v14, 2  ;;  %v2380_v3 = vrot.slane %v2317_v14, 4  ;;  %v2381_v53 = vrot.slane %v2317_v14, 6 }
 0x2f6   : > { %v3006_v19 = vsel %vm2997_vm5, %v2559_v43, %v3005_v54  ;;  %v5507_v9 = vpop.permute.xlu2 %1160  ;;  %3197 = vrot.lane.b32.xlu0 %v5320_v48, %s4159_s23  ;;  %v2651_v60 = vsel %vm2454_vm13, %v2317_v14, -inf  ;;  %v3017_v46 = vsel %vm2991_vm1, %v2650_v27, %v3016_v30  ;;  %v5607_v30 = vld [vmem:[%s6293_s2] ss:$0 sm:$0xff]  ;;  %v3490_v27 = vld [vmem:[%s6294_s3 + $0x30] sm:$0xff] }
 0x2f7   : > { %v3007_v62 = vsel %vm2999_vm15, %v2566_v38, %v3006_v19  ;;  %v1707_v13 = vpop.permute.xlu1 %1706  ;;  %v2652_v33 = vrot.slane %v2651_v60, 4  ;;  %v2658_v63 = vsel %vm2454_vm13, %v2379_v61, -inf  ;;  %v2665_v52 = vsel %vm2454_vm13, %v2380_v3, -inf }
 0x2f8   : > { %3060 = vst.msk [vmem:[#allocation4 + $0x21] sm:$0xff] %vm2293_vm12, %v3007_v62  ;;  %v2672_v57 = vsel %vm2454_vm13, %v2381_v53, -inf  ;;  %v1546_v49 = vpop.permute.xlu0 %1545  ;;  %v2659_v16 = vrot.slane %v2658_v63, 4  ;;  %v2666_v48 = vrot.slane %v2665_v52, 4 }
 0x2f9   : > { %v2673_v50 = vrot.slane %v2672_v57, 4  ;;  %1792 = vst.msk [vmem:[#allocation3 + $0x58] sm:$0xff] %vm1780_vm9, %v1707_v13  ;;  %v2653_v17 = vmax.f32 %v2651_v60, %v2652_v33 }
 0x2fa   : > { %1615 = vst.msk [vmem:[#allocation3 + $0xd8] sm:$0xff] %vm1587_vm8, %v1546_v49  ;;  %v2660_v23 = vmax.f32 %v2658_v63, %v2659_v16  ;;  %v2667_v29 = vmax.f32 %v2665_v52, %v2666_v48 }
 0x2fb   : > { %v2674_v25 = vmax.f32 %v2672_v57, %v2673_v50  ;;  %v2654_v10 = vrot.slane %v2653_v17, 2 }
 0x2fc   : > { %3295 = vrot.lane.b32.xlu2 %v3279_v31, %s4162_s18  ;;  %v2661_v22 = vrot.slane %v2660_v23, 2  ;;  %v2668_v35 = vrot.slane %v2667_v29, 2 }
 0x2fd   : > { %v2675_v12 = vrot.slane %v2674_v25, 2  ;;  %3246 = vrot.lane.b32.xlu1 %v3230_v40, %s4160_s29  ;;  %v2655_v26 = vmax.f32 %v2653_v17, %v2654_v10 }
 0x2fe   : > { %v1532_v45 = vpop.permute.xlu2 %1531  ;;  %v2662_v28 = vmax.f32 %v2660_v23, %v2661_v22  ;;  %v2669_v42 = vmax.f32 %v2667_v29, %v2668_v35  ;;  %v5588_v22 = vpop.f32.mrf.mxu3 }
 0x2ff   : > { %v2676_v24 = vmax.f32 %v2674_v25, %v2675_v12  ;;  %v1900_v34 = vpop.permute.xlu1 %1899  ;;  %v3329_v21 = vld [vmem:[#allocation4 + $0x20] sm:$0xff]  ;;  %v2656_v51 = vrot.slane %v2655_v26, 1 }
 0x300   : > { %1985 = vst.msk [vmem:[#allocation3 + $0x58] sm:$0xff] %vm1973_vm10, %v1900_v34  ;;  %v1739_v44 = vpop.permute.xlu0 %1738  ;;  %3345 = vrot.lane.b32.xlu0 %v3329_v21, %s4163_s20  ;;  %v3069_v39 = vld [vmem:[#allocation4 + $0x20] sm:$0xff]  ;;  %v2663_v59 = vrot.slane %v2662_v28, 1  ;;  %v2670_v4 = vrot.slane %v2669_v42, 1  ;;  %v3491_v34 = vld [vmem:[%s6294_s3 + $0x38] sm:$0xff] }
 0x301   : > { %v2677_v37 = vrot.slane %v2676_v24, 1  ;;  %1808 = vst.msk [vmem:[#allocation3 + $0xd8] sm:$0xff] %vm1780_vm9, %v1739_v44  ;;  %v2657_v41 = vmax.f32 %v2655_v26, %v2656_v51  ;;  %v5529_v8 = vld [vmem:[#allocation4 + $0x22] sm:$0xff] }
 0x302   : > { %2001 = vst.msk [vmem:[#allocation3 + $0xd8] sm:$0xff] %vm1973_vm10, %v5495_v47  ;;  %v2664_v0 = vmax.f32 %v2662_v28, %v2663_v59  ;;  %v2671_v20 = vmax.f32 %v2669_v42, %v2670_v4  ;;  %v5535_v7 = vld [vmem:[#allocation4 + $0x21] sm:$0xff]  ;;  %v3492_v42 = vld [vmem:[%s6294_s3 + $0x40] sm:$0xff] }
 0x303   : > { %3077 = vst.msk [vmem:[#allocation5 + $0x10] sm:$0xff] %vm2293_vm12, %v3069_v39  ;;  %v3018_v5 = vsel %vm2993_vm2, %v2657_v41, %v3017_v46  ;;  %v2678_v56 = vmax.f32 %v2676_v24, %v2677_v37  ;;  %3529 = vmatpush.msra.mxu1 %v3492_v42  ;;  %v3489_v46 = vld [vmem:[%s6294_s3 + $0x28] sm:$0xff] }
 0x304   : > { %3443 = vrot.lane.b32.xlu2 %v5529_v8, %s4164_s21  ;;  %v3019_v43 = vsel %vm2995_vm3, %v2664_v0, %v3018_v5  ;;  %v3488_v5 = vld [vmem:[%s6294_s3 + $0x20] sm:$0xff] }
 0x305   : > { %3394 = vrot.lane.b32.xlu1 %v5535_v7, %s4165_s8  ;;  %v3020_v47 = vsel %vm2997_vm5, %v2671_v20, %v3019_v43  ;;  %3530 = vmatpush.msra.mxu1 %v3491_v34 }
 0x306   : > { %v1741_v32 = vpop.permute.xlu2 %1740  ;;  %v3021_v14 = vsel %vm2999_vm15, %v2678_v56, %v3020_v47  ;;  %v5596_v28 = vpop.f32.mrf.mxu3  ;;  %v3487_v47 = vld [vmem:[%s6294_s3 + $0x18] sm:$0xff] }
 0x307   : > { %v1916_v1 = vpop.permute.xlu1 %1915  ;;  %v2017_v55 = vld [vmem:[#allocation3 + $0x58] sm:$0xff]  ;;  %3062 = vst.msk [vmem:[#allocation4 + $0x41] sm:$0xff] %vm2293_vm12, %v3021_v14  ;;  %v2189_v2 = vpop.f32.mrf.mxu0  ;;  %3531 = vmatpush.msra.mxu1 %v3490_v27 }
 0x308   : > { %3989 = vmatmul.msk.f32.gmra.mxu0 %vm2047_vm11, %v2017_v55  ;;  %v968_v38 = vpop.permute.xlu0 %967  ;;  %3101 = vrot.lane.b32.xlu0 %v3230_v40, %s4155_s19  ;;  %1993 = vst.msk [vmem:[#allocation3 + $0x98] sm:$0xff] %vm1973_vm10, %v1916_v1  ;;  %v2190_v51 = vadd.f32 %v5607_v30, %v2189_v2  ;;  %v3486_v1 = vld [vmem:[%s6294_s3 + $0x10] sm:$0xff] }
 0x309   : > { %v2033_v54 = vld [vmem:[#allocation3 + $0xd8] sm:$0xff]  ;;  %1036 = vst.msk [vmem:[#allocation3 + $0xe0] sm:$0xff] %vm1007_vm4, %v968_v38  ;;  %3532 = vmatpush.msra.mxu1 %v3489_v46 }
 0x30a   : > { %4005 = vmatmul.msk.f32.gmra.mxu3 %vm2047_vm11, %v2033_v54  ;;  %1229 = vst.msk [vmem:[#allocation3 + $0xe0] sm:$0xff] %vm1200_vm6, %v5507_v9  ;;  %v2269_v0 = vmax.f32 %v2190_v51, 0.0  ;;  %v3485_v54 = vld [vmem:[%s6294_s3 + $0x8] sm:$0xff] }
 0x30b   : > { %3533 = vmatpush.msra.mxu1 %v3488_v5 }
 0x30c   : > { %3199 = vrot.lane.b32.xlu2 %v3329_v21, %s4159_s23 }
 0x30d   : > { %3150 = vrot.lane.b32.xlu1 %v3279_v31, %s4158_s22  ;;  %3534 = vmatpush.msra.mxu1 %v3487_v47 }
 0x30e   : > { %v970_v19 = vpop.permute.xlu2 %969  ;;  %v5556_v36 = vld [vmem:[#allocation4 + $0x40] sm:$0xff] }
 0x30f   : > { %1037 = vst.msk [vmem:[#allocation3 + $0xe8] sm:$0xff] %vm1007_vm4, %v970_v19  ;;  %v1145_v61 = vpop.permute.xlu1 %1144  ;;  %v2025_v3 = vld [vmem:[#allocation3 + $0x98] sm:$0xff]  ;;  %3535 = vmatpush.msra.mxu1 %v3486_v1 }
 0x310   : > { %1221 = vst.msk [vmem:[#allocation3 + $0xa0] sm:$0xff] %vm1200_vm6, %v1145_v61  ;;  %v1338_v53 = vpop.permute.xlu0 %1337  ;;  %3248 = vrot.lane.b32.xlu0 %v5535_v7, %s4160_s29  ;;  %3997 = vmatmul.msk.f32.gmra.mxu2 %vm2047_vm11, %v2025_v3  ;;  %v3484_v3 = vld [vmem:[%s6294_s3] sm:$0xff] }
 0x311   : > { %1414 = vst.msk [vmem:[#allocation3 + $0xa0] sm:$0xff] %vm1393_vm7, %v1338_v53  ;;  %3536 = vmatpush.msra.mxu1 %v3485_v54 }
 0x312   : > { %1608 = vst.msk [vmem:[#allocation3 + $0xa0] sm:$0xff] %vm1587_vm8, %v1532_v45 }
 0x313   : > { %3079 = vst.msk [vmem:[#allocation5 + $0x20] sm:$0xff] %vm2293_vm12, %v5556_v36  ;;  %3537 = vmatpush.msra.mxu1 %v3484_v3 }
 0x314   : > { %v2213_v24 = vpop.f32.mrf.mxu2 }
 0x315   : > { %3297 = vrot.lane.b32.xlu1 %v5529_v8, %s4162_s18 }
 0x316   : > { %v1340_v62 = vpop.permute.xlu2 %1339 }
 0x317   : > { %v1354_v9 = vpop.permute.xlu1 %1353 }
 0x318   : > { %1422 = vst.msk [vmem:[#allocation3 + $0xe0] sm:$0xff] %vm1393_vm7, %v1354_v9  ;;  %v1548_v58 = vpop.permute.xlu0 %1547 }
 0x319   : > { %1616 = vst.msk [vmem:[#allocation3 + $0xe0] sm:$0xff] %vm1587_vm8, %v1548_v58 }
 0x31a   : > { %1809 = vst.msk [vmem:[#allocation3 + $0xe0] sm:$0xff] %vm1780_vm9, %v1741_v32  ;;  %v2306_v32 = vsel %vm2293_vm12, %v2269_v0, -inf }
 0x31b   : > { %v2237_v20 = vpop.f32.mrf.mxu3 }
 0x31e   : > { %v1550_v33 = vpop.permute.xlu2 %1549 }
 0x31f   : > { %v1725_v60 = vpop.permute.xlu1 %1724 }
 0x320   : > { %1801 = vst.msk [vmem:[#allocation3 + $0xa0] sm:$0xff] %vm1780_vm9, %v1725_v60  ;;  %v1918_v13 = vpop.permute.xlu0 %1917  ;;  %v2238_v60 = vadd.f32 %v5607_v30, %v2237_v20 }
 0x321   : > { %1994 = vst.msk [vmem:[#allocation3 + $0xa0] sm:$0xff] %vm1973_vm10, %v1918_v13 }
 0x326   : > { %v1920_v16 = vpop.permute.xlu2 %1919 }
 0x327   : > { %v1934_v63 = vpop.permute.xlu1 %1933 }
 0x328   : > { %2002 = vst.msk [vmem:[#allocation3 + $0xe0] sm:$0xff] %vm1973_vm10, %v1934_v63  ;;  %v1147_v52 = vpop.permute.xlu0 %1146  ;;  %v2026_v57 = vld [vmem:[#allocation3 + $0xa0] sm:$0xff] }
 0x329   : > { %1222 = vst.msk [vmem:[#allocation3 + $0xa8] sm:$0xff] %vm1200_vm6, %v1147_v52  ;;  %3998 = vmatmul.msk.f32.gmra.mxu2 %vm2047_vm11, %v2026_v57  ;;  %v2214_v57 = vadd.f32 %v5607_v30, %v2213_v24 }
 0x32a   : > { %1415 = vst.msk [vmem:[#allocation3 + $0xa8] sm:$0xff] %vm1393_vm7, %v1340_v62 }
 0x32e   : > { %v1165_v18 = vpop.permute.xlu2 %1164  ;;  %v5591_v35 = vpop.f32.mrf.mxu0 }
 0x32f   : > { %v1163_v49 = vpop.permute.xlu1 %1162  ;;  %v2034_v11 = vld [vmem:[#allocation3 + $0xe0] sm:$0xff] }
 0x330   : > { %1230 = vst.msk [vmem:[#allocation3 + $0xe8] sm:$0xff] %vm1200_vm6, %v1163_v49  ;;  %v1356_v48 = vpop.permute.xlu0 %1355  ;;  %4006 = vmatmul.msk.f32.gmra.mxu3 %vm2047_vm11, %v2034_v11 }
 0x331   : > { %1423 = vst.msk [vmem:[#allocation3 + $0xe8] sm:$0xff] %vm1393_vm7, %v1356_v48 }
 0x332   : > { %1617 = vst.msk [vmem:[#allocation3 + $0xe8] sm:$0xff] %vm1587_vm8, %v1550_v33 }
 0x336   : > { %v1745_v31 = vpop.permute.xlu2 %1744 }
 0x337   : > { %v1534_v50 = vpop.permute.xlu1 %1533 }
 0x338   : > { %1609 = vst.msk [vmem:[#allocation3 + $0xa8] sm:$0xff] %vm1587_vm8, %v1534_v50  ;;  %v1727_v17 = vpop.permute.xlu0 %1726  ;;  %v2285_v50 = vmax.f32 %v2238_v60, 0.0 }
 0x339   : > { %1802 = vst.msk [vmem:[#allocation3 + $0xa8] sm:$0xff] %vm1780_vm9, %v1727_v17 }
 0x33a   : > { %1995 = vst.msk [vmem:[#allocation3 + $0xa8] sm:$0xff] %vm1973_vm10, %v1920_v16  ;;  %v2330_v15 = vsel %vm2293_vm12, %v2285_v50, -inf }
 0x33c   : > { %v5624_v56 = vpop.f32.mrf.mxu2 }
 0x33e   : > { %v1167_v12 = vpop.permute.xlu2 %1166 }
 0x33f   : > { %v1743_v23 = vpop.permute.xlu1 %1742 }
 0x340   : > { %1810 = vst.msk [vmem:[#allocation3 + $0xe8] sm:$0xff] %vm1780_vm9, %v1743_v23  ;;  %v1936_v29 = vpop.permute.xlu0 %1935 }
 0x341   : > { %2003 = vst.msk [vmem:[#allocation3 + $0xe8] sm:$0xff] %vm1973_vm10, %v1936_v29  ;;  %v2027_v25 = vld [vmem:[#allocation3 + $0xa8] sm:$0xff] }
 0x342   : > { %3999 = vmatmul.msk.f32.gmra.mxu2 %vm2047_vm11, %v2027_v25 }
 0x343   : > { %v5640_v61 = vpop.f32.mrf.mxu3 }
 0x346   : > { %v1747_v59 = vpop.permute.xlu2 %1746 }
 0x347   : > { %v972_v6 = vpop.permute.xlu1 %971 }
 0x348   : > { %1038 = vst.msk [vmem:[#allocation3 + $0xf0] sm:$0xff] %vm1007_vm4, %v972_v6  ;;  %v1358_v10 = vpop.permute.xlu0 %1357  ;;  %v2035_v40 = vld [vmem:[#allocation3 + $0xe8] sm:$0xff] }
 0x349   : > { %1231 = vst.msk [vmem:[#allocation3 + $0xf0] sm:$0xff] %vm1200_vm6, %v1165_v18  ;;  %4007 = vmatmul.msk.f32.gmra.mxu3 %vm2047_vm11, %v2035_v40 }
 0x34a   : > { %1424 = vst.msk [vmem:[#allocation3 + $0xf0] sm:$0xff] %vm1393_vm7, %v1358_v10 }
 0x34e   : > { %v3149_v19 = vpop.permute.xlu2 %3148 }
 0x34f   : > { %v1552_v26 = vpop.permute.xlu1 %1551 }
 0x350   : > { %1618 = vst.msk [vmem:[#allocation3 + $0xf0] sm:$0xff] %vm1587_vm8, %v1552_v26  ;;  %v1938_v45 = vpop.permute.xlu0 %1937 }
 0x351   : > { %1811 = vst.msk [vmem:[#allocation3 + $0xf0] sm:$0xff] %vm1780_vm9, %v1745_v31  ;;  %v2277_v31 = vmax.f32 %v2214_v57, 0.0 }
 0x352   : > { %2004 = vst.msk [vmem:[#allocation3 + $0xf0] sm:$0xff] %vm1973_vm10, %v1938_v45 }
 0x353   : > { %v2318_v34 = vsel %vm2293_vm12, %v2277_v31, -inf }
 0x356   : > { %v2195_v21 = vpop.f32.mrf.mxu0  ;;  %v3296_v17 = vpop.permute.xlu2 %3295 }
 0x357   : > { %v974_v44 = vpop.permute.xlu1 %973  ;;  %v2196_v39 = vadd.f32 %v5607_v30, %v2195_v21 }
 0x358   : > { %1039 = vst.msk [vmem:[#allocation3 + $0xf8] sm:$0xff] %vm1007_vm4, %v974_v44  ;;  %v1360_v4 = vpop.permute.xlu0 %1359  ;;  %vm3123_vm4 = vcmask 130112  }
 0x359   : > { %1232 = vst.msk [vmem:[#allocation3 + $0xf8] sm:$0xff] %vm1200_vm6, %v1167_v12  ;;  %v2271_v37 = vmax.f32 %v2196_v39, 0.0  ;;  %v2036_v41 = vld [vmem:[#allocation3 + $0xf0] sm:$0xff]  ;;  %vm3172_vm6 = vcmask 195712  }
 0x35a   : > { %1425 = vst.msk [vmem:[#allocation3 + $0xf8] sm:$0xff] %vm1393_vm7, %v1360_v4  ;;  %4008 = vmatmul.msk.f32.gmra.mxu3 %vm2047_vm11, %v2036_v41  ;;  %vm3221_vm7 = vcmask 261312  }
 0x35b   : > { %v2307_v43 = vsel %vm2293_vm12, %v2271_v37, -inf }
 0x35c   : > { %v2308_v55 = vmax.f32 %v2306_v32, %v2307_v43 }
 0x35e   : > { %v2370_v53 = vrot.slane %v2308_v55, 2  ;;  %v2371_v58 = vrot.slane %v2308_v55, 4  ;;  %v2567_v49 = vsel %vm2454_vm13, %v2308_v55, -inf  ;;  %v2372_v29 = vrot.slane %v2308_v55, 6  ;;  %v3444_v41 = vpop.permute.xlu2 %3443 }
 0x35f   : > { %v1554_v14 = vpop.permute.xlu1 %1553  ;;  %v2568_v25 = vrot.slane %v2567_v49, 4 }
 0x360   : > { %1619 = vst.msk [vmem:[#allocation3 + $0xf8] sm:$0xff] %vm1587_vm8, %v1554_v14  ;;  %v1940_v38 = vpop.permute.xlu0 %1939  ;;  %v2574_v13 = vsel %vm2454_vm13, %v2370_v53, -inf  ;;  %v2581_v16 = vsel %vm2454_vm13, %v2371_v58, -inf  ;;  %vm3270_vm8 = vcmask 326912   ;;  %v2588_v42 = vsel %vm2454_vm13, %v2372_v29, -inf }
 0x361   : > { %1812 = vst.msk [vmem:[#allocation3 + $0xf8] sm:$0xff] %vm1780_vm9, %v1747_v59  ;;  %v2575_v11 = vrot.slane %v2574_v13, 4  ;;  %v2582_v2 = vrot.slane %v2581_v16, 4  ;;  %vm3319_vm9 = vcmask 392512   ;;  %v2569_v45 = vmax.f32 %v2567_v49, %v2568_v25 }
 0x362   : > { %2005 = vst.msk [vmem:[#allocation3 + $0xf8] sm:$0xff] %vm1973_vm10, %v1940_v38  ;;  %vm3369_vm10 = vcmask 458112   ;;  %v2589_v27 = vrot.slane %v2588_v42, 4 }
 0x363   : > { %v2576_v10 = vmax.f32 %v2574_v13, %v2575_v11  ;;  %v2583_v21 = vmax.f32 %v2581_v16, %v2582_v2  ;;  %v2570_v59 = vrot.slane %v2569_v45, 2 }
 0x364   : > { %v2219_v9 = vpop.f32.mrf.mxu2  ;;  %v2590_v5 = vmax.f32 %v2588_v42, %v2589_v27 }
 0x365   : > { %v2220_v33 = vadd.f32 %v5607_v30, %v2219_v9  ;;  %v2577_v44 = vrot.slane %v2576_v10, 2  ;;  %v2584_v37 = vrot.slane %v2583_v21, 2  ;;  %v2571_v32 = vmax.f32 %v2569_v45, %v2570_v59 }
 0x366   : > { %v2591_v13 = vrot.slane %v2590_v5, 2 }
 0x367   : > { %v3100_v62 = vpop.permute.xlu1 %3099  ;;  %v2279_v18 = vmax.f32 %v2220_v33, 0.0  ;;  %v2578_v46 = vmax.f32 %v2576_v10, %v2577_v44  ;;  %v2585_v38 = vmax.f32 %v2583_v21, %v2584_v37  ;;  %v2572_v60 = vrot.slane %v2571_v32, 1 }
 0x368   : > { %3124 = vst.msk [vmem:[#allocation5] sm:$0xff] %vm3123_vm4, %v3100_v62  ;;  %v3198_v63 = vpop.permute.xlu0 %3197  ;;  %v2592_v10 = vmax.f32 %v2590_v5, %v2591_v13 }
 0x369   : > { %3173 = vst.msk [vmem:[#allocation5] sm:$0xff] %vm3172_vm6, %v3149_v19  ;;  %v2037_v52 = vld [vmem:[#allocation3 + $0xf8] sm:$0xff]  ;;  %v2319_v12 = vsel %vm2293_vm12, %v2279_v18, -inf  ;;  %v2579_v19 = vrot.slane %v2578_v46, 1  ;;  %v2586_v16 = vrot.slane %v2585_v38, 1 }
 0x36a   : > { %3222 = vst.msk [vmem:[#allocation5] sm:$0xff] %vm3221_vm7, %v3198_v63  ;;  %4009 = vmatmul.msk.f32.gmra.mxu3 %vm2047_vm11, %v2037_v52  ;;  %v2320_v39 = vmax.f32 %v2318_v34, %v2319_v12  ;;  %vm3418_vm11 = vcmask 523712   ;;  %v2193_v52 = vadd.f32 %v5607_v30, %v5591_v35  ;;  %v2217_v35 = vadd.f32 %v5607_v30, %v5624_v56 }
 0x36b   : > { %v2243_v48 = vpop.f32.mrf.mxu3  ;;  %v2580_v11 = vmax.f32 %v2578_v46, %v2579_v19  ;;  %v2587_v45 = vmax.f32 %v2585_v38, %v2586_v16  ;;  %v2593_v59 = vrot.slane %v2592_v10, 1 }
 0x36c   : > { %v2244_v23 = vadd.f32 %v5607_v30, %v2243_v48  ;;  %v2382_v0 = vrot.slane %v2320_v39, 2  ;;  %v2383_v43 = vrot.slane %v2320_v39, 4  ;;  %v2679_v47 = vsel %vm2454_vm13, %v2320_v39, -inf }
 0x36d   : > { %v2384_v14 = vrot.slane %v2320_v39, 6  ;;  %v2680_v3 = vrot.slane %v2679_v47, 4  ;;  %v2270_v39 = vmax.f32 %v2193_v52, 0.0  ;;  %v2278_v27 = vmax.f32 %v2217_v35, 0.0 }
 0x36e   : > { %v2287_v6 = vmax.f32 %v2244_v23, 0.0  ;;  %v2686_v53 = vsel %vm2454_vm13, %v2382_v0, -inf  ;;  %v2693_v58 = vsel %vm2454_vm13, %v2383_v43, -inf  ;;  %v3200_v23 = vpop.permute.xlu2 %3199  ;;  %v2594_v19 = vmax.f32 %v2592_v10, %v2593_v59 }
 0x36f   : > { %v3247_v40 = vpop.permute.xlu1 %3246  ;;  %v2700_v33 = vsel %vm2454_vm13, %v2384_v14, -inf  ;;  %v2687_v57 = vrot.slane %v2686_v53, 4  ;;  %v2681_v48 = vmax.f32 %v2679_v47, %v2680_v3  ;;  %v2694_v50 = vrot.slane %v2693_v58, 4 }
 0x370   : > { %v2331_v26 = vsel %vm2293_vm12, %v2287_v6, -inf  ;;  %3271 = vst.msk [vmem:[#allocation5] sm:$0xff] %vm3270_vm8, %v3247_v40  ;;  %v2701_v18 = vrot.slane %v2700_v33, 4  ;;  %v2573_v6 = vmax.f32 %v2571_v32, %v2572_v60  ;;  %v2241_v40 = vadd.f32 %v5607_v30, %v5640_v61 }
 0x371   : > { %v5661_v24 = vmax.f32 %v2330_v15, %v2331_v26  ;;  %3320 = vst.msk [vmem:[#allocation5] sm:$0xff] %vm3319_vm9, %v3296_v17  ;;  %v2688_v15 = vmax.f32 %v2686_v53, %v2687_v57  ;;  %v2695_v34 = vmax.f32 %v2693_v58, %v2694_v50  ;;  %v2309_v38 = vsel %vm2293_vm12, %v2270_v39, -inf }
 0x372   : > { %v3346_v51 = vpop.permute.xlu0 %3345  ;;  %v3008_v42 = vsel %vm2987_vm14, %v2580_v11, %v2573_v6  ;;  %v2702_v56 = vmax.f32 %v2700_v33, %v2701_v18  ;;  %v2286_v61 = vmax.f32 %v2241_v40, 0.0 }
 0x373   : > { %3370 = vst.msk [vmem:[#allocation5] sm:$0xff] %vm3369_vm10, %v3346_v51  ;;  %v2394_v4 = vrot.slane %v5661_v24, 2  ;;  %v2395_v1 = vrot.slane %v5661_v24, 4  ;;  %v2791_v9 = vsel %vm2454_vm13, %v5661_v24, -inf  ;;  %v2396_v29 = vrot.slane %v5661_v24, 6 }
 0x374   : > { %v2792_v49 = vrot.slane %v2791_v9, 4  ;;  %v2682_v24 = vrot.slane %v2681_v48, 2  ;;  %v2689_v37 = vrot.slane %v2688_v15, 2  ;;  %v2696_v5 = vrot.slane %v2695_v34, 2 }
 0x375   : > { %v2798_v55 = vsel %vm2454_vm13, %v2394_v4, -inf  ;;  %v2805_v63 = vsel %vm2454_vm13, %v2395_v1, -inf  ;;  %v2812_v44 = vsel %vm2454_vm13, %v2396_v29, -inf  ;;  %v2703_v32 = vrot.slane %v2702_v56, 2 }
 0x376   : > { %v2799_v62 = vrot.slane %v2798_v55, 4  ;;  %v2806_v31 = vrot.slane %v2805_v63, 4  ;;  %v2793_v12 = vmax.f32 %v2791_v9, %v2792_v49  ;;  %v2813_v43 = vrot.slane %v2812_v44, 4 }
 0x377   : > { %v3395_v20 = vpop.permute.xlu1 %3394  ;;  %v2333_v3 = vsel %vm2293_vm12, %v2286_v61, -inf  ;;  %v5700_v53 = vmax.f32 %v2688_v15, %v2689_v37  ;;  %v5706_v60 = vmax.f32 %v2695_v34, %v2696_v5  ;;  %v5708_v52 = vmax.f32 %v2702_v56, %v2703_v32 }
 0x378   : > { %3419 = vst.msk [vmem:[#allocation5] sm:$0xff] %vm3418_vm11, %v3395_v20  ;;  %v2800_v25 = vmax.f32 %v2798_v55, %v2799_v62  ;;  %v2807_v51 = vmax.f32 %v2805_v63, %v2806_v31  ;;  %v2683_v20 = vmax.f32 %v2681_v48, %v2682_v24  ;;  %v2814_v13 = vmax.f32 %v2812_v44, %v2813_v43 }
 0x379   : > { %3468 = vst.msk [vmem:[#allocation5] sm:$0xff] %vm6304_vm0, %v3444_v41  ;;  %vm6305_vm0 = vcmask 588800   ;;  %v2794_v41 = vrot.slane %v2793_v12, 2  ;;  %v2691_v18 = vrot.slane %v5700_v53, 1 }
 0x37a   : > { %v3102_v54 = vpop.permute.xlu0 %3101  ;;  %v2801_v21 = vrot.slane %v2800_v25, 2  ;;  %v2808_v1 = vrot.slane %v2807_v51, 2  ;;  %v2684_v63 = vrot.slane %v2683_v20, 1  ;;  %v2815_v31 = vrot.slane %v2814_v13, 2 }
 0x37b   : > { %3125 = vst.msk [vmem:[#allocation5 + $0x8] sm:$0xff] %vm3123_vm4, %v3102_v54  ;;  %v5697_v54 = vsel %vm2293_vm12, %v2278_v27, -inf  ;;  %v2795_v9 = vmax.f32 %v2793_v12, %v2794_v41 }
 0x37c   : > { %v2802_v14 = vmax.f32 %v2800_v25, %v2801_v21  ;;  %v2809_v49 = vmax.f32 %v2807_v51, %v2808_v1  ;;  %v5717_v44 = vmax.f32 %v2683_v20, %v2684_v63  ;;  %v2816_v27 = vmax.f32 %v2814_v13, %v2815_v31 }
 0x37e   : > { %v2803_v57 = vrot.slane %v2802_v14, 1 }
 0x37f   : > { %v3151_v17 = vpop.permute.xlu1 %3150 }
 0x380   : > { %3174 = vst.msk [vmem:[#allocation5 + $0x8] sm:$0xff] %vm3172_vm6, %v3151_v17  ;;  %v3476_v2 = vld [vmem:[#allocation5] sm:$0xff] }
 0x381   : > { %3223 = vst.msk [vmem:[#allocation5 + $0x8] sm:$0xff] %vm3221_vm7, %v3200_v23  ;;  %4010 = vmatmul.msk.f32.vlgmr.msra.gmra.mxu1 %vm6305_vm0, %v3476_v2  ;;  %vm6314_vm0 = vcmask 1042434   ;;  %v2796_v23 = vrot.slane %v2795_v9, 1 }
 0x382   : > { %v3249_v26 = vpop.permute.xlu0 %3248  ;;  %v3009_v0 = vsel %vm6314_vm0, %v2587_v45, %v3008_v42  ;;  %v2804_v45 = vmax.f32 %v2802_v14, %v2803_v57  ;;  %v2810_v42 = vrot.slane %v2809_v49, 1 }
 0x383   : > { %3272 = vst.msk [vmem:[#allocation5 + $0x8] sm:$0xff] %vm3270_vm8, %v3249_v26  ;;  %v5704_v62 = vsel %vm2991_vm1, %v2594_v19, %v3009_v0  ;;  %v2698_v26 = vrot.slane %v5706_v60, 1  ;;  %v2797_v39 = vmax.f32 %v2795_v9, %v2796_v23 }
 0x384   : > { %v2811_v0 = vmax.f32 %v2809_v49, %v2810_v42 }
 0x385   : > { %v2198_v4 = vpop.f32.mrf.mxu0  ;;  %v3036_v5 = vsel %vm2987_vm14, %v2804_v45, %v2797_v39 }
 0x386   : > { %v2199_v46 = vadd.f32 %v5607_v30, %v2198_v4 }
 0x387   : > { %v3298_v47 = vpop.permute.xlu1 %3297 }
 0x388   : > { %v2272_v55 = vmax.f32 %v2199_v46, 0.0  ;;  %3321 = vst.msk [vmem:[#allocation5 + $0x8] sm:$0xff] %vm3319_vm9, %v3298_v47 }
 0x38a   : > { %v2310_v58 = vsel %vm2293_vm12, %v2272_v55, -inf }
 0x38b   : > { %v2311_v33 = vmax.f32 %v2309_v38, %v2310_v58 }
 0x38d   : > { %v2373_v11 = vrot.slane %v2311_v33, 2  ;;  %v2374_v16 = vrot.slane %v2311_v33, 4  ;;  %v2375_v48 = vrot.slane %v2311_v33, 6  ;;  %v2595_v50 = vsel %vm2454_vm13, %v2311_v33, -inf  ;;  %v2246_v17 = vpop.f32.mrf.mxu3 }
 0x38e   : > { %v2596_v29 = vrot.slane %v2595_v50, 4  ;;  %v2247_v25 = vadd.f32 %v5607_v30, %v2246_v17 }
 0x38f   : > { %v2602_v2 = vsel %vm2454_vm13, %v2373_v11, -inf  ;;  %v2609_v35 = vsel %vm2454_vm13, %v2374_v16, -inf  ;;  %v2616_v6 = vsel %vm2454_vm13, %v2375_v48, -inf  ;;  %v2817_v16 = vrot.slane %v2816_v27, 1 }
 0x390   : > { %v2597_v10 = vmax.f32 %v2595_v50, %v2596_v29  ;;  %v2603_v40 = vrot.slane %v2602_v2, 4  ;;  %v2610_v15 = vrot.slane %v2609_v35, 4  ;;  %v2617_v12 = vrot.slane %v2616_v6, 4 }
 0x391   : > { %v2288_v24 = vmax.f32 %v2247_v25, 0.0  ;;  %v2818_v42 = vmax.f32 %v2816_v27, %v2817_v16  ;;  %v2699_v27 = vmax.f32 %v5706_v60, %v2698_v26 }
 0x392   : > { %v2598_v34 = vrot.slane %v2597_v10, 2  ;;  %v2604_v56 = vmax.f32 %v2602_v2, %v2603_v40  ;;  %v2611_v21 = vmax.f32 %v2609_v35, %v2610_v15  ;;  %v2618_v51 = vmax.f32 %v2616_v6, %v2617_v12 }
 0x393   : > { %v2334_v59 = vsel %vm2293_vm12, %v2288_v24, -inf  ;;  %v2222_v46 = vpop.f32.mrf.mxu2  ;;  %v3037_v2 = vsel %vm6314_vm0, %v2811_v0, %v3036_v5 }
 0x394   : > { %v2599_v4 = vmax.f32 %v2597_v10, %v2598_v34  ;;  %v2605_v61 = vrot.slane %v2604_v56, 2  ;;  %v2612_v37 = vrot.slane %v2611_v21, 2  ;;  %v2619_v41 = vrot.slane %v2618_v51, 2 }
 0x395   : > { %v2335_v43 = vmax.f32 %v2333_v3, %v2334_v59  ;;  %v2223_v47 = vadd.f32 %v5607_v30, %v2222_v46  ;;  %v2692_v59 = vmax.f32 %v5700_v53, %v2691_v18 }
 0x396   : > { %v2600_v32 = vrot.slane %v2599_v4, 1  ;;  %v2606_v14 = vmax.f32 %v2604_v56, %v2605_v61  ;;  %v2613_v1 = vmax.f32 %v2611_v21, %v2612_v37  ;;  %v2620_v20 = vmax.f32 %v2618_v51, %v2619_v41 }
 0x397   : > { %v2397_v55 = vrot.slane %v2335_v43, 2  ;;  %v2398_v38 = vrot.slane %v2335_v43, 4  ;;  %v2399_v19 = vrot.slane %v2335_v43, 6  ;;  %v2819_v9 = vsel %vm2454_vm13, %v2335_v43, -inf }
 0x398   : > { %v2601_v58 = vmax.f32 %v2599_v4, %v2600_v32  ;;  %v2607_v13 = vrot.slane %v2606_v14, 1  ;;  %v2614_v33 = vrot.slane %v2613_v1, 1  ;;  %v2621_v63 = vrot.slane %v2620_v20, 1 }
 0x399   : > { %v2820_v57 = vrot.slane %v2819_v9, 4  ;;  %v2826_v49 = vsel %vm2454_vm13, %v2397_v55, -inf  ;;  %v2833_v3 = vsel %vm2454_vm13, %v2398_v38, -inf  ;;  %v2840_v11 = vsel %vm2454_vm13, %v2399_v19, -inf }
 0x39a   : > { %v2608_v48 = vmax.f32 %v2606_v14, %v2607_v13  ;;  %v2615_v50 = vmax.f32 %v2613_v1, %v2614_v33  ;;  %v3011_v17 = vsel %vm2993_vm2, %v2601_v58, %v5704_v62  ;;  %v2827_v29 = vrot.slane %v2826_v49, 4 }
 0x39b   : > { %v2821_v23 = vmax.f32 %v2819_v9, %v2820_v57  ;;  %v2834_v25 = vrot.slane %v2833_v3, 4  ;;  %v2841_v31 = vrot.slane %v2840_v11, 4  ;;  %v2622_v35 = vmax.f32 %v2620_v20, %v2621_v63 }
 0x39c   : > { %v3012_v6 = vsel %vm2995_vm3, %v2608_v48, %v3011_v17  ;;  %v2280_v10 = vmax.f32 %v2223_v47, 0.0  ;;  %v2828_v12 = vmax.f32 %v2826_v49, %v2827_v29  ;;  %v3038_v4 = vsel %vm2991_vm1, %v2818_v42, %v3037_v2 }
 0x39d   : > { %v3013_v40 = vsel %vm2997_vm5, %v2615_v50, %v3012_v6  ;;  %v2822_v15 = vrot.slane %v2821_v23, 2  ;;  %v2835_v45 = vmax.f32 %v2833_v3, %v2834_v25  ;;  %v2842_v34 = vmax.f32 %v2840_v11, %v2841_v31 }
 0x39e   : > { %v3014_v24 = vsel %vm2999_vm15, %v2622_v35, %v3013_v40  ;;  %v2322_v62 = vsel %vm2293_vm12, %v2280_v10, -inf  ;;  %v2829_v21 = vrot.slane %v2828_v12, 2  ;;  %v3022_v58 = vsel %vm2987_vm14, %v2692_v59, %v5717_v44 }
 0x39f   : > { %3061 = vst.msk [vmem:[#allocation4 + $0x31] sm:$0xff] %vm2293_vm12, %v3014_v24  ;;  %v2823_v56 = vmax.f32 %v2821_v23, %v2822_v15  ;;  %v2836_v51 = vrot.slane %v2835_v45, 2  ;;  %v2323_v39 = vmax.f32 %v5697_v54, %v2322_v62  ;;  %v2843_v61 = vrot.slane %v2842_v34, 2 }
 0x3a0   : > { %v2830_v41 = vmax.f32 %v2828_v12, %v2829_v21  ;;  %v2705_v11 = vrot.slane %v5708_v52, 1  ;;  %v2232_v25 = vadd.f32 %v5607_v30, %v5588_v22  ;;  %v3023_v40 = vsel %vm6314_vm0, %v2699_v27, %v3022_v58  ;;  %v5806_v58 = vld [vmem:[#allocation4 + $0x42] sm:$0xff] }
 0x3a1   : > { %v2824_v37 = vrot.slane %v2823_v56, 1  ;;  %v2837_v46 = vmax.f32 %v2835_v45, %v2836_v51  ;;  %v2385_v0 = vrot.slane %v2323_v39, 2  ;;  %v2844_v5 = vmax.f32 %v2842_v34, %v2843_v61 }
 0x3a2   : > { %v2386_v43 = vrot.slane %v2323_v39, 4  ;;  %v2387_v47 = vrot.slane %v2323_v39, 6  ;;  %v2707_v54 = vsel %vm2454_vm13, %v2323_v39, -inf  ;;  %v2831_v14 = vrot.slane %v2830_v41, 1 }
 0x3a3   : > { %v2825_v32 = vmax.f32 %v2823_v56, %v2824_v37  ;;  %v2838_v1 = vrot.slane %v2837_v46, 1  ;;  %v2708_v53 = vrot.slane %v2707_v54, 4  ;;  %v2845_v18 = vrot.slane %v2844_v5, 1 }
 0x3a4   : > { %v2714_v20 = vsel %vm2454_vm13, %v2385_v0, -inf  ;;  %v2721_v60 = vsel %vm2454_vm13, %v2386_v43, -inf  ;;  %v2728_v26 = vsel %vm2454_vm13, %v2387_v47, -inf  ;;  %v2832_v55 = vmax.f32 %v2830_v41, %v2831_v14 }
 0x3a5   : > { %v2839_v38 = vmax.f32 %v2837_v46, %v2838_v1  ;;  %v3039_v19 = vsel %vm2993_vm2, %v2825_v32, %v3038_v4  ;;  %v2709_v9 = vmax.f32 %v2707_v54, %v2708_v53  ;;  %v2715_v13 = vrot.slane %v2714_v20, 4 }
 0x3a6   : > { %v2722_v33 = vrot.slane %v2721_v60, 4  ;;  %v2729_v63 = vrot.slane %v2728_v26, 4  ;;  %v3330_v57 = vld [vmem:[#allocation4 + $0x30] sm:$0xff]  ;;  %v2846_v16 = vmax.f32 %v2844_v5, %v2845_v18  ;;  %v3040_v48 = vsel %vm2995_vm3, %v2832_v55, %v3039_v19 }
 0x3a7   : > { %v5749_v49 = vld [vmem:[#allocation4 + $0x32] sm:$0xff]  ;;  %v2710_v50 = vrot.slane %v2709_v9, 2  ;;  %3347 = vrot.lane.b32.xlu2 %v3330_v57, %s4163_s20  ;;  %3078 = vst.msk [vmem:[#allocation5 + $0x18] sm:$0xff] %vm2293_vm12, %v3330_v57  ;;  %v3041_v44 = vsel %vm2997_vm5, %v2839_v38, %v3040_v48  ;;  %v2716_v17 = vmax.f32 %v2714_v20, %v2715_v13  ;;  %v2706_v12 = vmax.f32 %v5708_v52, %v2705_v11  ;;  %v5799_v38 = vld [vmem:[#allocation4 + $0x41] sm:$0xff] }
 0x3a8   : > { %v5751_v3 = vld [vmem:[#allocation4 + $0x31] sm:$0xff]  ;;  %3445 = vrot.lane.b32.xlu1 %v5749_v49, %s4164_s21  ;;  %v2723_v23 = vmax.f32 %v2721_v60, %v2722_v33  ;;  %v2730_v29 = vmax.f32 %v2728_v26, %v2729_v63  ;;  %v3042_v31 = vsel %vm2999_vm15, %v2846_v16, %v3041_v44  ;;  %v2283_v62 = vmax.f32 %v2232_v25, 0.0 }
 0x3a9   : > { %3396 = vrot.lane.b32.xlu0 %v5751_v3, %s4165_s8  ;;  %v2711_v2 = vmax.f32 %v2709_v9, %v2710_v50  ;;  %3065 = vst.msk [vmem:[#allocation4 + $0x71] sm:$0xff] %vm2293_vm12, %v3042_v31  ;;  %v2717_v35 = vrot.slane %v2716_v17, 2  ;;  %v3024_v21 = vsel %vm2991_vm1, %v2706_v12, %v3023_v40  ;;  %v2235_v63 = vadd.f32 %v5607_v30, %v5596_v28 }
 0x3aa   : > { %v2724_v6 = vrot.slane %v2723_v23, 2  ;;  %v2731_v10 = vrot.slane %v2730_v29, 2  ;;  %v2325_v37 = vsel %vm2293_vm12, %v2283_v62, -inf }
 0x3ab   : > { %v2712_v15 = vrot.slane %v2711_v2, 1  ;;  %v2718_v45 = vmax.f32 %v2716_v17, %v2717_v35  ;;  %v2284_v44 = vmax.f32 %v2235_v63, 0.0 }
 0x3ac   : > { %v2725_v42 = vmax.f32 %v2723_v23, %v2724_v6  ;;  %v2732_v24 = vmax.f32 %v2730_v29, %v2731_v10  ;;  %v2225_v34 = vpop.f32.mrf.mxu2 }
 0x3ad   : > { %v2713_v56 = vmax.f32 %v2711_v2, %v2712_v15  ;;  %v2226_v22 = vadd.f32 %v5607_v30, %v2225_v34  ;;  %v2719_v51 = vrot.slane %v2718_v45, 1  ;;  %v2328_v28 = vsel %vm2293_vm12, %v2284_v44, -inf }
 0x3ae   : > { %v2726_v39 = vrot.slane %v2725_v42, 1  ;;  %v2733_v59 = vrot.slane %v2732_v24, 1 }
 0x3af   : > { %v3025_v4 = vsel %vm2993_vm2, %v2713_v56, %v3024_v21  ;;  %v2281_v61 = vmax.f32 %v2226_v22, 0.0  ;;  %3103 = vrot.lane.b32.xlu2 %v5535_v7, %s4155_s19  ;;  %v2720_v52 = vmax.f32 %v2718_v45, %v2719_v51 }
 0x3b0   : > { %3201 = vrot.lane.b32.xlu1 %v3330_v57, %s4159_s23  ;;  %v2727_v27 = vmax.f32 %v2725_v42, %v2726_v39  ;;  %v5778_v46 = vld [vmem:[#allocation4 + $0x70] sm:$0xff]  ;;  %v2734_v0 = vmax.f32 %v2732_v24, %v2733_v59 }
 0x3b1   : > { %3152 = vrot.lane.b32.xlu0 %v5529_v8, %s4158_s22  ;;  %v2324_v41 = vsel %vm2293_vm12, %v2281_v61, -inf  ;;  %v3026_v5 = vsel %vm2995_vm3, %v2720_v52, %v3025_v4  ;;  %3082 = vst.msk [vmem:[#allocation5 + $0x38] sm:$0xff] %vm2293_vm12, %v5778_v46 }
 0x3b2   : > { %v2326_v43 = vmax.f32 %v2324_v41, %v2325_v37  ;;  %v3027_v7 = vsel %vm2997_vm5, %v2727_v27, %v3026_v5 }
 0x3b3   : > { %v3028_v47 = vsel %vm2999_vm15, %v2734_v0, %v3027_v7  ;;  %v2249_v12 = vpop.f32.mrf.mxu3 }
 0x3b4   : > { %v2388_v54 = vrot.slane %v2326_v43, 2  ;;  %3063 = vst.msk [vmem:[#allocation4 + $0x51] sm:$0xff] %vm2293_vm12, %v3028_v47  ;;  %v2389_v8 = vrot.slane %v2326_v43, 4  ;;  %v2735_v14 = vsel %vm2454_vm13, %v2326_v43, -inf  ;;  %v2390_v18 = vrot.slane %v2326_v43, 6 }
 0x3b5   : > { %v2736_v20 = vrot.slane %v2735_v14, 4 }
 0x3b6   : > { %v2742_v32 = vsel %vm2454_vm13, %v2388_v54, -inf  ;;  %v2749_v53 = vsel %vm2454_vm13, %v2389_v8, -inf  ;;  %v2756_v9 = vsel %vm2454_vm13, %v2390_v18, -inf }
 0x3b7   : > { %3250 = vrot.lane.b32.xlu2 %v5751_v3, %s4160_s29  ;;  %v2743_v1 = vrot.slane %v2742_v32, 4  ;;  %v2750_v26 = vrot.slane %v2749_v53, 4  ;;  %v2737_v19 = vmax.f32 %v2735_v14, %v2736_v20  ;;  %v2757_v57 = vrot.slane %v2756_v9, 4 }
 0x3b8   : > { %3349 = vrot.lane.b32.xlu1 %v5556_v36, %s4163_s20 }
 0x3b9   : > { %3299 = vrot.lane.b32.xlu0 %v5749_v49, %s4162_s18  ;;  %v2744_v60 = vmax.f32 %v2742_v32, %v2743_v1  ;;  %v2751_v33 = vmax.f32 %v2749_v53, %v2750_v26  ;;  %v2738_v11 = vrot.slane %v2737_v19, 2  ;;  %v2758_v17 = vmax.f32 %v2756_v9, %v2757_v57 }
 0x3ba   : > { %v2250_v57 = vadd.f32 %v5607_v30, %v2249_v12 }
 0x3bb   : > { %v5795_v55 = vld [vmem:[#allocation4 + $0x50] sm:$0xff]  ;;  %v2745_v13 = vrot.slane %v2744_v60, 2  ;;  %v2752_v48 = vrot.slane %v2751_v33, 2  ;;  %v2759_v2 = vrot.slane %v2758_v17, 2 }
 0x3bc   : > { %3080 = vst.msk [vmem:[#allocation5 + $0x28] sm:$0xff] %vm2293_vm12, %v5795_v55  ;;  %v5822_v56 = vld [vmem:[#allocation4 + $0x51] sm:$0xff] }
 0x3bd   : > { %v2746_v16 = vmax.f32 %v2744_v60, %v2745_v13  ;;  %v2753_v25 = vmax.f32 %v2751_v33, %v2752_v48  ;;  %v2760_v34 = vmax.f32 %v2758_v17, %v2759_v2  ;;  %v3430_v60 = vld [vmem:[#allocation4 + $0x52] sm:$0xff] }
 0x3bf   : > { %3398 = vrot.lane.b32.xlu2 %v5799_v38, %s4165_s8  ;;  %v2747_v29 = vrot.slane %v2746_v16, 1  ;;  %v2754_v15 = vrot.slane %v2753_v25, 1  ;;  %v2761_v43 = vrot.slane %v2760_v34, 1 }
 0x3c0   : > { %3105 = vrot.lane.b32.xlu1 %v5751_v3, %s4155_s19  ;;  %v2739_v3 = vmax.f32 %v2737_v19, %v2738_v11 }
 0x3c1   : > { %3447 = vrot.lane.b32.xlu0 %v5806_v58, %s4164_s21  ;;  %v2748_v40 = vmax.f32 %v2746_v16, %v2747_v29  ;;  %v2755_v52 = vmax.f32 %v2753_v25, %v2754_v15  ;;  %v2762_v26 = vmax.f32 %v2760_v34, %v2761_v43 }
 0x3c2   : > { %v2740_v6 = vrot.slane %v2739_v3, 1 }
 0x3c5   : > { %v2228_v50 = vpop.f32.mrf.mxu2 }
 0x3c6   : > { %v2229_v23 = vadd.f32 %v5607_v30, %v2228_v50 }
 0x3c7   : > { %3154 = vrot.lane.b32.xlu2 %v5749_v49, %s4158_s22 }
 0x3c8   : > { %3252 = vrot.lane.b32.xlu1 %v5799_v38, %s4160_s29  ;;  %v2282_v31 = vmax.f32 %v2229_v23, 0.0  ;;  %v2289_v23 = vmax.f32 %v2250_v57, 0.0 }
 0x3c9   : > { %3203 = vrot.lane.b32.xlu0 %v5556_v36, %s4159_s23  ;;  %v2741_v36 = vmax.f32 %v2739_v3, %v2740_v6 }
 0x3ca   : > { %v2327_v35 = vsel %vm2293_vm12, %v2282_v31, -inf  ;;  %v2336_v25 = vsel %vm2293_vm12, %v2289_v23, -inf }
 0x3cb   : > { %v2329_v10 = vmax.f32 %v2327_v35, %v2328_v28  ;;  %v3029_v27 = vsel %vm2987_vm14, %v2748_v40, %v2741_v36 }
 0x3cc   : > { %v3030_v32 = vsel %vm6314_vm0, %v2755_v52, %v3029_v27  ;;  %v2252_v14 = vpop.f32.mrf.mxu3 }
 0x3cd   : > { %v2391_v49 = vrot.slane %v2329_v10, 2  ;;  %v2392_v45 = vrot.slane %v2329_v10, 4  ;;  %v2393_v42 = vrot.slane %v2329_v10, 6  ;;  %v2763_v24 = vsel %vm2454_vm13, %v2329_v10, -inf }
 0x3ce   : > { %v2764_v62 = vrot.slane %v2763_v24, 4  ;;  %v3031_v63 = vsel %vm2991_vm1, %v2762_v26, %v3030_v32 }
 0x3cf   : > { %v2770_v22 = vsel %vm2454_vm13, %v2391_v49, -inf  ;;  %v2777_v21 = vsel %vm2454_vm13, %v2392_v45, -inf  ;;  %v2784_v51 = vsel %vm2454_vm13, %v2393_v42, -inf  ;;  %3301 = vrot.lane.b32.xlu2 %v5806_v58, %s4162_s18 }
 0x3d0   : > { %3400 = vrot.lane.b32.xlu1 %v5822_v56, %s4165_s8  ;;  %v2765_v39 = vmax.f32 %v2763_v24, %v2764_v62  ;;  %v2771_v59 = vrot.slane %v2770_v22, 4  ;;  %v2778_v4 = vrot.slane %v2777_v21, 4  ;;  %v2785_v61 = vrot.slane %v2784_v51, 4 }
 0x3d1   : > { %3351 = vrot.lane.b32.xlu0 %v5795_v55, %s4163_s20  ;;  %v2253_v62 = vadd.f32 %v5607_v30, %v2252_v14 }
 0x3d2   : > { %v2766_v37 = vrot.slane %v2765_v39, 2  ;;  %v2772_v41 = vmax.f32 %v2770_v22, %v2771_v59  ;;  %v2779_v0 = vmax.f32 %v2777_v21, %v2778_v4  ;;  %v2786_v5 = vmax.f32 %v2784_v51, %v2785_v61 }
 0x3d3   : > { %v2290_v4 = vmax.f32 %v2253_v62, 0.0 }
 0x3d4   : > { %v2767_v7 = vmax.f32 %v2765_v39, %v2766_v37  ;;  %v2773_v47 = vrot.slane %v2772_v41, 2  ;;  %v2780_v54 = vrot.slane %v2779_v0, 2  ;;  %v2787_v8 = vrot.slane %v2786_v5, 2 }
 0x3d6   : > { %v2768_v1 = vrot.slane %v2767_v7, 1  ;;  %v2774_v53 = vmax.f32 %v2772_v41, %v2773_v47  ;;  %v2781_v18 = vmax.f32 %v2779_v0, %v2780_v54  ;;  %v2788_v20 = vmax.f32 %v2786_v5, %v2787_v8 }
 0x3d7   : > { %3449 = vrot.lane.b32.xlu2 %v3430_v60, %s4164_s21  ;;  %v2339_v5 = vsel %vm2293_vm12, %v2290_v4, -inf }
 0x3d8   : > { %3156 = vrot.lane.b32.xlu1 %v5806_v58, %s4158_s22  ;;  %v2769_v19 = vmax.f32 %v2767_v7, %v2768_v1  ;;  %v2775_v9 = vrot.slane %v2774_v53, 1  ;;  %v2782_v13 = vrot.slane %v2781_v18, 1  ;;  %v2789_v33 = vrot.slane %v2788_v20, 1 }
 0x3d9   : > { %3107 = vrot.lane.b32.xlu0 %v5799_v38, %s4155_s19 }
 0x3da   : > { %v2776_v11 = vmax.f32 %v2774_v53, %v2775_v9  ;;  %v2783_v16 = vmax.f32 %v2781_v18, %v2782_v13  ;;  %v3032_v48 = vsel %vm2993_vm2, %v2769_v19, %v3031_v63  ;;  %v2790_v50 = vmax.f32 %v2788_v20, %v2789_v33 }
 0x3dc   : > { %v3033_v44 = vsel %vm2995_vm3, %v2776_v11, %v3032_v48 }
 0x3dd   : > { %v3034_v58 = vsel %vm2997_vm5, %v2783_v16, %v3033_v44  ;;  %v2255_v17 = vpop.f32.mrf.mxu3 }
 0x3de   : > { %v3035_v3 = vsel %vm2999_vm15, %v2790_v50, %v3034_v58  ;;  %v2256_v29 = vadd.f32 %v5607_v30, %v2255_v17 }
 0x3df   : > { %3064 = vst.msk [vmem:[#allocation4 + $0x61] sm:$0xff] %vm2293_vm12, %v3035_v3  ;;  %3205 = vrot.lane.b32.xlu2 %v5795_v55, %s4159_s23 }
 0x3e0   : > { %3303 = vrot.lane.b32.xlu1 %v3430_v60, %s4162_s18  ;;  %v2291_v38 = vmax.f32 %v2256_v29, 0.0 }
 0x3e1   : > { %3254 = vrot.lane.b32.xlu0 %v5822_v56, %s4160_s29 }
 0x3e2   : > { %v2337_v31 = vsel %vm2293_vm12, %v2291_v38, -inf }
 0x3e3   : > { %v2338_v28 = vmax.f32 %v2336_v25, %v2337_v31 }
 0x3e5   : > { %v2400_v2 = vrot.slane %v2338_v28, 2  ;;  %v2401_v35 = vrot.slane %v2338_v28, 4  ;;  %v2402_v6 = vrot.slane %v2338_v28, 6  ;;  %v2847_v10 = vsel %vm2454_vm13, %v2338_v28, -inf  ;;  %v3383_v28 = vld [vmem:[#allocation4 + $0x71] sm:$0xff] }
 0x3e6   : > { %v3333_v40 = vld [vmem:[#allocation4 + $0x60] sm:$0xff]  ;;  %v2848_v12 = vrot.slane %v2847_v10, 4 }
 0x3e7   : > { %v5856_v15 = vld [vmem:[#allocation4 + $0x62] sm:$0xff]  ;;  %v2854_v49 = vsel %vm2454_vm13, %v2400_v2, -inf  ;;  %v2861_v45 = vsel %vm2454_vm13, %v2401_v35, -inf  ;;  %3353 = vrot.lane.b32.xlu2 %v3333_v40, %s4163_s20  ;;  %3081 = vst.msk [vmem:[#allocation5 + $0x30] sm:$0xff] %vm2293_vm12, %v3333_v40  ;;  %v2868_v34 = vsel %vm2454_vm13, %v2402_v6, -inf }
 0x3e8   : > { %v5858_v55 = vld [vmem:[#allocation4 + $0x61] sm:$0xff]  ;;  %3451 = vrot.lane.b32.xlu1 %v5856_v15, %s4164_s21  ;;  %v2855_v42 = vrot.slane %v2854_v49, 4  ;;  %v2862_v24 = vrot.slane %v2861_v45, 4  ;;  %v2849_v22 = vmax.f32 %v2847_v10, %v2848_v12  ;;  %v2869_v51 = vrot.slane %v2868_v34, 4  ;;  %v3432_v10 = vld [vmem:[#allocation4 + $0x72] sm:$0xff] }
 0x3e9   : > { %3402 = vrot.lane.b32.xlu0 %v5858_v55, %s4165_s8 }
 0x3ea   : > { %v2856_v36 = vmax.f32 %v2854_v49, %v2855_v42  ;;  %v2863_v21 = vmax.f32 %v2861_v45, %v2862_v24  ;;  %v2850_v61 = vrot.slane %v2849_v22, 2  ;;  %v2870_v27 = vmax.f32 %v2868_v34, %v2869_v51 }
 0x3ec   : > { %v2857_v39 = vrot.slane %v2856_v36, 2  ;;  %v2864_v52 = vrot.slane %v2863_v21, 2  ;;  %v2851_v43 = vmax.f32 %v2849_v22, %v2850_v61  ;;  %v2871_v47 = vrot.slane %v2870_v27, 2 }
 0x3ed   : > { %v2258_v59 = vpop.f32.mrf.mxu3 }
 0x3ee   : > { %v2259_v37 = vadd.f32 %v5607_v30, %v2258_v59  ;;  %v2858_v41 = vmax.f32 %v2856_v36, %v2857_v39  ;;  %v2865_v7 = vmax.f32 %v2863_v21, %v2864_v52  ;;  %v2852_v53 = vrot.slane %v2851_v43, 1 }
 0x3ef   : > { %3109 = vrot.lane.b32.xlu2 %v5822_v56, %s4155_s19  ;;  %v2872_v18 = vmax.f32 %v2870_v27, %v2871_v47 }
 0x3f0   : > { %3207 = vrot.lane.b32.xlu1 %v3333_v40, %s4159_s23  ;;  %v2292_v0 = vmax.f32 %v2259_v37, 0.0  ;;  %v2859_v32 = vrot.slane %v2858_v41, 1  ;;  %v2866_v56 = vrot.slane %v2865_v7, 1  ;;  %v2853_v16 = vmax.f32 %v2851_v43, %v2852_v53 }
 0x3f1   : > { %3158 = vrot.lane.b32.xlu0 %v3430_v60, %s4158_s22  ;;  %v2873_v17 = vrot.slane %v2872_v18, 1 }
 0x3f2   : > { %v2340_v54 = vsel %vm2293_vm12, %v2292_v0, -inf  ;;  %v2860_v13 = vmax.f32 %v2858_v41, %v2859_v32  ;;  %v2867_v58 = vmax.f32 %v2865_v7, %v2866_v56  ;;  %v3434_v32 = vld [vmem:[#allocation4 + $0x92] sm:$0xff] }
 0x3f3   : > { %v2341_v8 = vmax.f32 %v2339_v5, %v2340_v54  ;;  %v2874_v49 = vmax.f32 %v2872_v18, %v2873_v17  ;;  %v3336_v54 = vld [vmem:[#allocation4 + $0x90] sm:$0xff] }
 0x3f4   : > { %v3043_v3 = vsel %vm2987_vm14, %v2860_v13, %v2853_v16  ;;  %vm6317_vm14 = vcmask 588800  }
 0x3f5   : > { %v2403_v14 = vrot.slane %v2341_v8, 2  ;;  %v2404_v30 = vrot.slane %v2341_v8, 4  ;;  %v2405_v1 = vrot.slane %v2341_v8, 6  ;;  %v2875_v20 = vsel %vm2454_vm13, %v2341_v8, -inf  ;;  %v3385_v8 = vld [vmem:[#allocation4 + $0x91] sm:$0xff] }
 0x3f6   : > { %v2876_v60 = vrot.slane %v2875_v20, 4 }
 0x3f7   : > { %3256 = vrot.lane.b32.xlu2 %v5858_v55, %s4160_s29  ;;  %v2882_v26 = vsel %vm2454_vm13, %v2403_v14, -inf  ;;  %v2889_v19 = vsel %vm2454_vm13, %v2404_v30, -inf  ;;  %v2896_v9 = vsel %vm2454_vm13, %v2405_v1, -inf  ;;  %vm6315_vm13 = vmmov %vm6314_vm0 }
 0x3f8   : > { %3355 = vrot.lane.b32.xlu1 %v5778_v46, %s4163_s20  ;;  %v2883_v33 = vrot.slane %v2882_v26, 4  ;;  %v2890_v63 = vrot.slane %v2889_v19, 4  ;;  %v2897_v57 = vrot.slane %v2896_v9, 4  ;;  %v2877_v11 = vmax.f32 %v2875_v20, %v2876_v60 }
 0x3f9   : > { %3305 = vrot.lane.b32.xlu0 %v5856_v15, %s4162_s18  ;;  %v3044_v40 = vsel %vm6315_vm13, %v2867_v58, %v3043_v3 }
 0x3fa   : > { %v2884_v48 = vmax.f32 %v2882_v26, %v2883_v33  ;;  %v2891_v50 = vmax.f32 %v2889_v19, %v2890_v63  ;;  %v2898_v44 = vmax.f32 %v2896_v9, %v2897_v57  ;;  %v2878_v23 = vrot.slane %v2877_v11, 2 }
 0x3fb   : > { %v3045_v36 = vsel %vm2991_vm1, %v2874_v49, %v3044_v40  ;;  %vm6319_vm1 = vmmov %vm6317_vm14 }
 0x3fc   : > { %v2885_v29 = vrot.slane %v2884_v48, 2  ;;  %v2892_v38 = vrot.slane %v2891_v50, 2  ;;  %v2899_v25 = vrot.slane %v2898_v44, 2  ;;  %v2879_v31 = vmax.f32 %v2877_v11, %v2878_v23  ;;  %vm6323_vm0 = vmmov %vm6319_vm1 }
 0x3fe   : > { %v2886_v2 = vmax.f32 %v2884_v48, %v2885_v29  ;;  %v2893_v35 = vmax.f32 %v2891_v50, %v2892_v38  ;;  %v2900_v6 = vmax.f32 %v2898_v44, %v2899_v25  ;;  %v2880_v12 = vrot.slane %v2879_v31, 1 }
 0x3ff   : > { %3404 = vrot.lane.b32.xlu2 %v3383_v28, %s4165_s8 }
 0x400   : > { %3111 = vrot.lane.b32.xlu1 %v5858_v55, %s4155_s19  ;;  %v2887_v45 = vrot.slane %v2886_v2, 1  ;;  %v2894_v42 = vrot.slane %v2893_v35, 1  ;;  %v2901_v24 = vrot.slane %v2900_v6, 1  ;;  %v2881_v62 = vmax.f32 %v2879_v31, %v2880_v12 }
 0x401   : > { %3453 = vrot.lane.b32.xlu0 %v3432_v10, %s4164_s21  ;;  %v3348_v34 = vpop.permute.xlu2 %3347 }
 0x402   : > { %3371 = vst.msk [vmem:[#allocation5 + $0x8] sm:$0xff] %vm3369_vm10, %v3348_v34  ;;  %v2888_v22 = vmax.f32 %v2886_v2, %v2887_v45  ;;  %v2895_v21 = vmax.f32 %v2893_v35, %v2894_v42  ;;  %v3046_v51 = vsel %vm2993_vm2, %v2881_v62, %v3045_v36  ;;  %v2902_v39 = vmax.f32 %v2900_v6, %v2901_v24 }
 0x404   : > { %v3047_v59 = vsel %vm2995_vm3, %v2888_v22, %v3046_v51  ;;  %vm6321_vm3 = vmmov %vm6319_vm1 }
 0x405   : > { %v3048_v55 = vsel %vm2997_vm5, %v2895_v21, %v3047_v59  ;;  %v5974_v59 = vld [vmem:[%s6295_s4] ss:$0 sm:$0xff] }
 0x406   : > { %v3049_v4 = vsel %vm2999_vm15, %v2902_v39, %v3048_v55  ;;  %v3539_v39 = vpop.f32.mrf.mxu1 }
 0x407   : > { %3160 = vrot.lane.b32.xlu2 %v5856_v15, %s4158_s22  ;;  %3066 = vst.msk [vmem:[#allocation4 + $0x81] sm:$0xff] %vm2293_vm12, %v3049_v4  ;;  %vm6316_vm12 = vcmask 589312  }
 0x408   : > { %3258 = vrot.lane.b32.xlu1 %v3383_v28, %s4160_s29  ;;  %vm6318_vm15 = vmmov %vm6316_vm12 }
 0x409   : > { %3209 = vrot.lane.b32.xlu0 %v5778_v46, %s4159_s23  ;;  %v3104_v61 = vpop.permute.xlu2 %3103  ;;  %vm6320_vm2 = vmmov %vm6316_vm12 }
 0x40a   : > { %3126 = vst.msk [vmem:[#allocation5 + $0x10] sm:$0xff] %vm3123_vm4, %v3104_v61  ;;  %vm6322_vm5 = vmmov %vm6320_vm2  ;;  %v3540_v61 = vadd.f32 %v5974_v59, %v3539_v39 }
 0x40b   : > { %vm6324_vm13 = vmmov %vm6320_vm2 }
 0x40e   : > { %v3384_v52 = vld [vmem:[#allocation4 + $0x81] sm:$0xff] }
 0x40f   : > { %3307 = vrot.lane.b32.xlu2 %v3432_v10, %s4162_s18  ;;  %v3335_v27 = vld [vmem:[#allocation4 + $0x80] sm:$0xff] }
 0x410   : > { %3406 = vrot.lane.b32.xlu1 %v3384_v52, %s4165_s8  ;;  %v3433_v15 = vld [vmem:[#allocation4 + $0x82] sm:$0xff] }
 0x411   : > { %3357 = vrot.lane.b32.xlu0 %v3335_v27, %s4163_s20  ;;  %v3251_v37 = vpop.permute.xlu2 %3250 }
 0x417   : > { %3455 = vrot.lane.b32.xlu2 %v3433_v15, %s4164_s21 }
 0x418   : > { %3162 = vrot.lane.b32.xlu1 %v3432_v10, %s4158_s22 }
 0x419   : > { %3113 = vrot.lane.b32.xlu0 %v3383_v28, %s4155_s19  ;;  %v3399_v46 = vpop.permute.xlu2 %3398 }
 0x41a   : > { %v3446_v41 = vpop.permute.xlu1 %3445 }
 0x41b   : > { %v3397_v0 = vpop.permute.xlu0 %3396 }
 0x41c   : > { %3420 = vst.msk [vmem:[#allocation5 + $0x8] sm:$0xff] %vm3418_vm11, %v3397_v0 }
 0x41d   : > { %3469 = vst.msk [vmem:[#allocation5 + $0x8] sm:$0xff] %vm6316_vm12, %v3446_v41  ;;  %vm6325_vm12 = vmmov %vm6323_vm0 }
 0x41f   : > { %3211 = vrot.lane.b32.xlu2 %v3335_v27, %s4159_s23  ;;  %v3563_v27 = vmax.f32 %v3540_v61, 0.0 }
 0x420   : > { %3309 = vrot.lane.b32.xlu1 %v3433_v15, %s4162_s18  ;;  %s4168_s18 = smov 112  }
 0x421   : > { %3260 = vrot.lane.b32.xlu0 %v3384_v52, %s4160_s29  ;;  %v3155_v5 = vpop.permute.xlu2 %3154 }
 0x422   : > { %v3202_v43 = vpop.permute.xlu1 %3201 }
 0x423   : > { %v3153_v7 = vpop.permute.xlu0 %3152 }
 0x424   : > { %3175 = vst.msk [vmem:[#allocation5 + $0x10] sm:$0xff] %vm3172_vm6, %v3153_v7  ;;  %v3477_v47 = vld [vmem:[#allocation5 + $0x8] sm:$0xff] }
 0x425   : > { %3224 = vst.msk [vmem:[#allocation5 + $0x10] sm:$0xff] %vm3221_vm7, %v3202_v43  ;;  %4011 = vmatmul.msk.f32.gmra.mxu1 %vm6317_vm14, %v3477_v47  ;;  %vm6326_vm14 = vmmov %vm6320_vm2 }
 0x426   : > { %3273 = vst.msk [vmem:[#allocation5 + $0x10] sm:$0xff] %vm3270_vm8, %v3251_v37 }
 0x427   : > { %3359 = vrot.lane.b32.xlu2 %v3336_v54, %s4163_s20 }
 0x428   : > { %3457 = vrot.lane.b32.xlu1 %v3434_v32, %s4164_s21 }
 0x429   : > { %3408 = vrot.lane.b32.xlu0 %v3385_v8, %s4165_s8  ;;  %v3302_v14 = vpop.permute.xlu2 %3301 }
 0x42a   : > { %v3350_v30 = vpop.permute.xlu1 %3349 }
 0x42b   : > { %v3300_v1 = vpop.permute.xlu0 %3299 }
 0x42c   : > { %3322 = vst.msk [vmem:[#allocation5 + $0x10] sm:$0xff] %vm3319_vm9, %v3300_v1 }
 0x42d   : > { %3372 = vst.msk [vmem:[#allocation5 + $0x10] sm:$0xff] %vm3369_vm10, %v3350_v30 }
 0x42e   : > { %3421 = vst.msk [vmem:[#allocation5 + $0x10] sm:$0xff] %vm3418_vm11, %v3399_v46 }
 0x431   : > { %v3450_v53 = vpop.permute.xlu2 %3449 }
 0x432   : > { %v3106_v56 = vpop.permute.xlu1 %3105 }
 0x433   : > { %3127 = vst.msk [vmem:[#allocation5 + $0x18] sm:$0xff] %vm3123_vm4, %v3106_v56  ;;  %v3448_v18 = vpop.permute.xlu0 %3447 }
 0x434   : > { %3176 = vst.msk [vmem:[#allocation5 + $0x18] sm:$0xff] %vm3172_vm6, %v3155_v5 }
 0x435   : > { %3470 = vst.msk [vmem:[#allocation5 + $0x10] sm:$0xff] %vm6318_vm15, %v3448_v18  ;;  %vm6327_vm15 = vmmov %vm6323_vm0 }
 0x439   : > { %v3206_v20 = vpop.permute.xlu2 %3205 }
 0x43a   : > { %v3253_v60 = vpop.permute.xlu1 %3252 }
 0x43b   : > { %v3204_v26 = vpop.permute.xlu0 %3203 }
 0x43c   : > { %3225 = vst.msk [vmem:[#allocation5 + $0x18] sm:$0xff] %vm3221_vm7, %v3204_v26  ;;  %v3478_v19 = vld [vmem:[#allocation5 + $0x10] sm:$0xff] }
 0x43d   : > { %3274 = vst.msk [vmem:[#allocation5 + $0x18] sm:$0xff] %vm3270_vm8, %v3253_v60  ;;  %4012 = vmatmul.msk.f32.gmra.mxu1 %vm6319_vm1, %v3478_v19 }
 0x43e   : > { %3323 = vst.msk [vmem:[#allocation5 + $0x18] sm:$0xff] %vm3319_vm9, %v3302_v14 }
 0x441   : > { %v3354_v13 = vpop.permute.xlu2 %3353 }
 0x442   : > { %v3401_v9 = vpop.permute.xlu1 %3400 }
 0x443   : > { %v3352_v33 = vpop.permute.xlu0 %3351 }
 0x444   : > { %3373 = vst.msk [vmem:[#allocation5 + $0x18] sm:$0xff] %vm3369_vm10, %v3352_v33 }
 0x445   : > { %3422 = vst.msk [vmem:[#allocation5 + $0x18] sm:$0xff] %vm3418_vm11, %v3401_v9 }
 0x446   : > { %3471 = vst.msk [vmem:[#allocation5 + $0x18] sm:$0xff] %vm6320_vm2, %v3450_v53 }
 0x449   : > { %v3110_v57 = vpop.permute.xlu2 %3109 }
 0x44a   : > { %v3157_v63 = vpop.permute.xlu1 %3156  ;;  %3129 = vst.msk [vmem:[#allocation5 + $0x28] sm:$0xff] %vm3123_vm4, %v3110_v57 }
 0x44b   : > { %v3108_v11 = vpop.permute.xlu0 %3107 }
 0x44c   : > { %3128 = vst.msk [vmem:[#allocation5 + $0x20] sm:$0xff] %vm3123_vm4, %v3108_v11 }
 0x44d   : > { %3177 = vst.msk [vmem:[#allocation5 + $0x20] sm:$0xff] %vm3172_vm6, %v3157_v63  ;;  %v3479_v16 = vld [vmem:[#allocation5 + $0x18] sm:$0xff] }
 0x44e   : > { %3226 = vst.msk [vmem:[#allocation5 + $0x20] sm:$0xff] %vm3221_vm7, %v3206_v20  ;;  %4013 = vmatmul.msk.f32.gmra.mxu1 %vm6321_vm3, %v3479_v16  ;;  %v3725_v20 = vlaneseq }
 0x450   : > { %vm6052_vm3 = vcmp.lt.s32.totalorder %v3725_v20, 48 }
 0x451   : > { %v3257_v44 = vpop.permute.xlu2 %3256 }
 0x452   : > { %v3304_v48 = vpop.permute.xlu1 %3303 }
 0x453   : > { %v3255_v50 = vpop.permute.xlu0 %3254 }
 0x454   : > { %3275 = vst.msk [vmem:[#allocation5 + $0x20] sm:$0xff] %vm3270_vm8, %v3255_v50 }
 0x455   : > { %3324 = vst.msk [vmem:[#allocation5 + $0x20] sm:$0xff] %vm3319_vm9, %v3304_v48 }
 0x456   : > { %3374 = vst.msk [vmem:[#allocation5 + $0x20] sm:$0xff] %vm3369_vm10, %v3354_v13 }
 0x459   : > { %v3405_v23 = vpop.permute.xlu2 %3404 }
 0x45a   : > { %v3452_v58 = vpop.permute.xlu1 %3451 }
 0x45b   : > { %v3403_v17 = vpop.permute.xlu0 %3402 }
 0x45c   : > { %3423 = vst.msk [vmem:[#allocation5 + $0x20] sm:$0xff] %vm3418_vm11, %v3403_v17 }
 0x45d   : > { %3472 = vst.msk [vmem:[#allocation5 + $0x20] sm:$0xff] %vm6322_vm5, %v3452_v58 }
 0x461   : > { %v3161_v28 = vpop.permute.xlu2 %3160 }
 0x462   : > { %v3208_v3 = vpop.permute.xlu1 %3207 }
 0x463   : > { %v3159_v29 = vpop.permute.xlu0 %3158 }
 0x464   : > { %3178 = vst.msk [vmem:[#allocation5 + $0x28] sm:$0xff] %vm3172_vm6, %v3159_v29  ;;  %v3480_v38 = vld [vmem:[#allocation5 + $0x20] sm:$0xff] }
 0x465   : > { %3227 = vst.msk [vmem:[#allocation5 + $0x28] sm:$0xff] %vm3221_vm7, %v3208_v3  ;;  %4014 = vmatmul.msk.f32.gmra.mxu1 %vm6323_vm0, %v3480_v38 }
 0x466   : > { %3276 = vst.msk [vmem:[#allocation5 + $0x28] sm:$0xff] %vm3270_vm8, %v3257_v44 }
 0x469   : > { %v3308_v6 = vpop.permute.xlu2 %3307 }
 0x46a   : > { %v3356_v25 = vpop.permute.xlu1 %3355 }
 0x46b   : > { %v3306_v31 = vpop.permute.xlu0 %3305 }
 0x46c   : > { %3325 = vst.msk [vmem:[#allocation5 + $0x28] sm:$0xff] %vm3319_vm9, %v3306_v31 }
 0x46d   : > { %3375 = vst.msk [vmem:[#allocation5 + $0x28] sm:$0xff] %vm3369_vm10, %v3356_v25 }
 0x46e   : > { %3424 = vst.msk [vmem:[#allocation5 + $0x28] sm:$0xff] %vm3418_vm11, %v3405_v23 }
 0x471   : > { %v3456_v49 = vpop.permute.xlu2 %3455 }
 0x472   : > { %v3112_v2 = vpop.permute.xlu1 %3111 }
 0x473   : > { %v3454_v35 = vpop.permute.xlu0 %3453  ;;  %3130 = vst.msk [vmem:[#allocation5 + $0x30] sm:$0xff] %vm3123_vm4, %v3112_v2 }
 0x474   : > { %3179 = vst.msk [vmem:[#allocation5 + $0x30] sm:$0xff] %vm3172_vm6, %v3161_v28 }
 0x475   : > { %3473 = vst.msk [vmem:[#allocation5 + $0x28] sm:$0xff] %vm6324_vm13, %v3454_v35  ;;  %vm6146_vm13 = vcmp.lt.s32.totalorder %v3725_v20, 64 }
 0x479   : > { %v3212_v24 = vpop.permute.xlu2 %3211 }
 0x47a   : > { %v3259_v10 = vpop.permute.xlu1 %3258 }
 0x47b   : > { %v3210_v40 = vpop.permute.xlu0 %3209 }
 0x47c   : > { %3228 = vst.msk [vmem:[#allocation5 + $0x30] sm:$0xff] %vm3221_vm7, %v3210_v40  ;;  %v3481_v12 = vld [vmem:[#allocation5 + $0x28] sm:$0xff] }
 0x47d   : > { %3277 = vst.msk [vmem:[#allocation5 + $0x30] sm:$0xff] %vm3270_vm8, %v3259_v10  ;;  %4015 = vmatmul.msk.f32.gmra.mxu1 %vm6325_vm12, %v3481_v12 }
 0x47e   : > { %3326 = vst.msk [vmem:[#allocation5 + $0x30] sm:$0xff] %vm3319_vm9, %v3308_v6 }
 0x481   : > { %v3360_v22 = vpop.permute.xlu2 %3359 }
 0x482   : > { %v3407_v45 = vpop.permute.xlu1 %3406 }
 0x483   : > { %v3358_v42 = vpop.permute.xlu0 %3357 }
 0x484   : > { %3376 = vst.msk [vmem:[#allocation5 + $0x30] sm:$0xff] %vm3369_vm10, %v3358_v42 }
 0x485   : > { %3425 = vst.msk [vmem:[#allocation5 + $0x30] sm:$0xff] %vm3418_vm11, %v3407_v45 }
 0x486   : > { %3474 = vst.msk [vmem:[#allocation5 + $0x30] sm:$0xff] %vm6326_vm14, %v3456_v49  ;;  %vm6170_vm14 = vcmp.ge.s32.totalorder %v3725_v20, 64 }
 0x48a   : > { %v3163_v34 = vpop.permute.xlu1 %3162 }
 0x48b   : > { %v3114_v62 = vpop.permute.xlu0 %3113 }
 0x48c   : > { %3131 = vst.msk [vmem:[#allocation5 + $0x38] sm:$0xff] %vm3123_vm4, %v3114_v62  ;;  %vm6328_vm4 = vmmov %vm6320_vm2  ;;  %vm6047_vm2 = vcmp.ge.s32.totalorder %v3725_v20, 32 }
 0x48d   : > { %3180 = vst.msk [vmem:[#allocation5 + $0x38] sm:$0xff] %vm3172_vm6, %v3163_v34  ;;  %v3482_v36 = vld [vmem:[#allocation5 + $0x30] sm:$0xff]  ;;  %vm3571_vm6 = vcmask 130048   ;;  %vm3744_vm5 = vmand %vm6047_vm2, %vm6052_vm3  ;;  %vm3783_vm2 = vcmp.lt.s32.totalorder %v3725_v20, 128 }
 0x48e   : > { %3229 = vst.msk [vmem:[#allocation5 + $0x38] sm:$0xff] %vm3221_vm7, %v3212_v24  ;;  %4016 = vmatmul.msk.f32.gmra.mxu1 %vm6327_vm15, %v3482_v36  ;;  %vm6329_vm7 = vmmov %vm6323_vm0  ;;  %v3572_v41 = vsel %vm3571_vm6, %v3563_v27, -inf  ;;  %vm6141_vm0 = vcmp.ge.s32.totalorder %v3725_v20, 48  ;;  %vm6175_vm15 = vcmp.lt.s32.totalorder %v3725_v20, 80 }
 0x48f   : > { %vm3752_vm12 = vmand %vm6141_vm0, %vm6146_vm13 }
 0x492   : > { %v3310_v21 = vpop.permute.xlu1 %3309 }
 0x493   : > { %v3261_v51 = vpop.permute.xlu0 %3260 }
 0x494   : > { %3278 = vst.msk [vmem:[#allocation5 + $0x38] sm:$0xff] %vm3270_vm8, %v3261_v51  ;;  %vm3612_vm8 = vcmask 123904  }
 0x495   : > { %3327 = vst.msk [vmem:[#allocation5 + $0x38] sm:$0xff] %vm3319_vm9, %v3310_v21  ;;  %vm5987_vm9 = vcmp.lt.s32.totalorder %v3725_v20, 16 }
 0x496   : > { %3377 = vst.msk [vmem:[#allocation5 + $0x38] sm:$0xff] %vm3369_vm10, %v3360_v22  ;;  %vm6015_vm10 = vcmp.ge.s32.totalorder %v3725_v20, 16 }
 0x49a   : > { %v3458_v4 = vpop.permute.xlu1 %3457 }
 0x49b   : > { %v3409_v55 = vpop.permute.xlu0 %3408 }
 0x49c   : > { %3426 = vst.msk [vmem:[#allocation5 + $0x38] sm:$0xff] %vm3418_vm11, %v3409_v55  ;;  %vm6020_vm11 = vcmp.lt.s32.totalorder %v3725_v20, 32 }
 0x49d   : > { %3475 = vst.msk [vmem:[#allocation5 + $0x38] sm:$0xff] %vm6328_vm4, %v3458_v4  ;;  %vm3736_vm1 = vmand %vm6015_vm10, %vm6020_vm11  ;;  %vm6180_vm4 = vcmp.ge.s32.totalorder %v3725_v20, 80  ;;  %vm3775_vm10 = vcmp.lt.s32.totalorder %v3725_v20, 112 }
 0x4a2   : > { %v3542_v52 = vpop.f32.mrf.mxu1 }
 0x4a3   : > { %v3543_v37 = vadd.f32 %v5974_v59, %v3542_v52 }
 0x4a4   : > { %v3483_v15 = vld [vmem:[#allocation5 + $0x38] sm:$0xff] }
 0x4a5   : > { %v3564_v46 = vmax.f32 %v3543_v37, 0.0  ;;  %4017 = vmatmul.msk.f32.gmra.mxu1 %vm6329_vm7, %v3483_v15  ;;  %vm3760_vm7 = vmand %vm6170_vm14, %vm6175_vm15 }
 0x4a7   : > { %v3573_v0 = vsel %vm3571_vm6, %v3564_v46, -inf }
 0x4a8   : > { %v3574_v5 = vmax.f32 %v3572_v41, %v3573_v0 }
 0x4aa   : > { %v3588_v43 = vrot.slane %v3574_v5, 2  ;;  %v3589_v7 = vrot.slane %v3574_v5, 4  ;;  %v3613_v47 = vsel %vm3612_vm8, %v3574_v5, -inf  ;;  %v3590_v35 = vrot.slane %v3574_v5, 6 }
 0x4ab   : > { %v3614_v54 = vrot.slane %v3613_v47, 4 }
 0x4ac   : > { %v3627_v8 = vsel %vm3612_vm8, %v3589_v7, -inf  ;;  %v3620_v32 = vsel %vm3612_vm8, %v3588_v43, -inf  ;;  %v3634_v45 = vsel %vm3612_vm8, %v3590_v35, -inf }
 0x4ad   : > { %v3628_v14 = vrot.slane %v3627_v8, 4  ;;  %v3621_v30 = vrot.slane %v3620_v32, 4  ;;  %v3615_v1 = vmax.f32 %v3613_v47, %v3614_v54  ;;  %v3635_v22 = vrot.slane %v3634_v45, 4 }
 0x4af   : > { %v3629_v53 = vmax.f32 %v3627_v8, %v3628_v14  ;;  %v3622_v56 = vmax.f32 %v3620_v32, %v3621_v30  ;;  %v3616_v18 = vrot.slane %v3615_v1, 2  ;;  %v3636_v43 = vmax.f32 %v3634_v45, %v3635_v22 }
 0x4b1   : > { %v3630_v60 = vrot.slane %v3629_v53, 2  ;;  %v3623_v26 = vrot.slane %v3622_v56, 2  ;;  %v3617_v19 = vmax.f32 %v3615_v1, %v3616_v18  ;;  %v3637_v18 = vrot.slane %v3636_v43, 2 }
 0x4b3   : > { %v3631_v9 = vmax.f32 %v3629_v53, %v3630_v60  ;;  %v3624_v13 = vmax.f32 %v3622_v56, %v3623_v26  ;;  %v3618_v33 = vrot.slane %v3617_v19, 1 }
 0x4b5   : > { %v3632_v57 = vrot.slane %v3631_v9, 1  ;;  %v3625_v11 = vrot.slane %v3624_v13, 1  ;;  %v3619_v16 = vmax.f32 %v3617_v19, %v3618_v33 }
 0x4b7   : > { %v3633_v48 = vmax.f32 %v3631_v9, %v3632_v57  ;;  %v3626_v50 = vmax.f32 %v3624_v13, %v3625_v11  ;;  %3729 = vst.msk [vmem:[#allocation6] sm:$0x1] %vm5987_vm9, %v3619_v16 }
 0x4b9   : > { %3739 = vrot.lane.b32.xlu1 %v3633_v48, %s4160_s29  ;;  %3731 = vrot.lane.b32.xlu2 %v3626_v50, %s4158_s22 }
 0x4ba   : > { %v3545_v44 = vpop.f32.mrf.mxu1 }
 0x4bb   : > { %v3546_v23 = vadd.f32 %v5974_v59, %v3545_v44  ;;  %v3638_v44 = vmax.f32 %v3636_v43, %v3637_v18 }
 0x4bd   : > { %v3565_v29 = vmax.f32 %v3546_v23, 0.0 }
 0x4bf   : > { %v3575_v31 = vsel %vm3571_vm6, %v3565_v29, -inf }
 0x4cb   : > { %v3548_v58 = vpop.f32.mrf.mxu1 }
 0x4cc   : > { %v3549_v17 = vadd.f32 %v5974_v59, %v3548_v58 }
 0x4ce   : > { %v3566_v3 = vmax.f32 %v3549_v17, 0.0 }
 0x4d0   : > { %v3576_v25 = vsel %vm3571_vm6, %v3566_v3, -inf }
 0x4d1   : > { %v5999_v28 = vmax.f32 %v3575_v31, %v3576_v25  ;;  %v3639_v31 = vrot.slane %v3638_v44, 1 }
 0x4d3   : > { %v3591_v6 = vrot.slane %v5999_v28, 2  ;;  %v3641_v36 = vsel %vm3612_vm8, %v5999_v28, -inf }
 0x4d4   : > { %v3642_v52 = vrot.slane %v3641_v36, 4 }
 0x4d5   : > { %v3648_v42 = vsel %vm3612_vm8, %v3591_v6, -inf  ;;  %v3640_v6 = vmax.f32 %v3638_v44, %v3639_v31 }
 0x4d6   : > { %v3649_v21 = vrot.slane %v3648_v42, 4  ;;  %v3643_v14 = vmax.f32 %v3641_v36, %v3642_v52 }
 0x4d8   : > { %v3650_v7 = vmax.f32 %v3648_v42, %v3649_v21  ;;  %v3644_v33 = vrot.slane %v3643_v14, 2  ;;  %v3827_v21 = vld [vmem:[%s6296_s5 + $0x20] sm:$0xff] }
 0x4da   : > { %v3651_v9 = vrot.slane %v3650_v7, 2 }
 0x4dc   : > { %v3652_v29 = vmax.f32 %v3650_v7, %v3651_v9 }
 0x4e2   : > { %v3551_v38 = vpop.f32.mrf.mxu1 }
 0x4e3   : > { %v3552_v2 = vadd.f32 %v5974_v59, %v3551_v38  ;;  %v3645_v38 = vmax.f32 %v3643_v14, %v3644_v33 }
 0x4e5   : > { %v3567_v40 = vmax.f32 %v3552_v2, 0.0  ;;  %v3653_v2 = vrot.slane %v3652_v29, 1  ;;  %v3646_v35 = vrot.slane %v3645_v38, 1 }
 0x4e7   : > { %v3578_v24 = vsel %vm3571_vm6, %v3567_v40, -inf  ;;  %v3647_v63 = vmax.f32 %v3645_v38, %v3646_v35 }
 0x4fa   : > { %v3554_v10 = vpop.f32.mrf.mxu1 }
 0x4fb   : > { %v3555_v12 = vadd.f32 %v5974_v59, %v3554_v10  ;;  %v3654_v10 = vmax.f32 %v3652_v29, %v3653_v2 }
 0x4fd   : > { %v3568_v49 = vmax.f32 %v3555_v12, 0.0 }
 0x4ff   : > { %v3579_v34 = vsel %vm3571_vm6, %v3568_v49, -inf  ;;  %v3592_v49 = vrot.slane %v5999_v28, 4 }
 0x500   : > { %v3580_v62 = vmax.f32 %v3578_v24, %v3579_v34  ;;  %v3593_v34 = vrot.slane %v5999_v28, 6 }
 0x501   : > { %v3655_v36 = vsel %vm3612_vm8, %v3592_v49, -inf  ;;  %v3836_v49 = vld [vmem:[%s6296_s5 + $0x68] sm:$0xff] }
 0x502   : > { %v3594_v51 = vrot.slane %v3580_v62, 2  ;;  %v3595_v39 = vrot.slane %v3580_v62, 4  ;;  %v3596_v55 = vrot.slane %v3580_v62, 6  ;;  %v3669_v4 = vsel %vm3612_vm8, %v3580_v62, -inf }
 0x503   : > { %v3670_v61 = vrot.slane %v3669_v4, 4  ;;  %v3662_v28 = vsel %vm3612_vm8, %v3593_v34, -inf  ;;  %v3834_v34 = vld [vmem:[%s6296_s5 + $0x58] sm:$0xff] }
 0x504   : > { %v3676_v27 = vsel %vm3612_vm8, %v3594_v51, -inf  ;;  %v3690_v37 = vsel %vm3612_vm8, %v3596_v55, -inf  ;;  %v3683_v15 = vsel %vm3612_vm8, %v3595_v39, -inf  ;;  %v3656_v55 = vrot.slane %v3655_v36, 4 }
 0x505   : > { %v3677_v46 = vrot.slane %v3676_v27, 4  ;;  %v3691_v41 = vrot.slane %v3690_v37, 4  ;;  %v3684_v0 = vrot.slane %v3683_v15, 4  ;;  %v3671_v5 = vmax.f32 %v3669_v4, %v3670_v61 }
 0x507   : > { %v3678_v47 = vmax.f32 %v3676_v27, %v3677_v46  ;;  %v3692_v54 = vmax.f32 %v3690_v37, %v3691_v41  ;;  %v3685_v8 = vmax.f32 %v3683_v15, %v3684_v0  ;;  %v3672_v32 = vrot.slane %v3671_v5, 2 }
 0x508   : > { %v3663_v46 = vrot.slane %v3662_v28, 4 }
 0x509   : > { %v3679_v30 = vrot.slane %v3678_v47, 2  ;;  %v3693_v1 = vrot.slane %v3692_v54, 2  ;;  %v3686_v53 = vrot.slane %v3685_v8, 2  ;;  %v3673_v56 = vmax.f32 %v3671_v5, %v3672_v32 }
 0x50a   : > { %v3657_v5 = vmax.f32 %v3655_v36, %v3656_v55  ;;  %v3833_v36 = vld [vmem:[%s6296_s5 + $0x50] sm:$0xff]  ;;  %v3831_v55 = vld [vmem:[%s6296_s5 + $0x40] sm:$0xff] }
 0x50b   : > { %v3680_v60 = vmax.f32 %v3678_v47, %v3679_v30  ;;  %v3694_v26 = vmax.f32 %v3692_v54, %v3693_v1  ;;  %v3687_v19 = vmax.f32 %v3685_v8, %v3686_v53  ;;  %v3674_v57 = vrot.slane %v3673_v56, 1  ;;  %v3557_v40 = vpop.f32.mrf.mxu1 }
 0x50c   : > { %v3558_v12 = vadd.f32 %v5974_v59, %v3557_v40  ;;  %v3664_v30 = vmax.f32 %v3662_v28, %v3663_v46  ;;  %v3658_v1 = vrot.slane %v3657_v5, 2  ;;  %v3837_v40 = vld [vmem:[%s6296_s5 + $0x70] sm:$0xff]  ;;  %v3847_v28 = vld [vmem:[%s6296_s5 + $0xc0] sm:$0xff] }
 0x50d   : > { %v3681_v11 = vrot.slane %v3680_v60, 1  ;;  %v3695_v16 = vrot.slane %v3694_v26, 1  ;;  %v3688_v48 = vrot.slane %v3687_v19, 1  ;;  %v3675_v58 = vmax.f32 %v3673_v56, %v3674_v57 }
 0x50e   : > { %v3569_v42 = vmax.f32 %v3558_v12, 0.0  ;;  %v3665_v33 = vrot.slane %v3664_v30, 2  ;;  %v3659_v57 = vmax.f32 %v3657_v5, %v3658_v1  ;;  %v3853_v12 = vld [vmem:[%s6296_s5 + $0xf0] sm:$0xff] }
 0x50f   : > { %v3682_v17 = vmax.f32 %v3680_v60, %v3681_v11  ;;  %v3696_v23 = vmax.f32 %v3694_v26, %v3695_v16  ;;  %v3689_v3 = vmax.f32 %v3687_v19, %v3688_v48  ;;  %3786 = vst.msk [vmem:[#allocation6 + $0x1] sm:$0x1] %vm5987_vm9, %v3675_v58  ;;  %v3825_v1 = vld [vmem:[%s6296_s5 + $0x10] sm:$0xff]  ;;  %vm3774_vm9 = vcmp.ge.s32.totalorder %v3725_v20, 96 }
 0x510   : > { %v3581_v51 = vsel %vm3571_vm6, %v3569_v42, -inf  ;;  %v3835_v42 = vld [vmem:[%s6296_s5 + $0x60] sm:$0xff]  ;;  %vm3776_vm11 = vmand %vm3774_vm9, %vm3775_vm10 }
 0x511   : > { %3788 = vrot.lane.b32.xlu0 %v3682_v17, %s4158_s22  ;;  %3798 = vrot.lane.b32.xlu1 %v3696_v23, %s4163_s20  ;;  %s4166_s22 = smov 80   ;;  %v3666_v23 = vmax.f32 %v3664_v30, %v3665_v33  ;;  %v3842_v30 = vld [vmem:[%s6296_s5 + $0x98] sm:$0xff] }
 0x512   : > { %3793 = vrot.lane.b32.xlu2 %v3689_v3, %s4160_s29  ;;  %s4167_s29 = smov 96   ;;  %v3660_v3 = vrot.slane %v3659_v57, 1 }
 0x513   : > { %v3732_v25 = vpop.permute.xlu2 %3731  ;;  %v3667_v38 = vrot.slane %v3666_v23, 1 }
 0x514   : > { %3737 = vst.msk [vmem:[#allocation6] sm:$0x1] %vm3736_vm1, %v3732_v25  ;;  %v3661_v25 = vmax.f32 %v3659_v57, %v3660_v3 }
 0x515   : > { %v3668_v2 = vmax.f32 %v3666_v23, %v3667_v38 }
 0x519   : > { %3747 = vrot.lane.b32.xlu0 %v3640_v6, %s4163_s20  ;;  %3763 = vrot.lane.b32.xlu1 %v3654_v10, %s4166_s22  ;;  %v3838_v10 = vld [vmem:[%s6296_s5 + $0x78] sm:$0xff]  ;;  %s270_s20 = scalar_lea.vmem [#allocation7], %s269_s13 }
 0x51a   : > { %3755 = vrot.lane.b32.xlu2 %v3647_v63, %s4164_s21  ;;  %v3854_v63 = vld [vmem:[%s6296_s5 + $0xf8] sm:$0xff]  ;;  %3861 = vmatpush.msrb.mxu2 %v3838_v10 }
 0x51b   : > { %3881 = vmatpush.msrb.mxu3 %v3854_v63 }
 0x51c   : > { %3862 = vmatpush.msrb.mxu2 %v3837_v40 }
 0x51d   : > { %3882 = vmatpush.msrb.mxu3 %v3853_v12 }
 0x51e   : > { %3863 = vmatpush.msrb.mxu2 %v3836_v49 }
 0x520   : > { %3864 = vmatpush.msrb.mxu2 %v3835_v42 }
 0x522   : > { %v3560_v45 = vpop.f32.mrf.mxu1  ;;  %3865 = vmatpush.msrb.mxu2 %v3834_v34 }
 0x523   : > { %v3561_v24 = vadd.f32 %v5974_v59, %v3560_v45  ;;  %v3852_v45 = vld [vmem:[%s6296_s5 + $0xe8] sm:$0xff] }
 0x524   : > { %3883 = vmatpush.msrb.mxu3 %v3852_v45  ;;  %3866 = vmatpush.msrb.mxu2 %v3833_v36 }
 0x525   : > { %v3570_v62 = vmax.f32 %v3561_v24, 0.0  ;;  %v3851_v24 = vld [vmem:[%s6296_s5 + $0xe0] sm:$0xff] }
 0x526   : > { %3884 = vmatpush.msrb.mxu3 %v3851_v24 }
 0x527   : > { %v3582_v39 = vsel %vm3571_vm6, %v3570_v62, -inf  ;;  %v3850_v62 = vld [vmem:[%s6296_s5 + $0xd8] sm:$0xff]  ;;  %vm6185_vm6 = vcmp.lt.s32.totalorder %v3725_v20, 96 }
 0x528   : > { %v3583_v59 = vmax.f32 %v3581_v51, %v3582_v39  ;;  %3885 = vmatpush.msrb.mxu3 %v3850_v62  ;;  %v3849_v51 = vld [vmem:[%s6296_s5 + $0xd0] sm:$0xff]  ;;  %v3832_v39 = vld [vmem:[%s6296_s5 + $0x48] sm:$0xff] }
 0x529   : > { %3867 = vmatpush.msrb.mxu2 %v3832_v39 }
 0x52a   : > { %v3597_v4 = vrot.slane %v3583_v59, 2  ;;  %v3598_v61 = vrot.slane %v3583_v59, 4  ;;  %v3599_v52 = vrot.slane %v3583_v59, 6  ;;  %v3697_v27 = vsel %vm3612_vm8, %v3583_v59, -inf  ;;  %3886 = vmatpush.msrb.mxu3 %v3849_v51  ;;  %v3848_v59 = vld [vmem:[%s6296_s5 + $0xc8] sm:$0xff] }
 0x52b   : > { %v3698_v37 = vrot.slane %v3697_v27, 4  ;;  %v3740_v15 = vpop.permute.xlu1 %3739  ;;  %3868 = vmatpush.msrb.mxu2 %v3831_v55 }
 0x52c   : > { %3745 = vst.msk [vmem:[#allocation6] sm:$0x1] %vm3744_vm5, %v3740_v15  ;;  %v3711_v41 = vsel %vm3612_vm8, %v3598_v61, -inf  ;;  %v3704_v0 = vsel %vm3612_vm8, %v3597_v4, -inf  ;;  %v3718_v54 = vsel %vm3612_vm8, %v3599_v52, -inf  ;;  %3887 = vmatpush.msrb.mxu3 %v3848_v59  ;;  %v3830_v4 = vld [vmem:[%s6296_s5 + $0x38] sm:$0xff]  ;;  %vm3768_vm8 = vmand %vm6180_vm4, %vm6185_vm6 }
 0x52d   : > { %v3699_v43 = vmax.f32 %v3697_v27, %v3698_v37  ;;  %v3712_v7 = vrot.slane %v3711_v41, 4  ;;  %v3705_v47 = vrot.slane %v3704_v0, 4  ;;  %v3719_v60 = vrot.slane %v3718_v54, 4  ;;  %v3846_v61 = vld [vmem:[%s6296_s5 + $0xb8] sm:$0xff]  ;;  %v3829_v52 = vld [vmem:[%s6296_s5 + $0x30] sm:$0xff]  ;;  %3869 = vmatpush.msrb.mxu2 %v3830_v4  ;;  %v3828_v37 = vld [vmem:[%s6296_s5 + $0x28] sm:$0xff] }
 0x52e   : > { %3888 = vmatpush.msrb.mxu3 %v3847_v28  ;;  %v3845_v27 = vld [vmem:[%s6296_s5 + $0xb0] sm:$0xff]  ;;  %v3844_v15 = vld [vmem:[%s6296_s5 + $0xa8] sm:$0xff] }
 0x52f   : > { %v3700_v8 = vrot.slane %v3699_v43, 2  ;;  %v3713_v32 = vmax.f32 %v3711_v41, %v3712_v7  ;;  %v3706_v14 = vmax.f32 %v3704_v0, %v3705_v47  ;;  %v3720_v44 = vmax.f32 %v3718_v54, %v3719_v60  ;;  %3870 = vmatpush.msrb.mxu2 %v3829_v52  ;;  %v3843_v54 = vld [vmem:[%s6296_s5 + $0xa0] sm:$0xff] }
 0x530   : > { %3889 = vmatpush.msrb.mxu3 %v3846_v61  ;;  %v3823_v60 = vld [vmem:[%s6296_s5] sm:$0xff] }
 0x531   : > { %v3701_v53 = vmax.f32 %v3699_v43, %v3700_v8  ;;  %v3714_v56 = vrot.slane %v3713_v32, 2  ;;  %v3707_v18 = vrot.slane %v3706_v14, 2  ;;  %v3721_v29 = vrot.slane %v3720_v44, 2  ;;  %3871 = vmatpush.msrb.mxu2 %v3828_v37  ;;  %v3826_v8 = vld [vmem:[%s6296_s5 + $0x18] sm:$0xff] }
 0x532   : > { %3890 = vmatpush.msrb.mxu3 %v3845_v27 }
 0x533   : > { %v3702_v26 = vrot.slane %v3701_v53, 1  ;;  %v3715_v19 = vmax.f32 %v3713_v32, %v3714_v56  ;;  %v3708_v9 = vmax.f32 %v3706_v14, %v3707_v18  ;;  %v3722_v31 = vmax.f32 %v3720_v44, %v3721_v29  ;;  %3872 = vmatpush.msrb.mxu2 %v3827_v21  ;;  %v3824_v56 = vld [vmem:[%s6296_s5 + $0x8] sm:$0xff] }
 0x534   : > { %3891 = vmatpush.msrb.mxu3 %v3844_v15  ;;  %v3840_v18 = vld [vmem:[%s6296_s5 + $0x88] sm:$0xff] }
 0x535   : > { %v3703_v11 = vmax.f32 %v3701_v53, %v3702_v26  ;;  %v3716_v16 = vrot.slane %v3715_v19, 1  ;;  %v3709_v48 = vrot.slane %v3708_v9, 1  ;;  %v3723_v35 = vrot.slane %v3722_v31, 1  ;;  %3873 = vmatpush.msrb.mxu2 %v3826_v8  ;;  %v3841_v53 = vld [vmem:[%s6296_s5 + $0x90] sm:$0xff]  ;;  %v3839_v26 = vld [vmem:[%s6296_s5 + $0x80] sm:$0xff] }
 0x536   : > { %3892 = vmatpush.msrb.mxu3 %v3843_v54 }
 0x537   : > { %3803 = vrot.lane.b32.xlu0 %v3703_v11, %s4164_s21  ;;  %v3717_v58 = vmax.f32 %v3715_v19, %v3716_v16  ;;  %v3710_v17 = vmax.f32 %v3708_v9, %v3709_v48  ;;  %v3724_v6 = vmax.f32 %v3722_v31, %v3723_v35  ;;  %3874 = vmatpush.msrb.mxu2 %v3825_v1  ;;  %s3914_s21 = sshll.u32 %s270_s20, 4  ;;  %s3915_s21 = int_to_ptr.vmem [resolvable:$true] %s3914_s21 }
 0x538   : > { %3893 = vmatpush.msrb.mxu3 %v3842_v30 }
 0x539   : > { %3813 = vrot.lane.b32.xlu1 %v3717_v58, %s4167_s29  ;;  %3808 = vrot.lane.b32.xlu2 %v3710_v17, %s4166_s22  ;;  %s3912_s22 = scalar_lea.hbm %s6298_s7, %s4230_s28 }
 0x53a   : > { %3894 = vmatpush.msrb.mxu3 %v3841_v53  ;;  %3875 = vmatpush.msrb.mxu2 %v3824_v56  ;;  %s3916_s8 = sshll.u32 %s3912_s22, 4  ;;  %s3917_s8 = int_to_ptr.hbm [resolvable:$true] %s3916_s8 }
 0x53b   : > { %s4103_s15 = sshra.s32 %s3917_s8, 4  ;;  %s4104_s15 = int_to_ptr.hbm [resolvable:$true] %s4103_s15 }
 0x53c   : > { %3895 = vmatpush.msrb.mxu3 %v3840_v18  ;;  %3876 = vmatpush.msrb.mxu2 %v3823_v60  ;;  %s4105_s28 = scalar_lea.hbm %s4104_s15, 1  ;;  %p4110_p0 = scmp.lt.s32.totalorder %s4104_s15, %s6298_s7 }
 0x53d   : > { %p4106_p11 = scmp.ne.s32.totalorder %s4104_s15, %s4105_s28  ;;  %p4111_p1 = scmp.lt.s32.totalorder %s4109_s9, %s4105_s28 }
 0x53e   : > { %3896 = vmatpush.msrb.mxu3 %v3839_v26 }
 0x53f   : > { %3771 = vrot.lane.b32.xlu0 %v3661_v25, %s4167_s29  ;;  %p4107_p12 = pnand %p4106_p11, %p4247_p5  ;;  %p4112_p2 = por %p4111_p1, %p4110_p0 }
 0x541   : > { %3779 = vrot.lane.b32.xlu2 %v3668_v2, %s4168_s18  ;;  %p4108_p13 = pneg %p4107_p12 }
 0x543   : > { %p4113_p3 = pnand %p4112_p2, %p4108_p13 }
 0x547   : > { %3818 = vrot.lane.b32.xlu0 %v3724_v6, %s4168_s18 }
 0x56c   : > { %v3794_v0 = vpop.permute.xlu2 %3793 }
 0x574   : > { %v3756_v32 = vpop.permute.xlu2 %3755 }
 0x583   : > { %v3789_v5 = vpop.permute.xlu0 %3788  ;;  %v3799_v43 = vpop.permute.xlu1 %3798 }
 0x584   : > { %3791 = vst.msk [vmem:[#allocation6 + $0x1] sm:$0x1] %vm3736_vm1, %v3789_v5  ;;  %vm3782_vm1 = vcmp.ge.s32.totalorder %v3725_v20, 112  ;;  %v3855_v20 = vld [vmem:[%s6297_s6] sm:$0x1] }
 0x585   : > { %3796 = vst.msk [vmem:[#allocation6 + $0x1] sm:$0x1] %vm3744_vm5, %v3794_v0  ;;  %vm3784_vm3 = vmand %vm3782_vm1, %vm3783_vm2  ;;  %vm3901_vm5 = vcmask 73728  }
 0x586   : > { %3801 = vst.msk [vmem:[#allocation6 + $0x1] sm:$0x1] %vm3752_vm12, %v3799_v43 }
 0x58b   : > { %v3748_v47 = vpop.permute.xlu0 %3747  ;;  %v3764_v14 = vpop.permute.xlu1 %3763 }
 0x58c   : > { %3753 = vst.msk [vmem:[#allocation6] sm:$0x1] %vm3752_vm12, %v3748_v47 }
 0x58d   : > { %3761 = vst.msk [vmem:[#allocation6] sm:$0x1] %vm3760_vm7, %v3756_v32 }
 0x58e   : > { %3769 = vst.msk [vmem:[#allocation6] sm:$0x1] %vm3768_vm8, %v3764_v14 }
 0x593   : > { %v3809_v19 = vpop.permute.xlu2 %3808 }
 0x59b   : > { %v3780_v11 = vpop.permute.xlu2 %3779 }
 0x5a9   : > { %v3804_v9 = vpop.permute.xlu0 %3803 }
 0x5aa   : > { %3806 = vst.msk [vmem:[#allocation6 + $0x1] sm:$0x1] %vm3760_vm7, %v3804_v9 }
 0x5ab   : > { %3811 = vst.msk [vmem:[#allocation6 + $0x1] sm:$0x1] %vm3768_vm8, %v3809_v19  ;;  %v3814_v33 = vpop.permute.xlu1 %3813 }
 0x5ac   : > { %3816 = vst.msk [vmem:[#allocation6 + $0x1] sm:$0x1] %vm3776_vm11, %v3814_v33 }
 0x5b1   : > { %v3772_v57 = vpop.permute.xlu0 %3771 }
 0x5b2   : > { %3777 = vst.msk [vmem:[#allocation6] sm:$0x1] %vm3776_vm11, %v3772_v57 }
 0x5b3   : > { %3785 = vst.msk [vmem:[#allocation6] sm:$0x1] %vm3784_vm3, %v3780_v11 }
 0x5b9   : > { %v3819_v16 = vpop.permute.xlu0 %3818 }
 0x5ba   : > { %3821 = vst.msk [vmem:[#allocation6 + $0x1] sm:$0x1] %vm3784_vm3, %v3819_v16 }
 0x5c1   : > { %v3822_v48 = vld [vmem:[#allocation6] sm:$0x3] }
 0x5c2   : > { %v3857_v44 = vperm.slane %v3822_v48, 0  ;;  %v3858_v58 = vperm.slane %v3822_v48, 1 }
 0x5c4   : > { %3877 = vmatmul.f32.vlgmr.msrb.gmra.mxu2 %v3857_v44  ;;  %3897 = vmatmul.f32.vlgmr.msrb.gmra.mxu3 %v3858_v58 }
 0x647   : > { %v3878_v17 = vpop.f32.mrf.mxu2  ;;  %v3898_v3 = vpop.f32.mrf.mxu3 }
 0x648   : > { %v3879_v23 = vadd.f32 %v3878_v17, %v3855_v20 }
 0x64a   : > { %v3899_v29 = vadd.f32 %v3898_v3, %v3879_v23 }
 0x64c   : > { %3902 = vst.msk [vmem:[%s270_s20] sm:$0x1] %vm3901_vm5, %v3899_v29 }
 0x64d   : > { %4116 = shalt.err (!%p4113_p3)
}
 0x64e   : > { %4031 = dma.vmem_to_hbm [thread:$0]  (%p4247_p5), %s3915_s21, 16, %s3917_s8, %s3904_s14  }
 0x64f PF: > { %p4037_p4 = scmp.ge.s32.totalorder %s4151_s27, 2  ;;  %s3928_s13 = sand.u32 1, %s4139_s24  }
 0x650   : > { %s3929_s22 = scalar_lea.sflag [#allocation8], %s3928_s13 }
 0x651   : > { %p4034_p7 = pnand %p4037_p4, %p4251_p6 }
 0x653   : > { %p4035_p8 = pneg %p4034_p7 }
 0x655   : > { %4134 = dma.done.wait (%p4035_p8), %s3929_s22, 16  }
 0x656   : > { %4136 = vsyncadd (%p4035_p8), %s3929_s22, 4294967280  ;;  %p17_p9 = scmp.ge.s32.totalorder %s4234_s30, 4   ;;  %s6352_s24 = smov %s4143_s25 }
 0x657   : > { %s6353_s25 = smov %s4147_s26  ;;  %s6354_s26 = smov %s4245_s10 }
 0x658   : > { %s6355_s27 = smov %s4234_s30  ;;  %19 = sbr.rel (!%p17_p9) target bundleno = 3 (0x3), region = 87 }
 0x65d   :  { %3934 = vsyncpa [#allocation8], 1 }
 0x65e   :  { %3936 = vsyncpa [#allocation8 + $0x1], 1 }

</bundles_post_ra>
